<compile_context>
chip_gen: v7x
topology: tpu7x:2x2x1
jax: 0.10.0
libtpu: 0.0.40
codegen_flags: <defaults>
</compile_context>

<pallas_src>
import functools

import jax
import jax.numpy as jnp
from jax import lax
from jax.experimental import pallas as pl
from jax.experimental.pallas import tpu as pltpu

ALPHA = 0.2      # LeakyReLU negative slope
EPS = 1e-5       # BatchNorm eps (PyTorch default)
KSIZE = 4        # conv kernel size
PAD = 1          # conv padding
LANE = 128       # TPU lane width (only used to pad the final 1-channel conv)


def _pick_rows_per_block(ho, wo, target_rows=1024):
    """Largest divisor Th of Ho such that one block holds <= target_rows output rows."""
    best = 1
    for t in range(1, ho + 1):
        if ho % t == 0 and t * wo <= target_rows:
            best = t
    return best


def _make_phases(x_nhwc, k, s, pad):
    """Stride-phase split of the zero-padded NHWC input.

    Returns a bf16 array `phases` of shape (N*s*s, Hn, Wn, C) such that
        phases[n*s*s + (kh%s)*s + (kw%s), oh + kh//s, ow + kw//s, :]
            == x_pad[n, oh*s + kh, ow*s + kw, :]
    so every conv tap becomes a unit-stride shifted window inside the kernel
    (in-kernel im2col; ~1x activation bytes instead of a 16x patches matrix).
    """
    n, h, w, c = x_nhwc.shape
    ho = (h + 2 * pad - k) // s + 1
    wo = (w + 2 * pad - k) // s + 1
    hn = ho + (k - 1) // s
    wn = wo + (k - 1) // s
    xp = jnp.pad(x_nhwc, ((0, 0),
                          (pad, s * hn - (h + pad)),
                          (pad, s * wn - (w + pad)),
                          (0, 0)))
    ph = xp.reshape(n, hn, s, wn, s, c).transpose(0, 2, 4, 1, 3, 5)
    return ph.reshape(n * s * s, hn, wn, c).astype(jnp.bfloat16), ho, wo, hn, wn


# ----------------------------------------------------------------------------- kernels
def _conv_tap_kernel(*refs, s, k, th, wo, has_bias, has_lrelu, has_stats):
    """Fused conv(4x4) [+bias] [+LeakyReLU] for one (batch, row-block) grid step.
    Optionally accumulates per-channel (sum, sum_sq) for BatchNorm across the grid."""
    pos = 0
    x_ref = refs[pos]; pos += 1            # (s*s, Hn, Wn, Cin)  bf16, resident per image
    w_ref = refs[pos]; pos += 1            # (k*k, Cin, Cp)      bf16, resident
    b_ref = None
    if has_bias:
        b_ref = refs[pos]; pos += 1        # (1, Cp)             f32
    y_ref = refs[pos]; pos += 1            # (1, Th, Wo, Cp)     bf16
    if has_stats:
        ssum_ref = refs[pos]               # (1, Cp) f32, grid-resident accumulator
        ssq_ref = refs[pos + 1]            # (1, Cp) f32, grid-resident accumulator

    r_id = pl.program_id(1)
    row0 = r_id * th
    cp = y_ref.shape[-1]

    if has_stats:
        @pl.when((pl.program_id(0) == 0) & (r_id == 0))
        def _init():
            ssum_ref[...] = jnp.zeros_like(ssum_ref)
            ssq_ref[...] = jnp.zeros_like(ssq_ref)

    bias_v = b_ref[...] if has_bias else None

    def row_body(t, carry):
        acc = jnp.zeros((wo, cp), jnp.float32)
        for kh in range(k):                # 16 shifted matmuls on the MXU
            for kw in range(k):
                phase = (kh % s) * s + (kw % s)
                xrow = x_ref[phase, row0 + t + kh // s, pl.ds(kw // s, wo), :]
                acc = acc + jnp.dot(xrow, w_ref[kh * k + kw],
                                    preferred_element_type=jnp.float32)
        if has_bias:
            acc = acc + bias_v
        if has_lrelu:
            acc = jnp.maximum(acc, ALPHA * acc)
        y_ref[0, t] = acc.astype(y_ref.dtype)
        if has_stats:
            ssum_ref[...] = ssum_ref[...] + jnp.sum(acc, axis=0, keepdims=True)
            ssq_ref[...] = ssq_ref[...] + jnp.sum(acc * acc, axis=0, keepdims=True)
        return carry

    lax.fori_loop(0, th, row_body, 0)


def _bn_act_kernel(y_ref, sc_ref, sh_ref, o_ref):
    """Per-channel affine (folded BatchNorm) + LeakyReLU; bf16 in/out, f32 math."""
    v = y_ref[0].astype(jnp.float32) * sc_ref[...] + sh_ref[...]
    o_ref[0] = jnp.maximum(v, ALPHA * v).astype(o_ref.dtype)


# ----------------------------------------------------------------------------- layer wrapper
def conv_block(x_nhwc, w_oihw, bias, bn, stride, lrelu):
    """One block: Conv2d(k=4, pad=1) [+ BatchNorm2d(batch stats)] [+ LeakyReLU(0.2)]."""
    n, h, w, cin = x_nhwc.shape
    cout = w_oihw.shape[0]
    use_bn = bn is not None
    has_bias = bias is not None

    phases, ho, wo, hn, wn = _make_phases(x_nhwc, KSIZE, stride, PAD)
    th = _pick_rows_per_block(ho, wo)
    rb = ho // th
    m_total = n * ho * wo

    # Lane padding only for the tiny final 1-channel conv; big layers keep natural Cout.
    cp = cout if cout >= 8 else LANE
    wt = jnp.transpose(w_oihw, (2, 3, 1, 0)).reshape(KSIZE * KSIZE, cin, cout)
    if cp != cout:
        wt = jnp.pad(wt, ((0, 0), (0, 0), (0, cp - cout)))
    wt = wt.astype(jnp.bfloat16)

    in_arrays = [phases, wt]
    in_specs = [
        pl.BlockSpec((stride * stride, hn, wn, cin), lambda i, r: (i, 0, 0, 0)),
        pl.BlockSpec((KSIZE * KSIZE, cin, cp), lambda i, r: (0, 0, 0)),
    ]
    if has_bias:
        b = bias if cp == cout else jnp.pad(bias, (0, cp - cout))
        in_arrays.append(b.reshape(1, cp).astype(jnp.float32))
        in_specs.append(pl.BlockSpec((1, cp), lambda i, r: (0, 0)))

    out_shape = [jax.ShapeDtypeStruct((n, ho, wo, cp), jnp.bfloat16)]
    out_specs = [pl.BlockSpec((1, th, wo, cp), lambda i, r: (i, r, 0, 0))]
    if use_bn:
        out_shape += [jax.ShapeDtypeStruct((1, cp), jnp.float32)] * 2
        out_specs += [pl.BlockSpec((1, cp), lambda i, r: (0, 0)),
                      pl.BlockSpec((1, cp), lambda i, r: (0, 0))]

    kern = functools.partial(
        _conv_tap_kernel, s=stride, k=KSIZE, th=th, wo=wo,
        has_bias=has_bias, has_lrelu=(lrelu and not use_bn), has_stats=use_bn)

    # BN stats accumulate across the whole grid -> keep those axes sequential;
    # otherwise both axes are independent and can shard across v7x's 2 TensorCores.
    sems = ("arbitrary", "arbitrary") if use_bn else ("parallel", "parallel")
    conv_cost = pl.CostEstimate(
        flops=2 * m_total * (KSIZE * KSIZE * cin) * cp,
        transcendentals=0,
        bytes_accessed=phases.size * 2 + wt.size * 2 + m_total * cp * 2)

    outs = pl.pallas_call(
        kern,
        grid=(n, rb),
        in_specs=in_specs,
        out_specs=out_specs,
        out_shape=out_shape,
        compiler_params=pltpu.CompilerParams(dimension_semantics=sems),
        cost_estimate=conv_cost,
    )(*in_arrays)

    if use_bn:
        y, ssum, ssq = outs
        gamma, beta = bn
        mean = ssum[0] / m_total                          # training-mode batch stats
        var = jnp.maximum(ssq[0] / m_total - mean * mean, 0.0)
        scale = gamma * lax.rsqrt(var + EPS)
        shift = beta - mean * scale
        # TODO(synk): fold this affine+LeakyReLU into the next layer's conv prologue to
        #             avoid the extra bf16 read/write pass over the activations.
        y = pl.pallas_call(
            _bn_act_kernel,
            grid=(n, rb),
            in_specs=[pl.BlockSpec((1, th, wo, cp), lambda i, r: (i, r, 0, 0)),
                      pl.BlockSpec((1, cp), lambda i, r: (0, 0)),
                      pl.BlockSpec((1, cp), lambda i, r: (0, 0))],
            out_specs=pl.BlockSpec((1, th, wo, cp), lambda i, r: (i, r, 0, 0)),
            out_shape=jax.ShapeDtypeStruct((n, ho, wo, cp), jnp.bfloat16),
            compiler_params=pltpu.CompilerParams(
                dimension_semantics=("parallel", "parallel")),
            cost_estimate=pl.CostEstimate(flops=3 * m_total * cp, transcendentals=0,
                                          bytes_accessed=4 * m_total * cp + 8 * cp),
        )(y, scale.reshape(1, cp).astype(jnp.float32),
          shift.reshape(1, cp).astype(jnp.float32))
    else:
        y = outs[0]

    if cp != cout:
        y = y[..., :cout]
    return y


# ----------------------------------------------------------------------------- model
def make_params(key, input_num_channel, ndf=16, n_layers=3):
    """Deterministic synthetic parameters matching NLayerDiscriminator's layer shapes
    (norm_layer=BatchNorm2d  =>  use_bias=False on the BN conv layers)."""
    specs = [(input_num_channel, ndf, 2, True, False)]           # conv1 + LeakyReLU
    nf_mult = 1
    for nn in range(1, n_layers):
        nf_prev, nf_mult = nf_mult, min(2 ** nn, 8)
        specs.append((ndf * nf_prev, ndf * nf_mult, 2, False, True))
    nf_prev, nf_mult = nf_mult, min(2 ** n_layers, 8)
    specs.append((ndf * nf_prev, ndf * nf_mult, 1, False, True))
    specs.append((ndf * nf_mult, 1, 1, True, False))             # final 1-channel conv

    params = []
    for idx, (cin, cout, stride, use_bias, use_bn) in enumerate(specs):
        key, k1, k2, k3, k4 = jax.random.split(key, 5)
        wgt = jax.random.normal(k1, (cout, cin, 4, 4), jnp.float32) * 0.05
        b = (jax.random.normal(k2, (cout,), jnp.float32) * 0.05) if use_bias else None
        bn = None
        if use_bn:
            gamma = 1.0 + 0.1 * jax.random.normal(k3, (cout,), jnp.float32)
            beta = 0.1 * jax.random.normal(k4, (cout,), jnp.float32)
            bn = (gamma, beta)
        lrelu = idx != len(specs) - 1                            # last conv: no activation
        params.append(dict(w=wgt, b=b, stride=stride, bn=bn, lrelu=lrelu))
    return params


def nlayer_discriminator(x_nchw, params):
    x = jnp.transpose(x_nchw, (0, 2, 3, 1)).astype(jnp.bfloat16)  # NCHW -> NHWC, bf16 acts
    for p in params:
        x = conv_block(x, p["w"], p["b"], p["bn"], p["stride"], p["lrelu"])
    return jnp.transpose(x, (0, 3, 1, 2)).astype(jnp.float32)     # NHWC -> NCHW


# ----------------------------------------------------------------------------- main
if __name__ == "__main__":
    key = jax.random.PRNGKey(0)
    k_in, k_par = jax.random.split(key)

    B, C, H, W = 2, 4, 32, 32                                     # 32x32 keeps all 5 convs > 0
    x = jax.random.normal(k_in, (B, C, H, W), jnp.float32)        # NCHW, like PyTorch

    params = make_params(k_par, input_num_channel=C, ndf=16, n_layers=3)

    fwd = jax.jit(lambda inp: nlayer_discriminator(inp, params))
    out = jax.block_until_ready(fwd(x))

    assert out.shape == (B, 1, 2, 2), out.shape
    assert bool(jnp.all(jnp.isfinite(out)))
    print("KERNEL_OK")
</pallas_src>

<mosaic_0001>
module attributes {stable_mosaic.version = 11 : i64} {
  func.func @_conv_tap_kernel(%arg0: i32, %arg1: i32, %arg2: memref<4x17x17x4xbf16, #tpu.memory_space<vmem>>, %arg3: memref<16x4x16xbf16, #tpu.memory_space<vmem>>, %arg4: memref<1x16xf32, #tpu.memory_space<vmem>>, %arg5: memref<1x16x16x16xbf16, #tpu.memory_space<vmem>>) attributes {dimension_semantics = [#tpu.dimension_semantics<parallel>, #tpu.dimension_semantics<parallel>], iteration_bounds = array<i64: 2, 1>, scalar_prefetch = 0 : i64, scratch_operands = 0 : i64, tpu.core_type = #tpu.core_type<tc>, window_params = [{transform_indices = @transform_0, window_bounds = array<i64: 4, 17, 17, 4>}, {pipeline_mode = #tpu.pipeline_mode<synchronous>, transform_indices = @transform_1, window_bounds = array<i64: 16, 4, 16>}, {pipeline_mode = #tpu.pipeline_mode<synchronous>, transform_indices = @transform_2, window_bounds = array<i64: 1, 16>}, {transform_indices = @transform_3, window_bounds = array<i64: 1, 16, 16, 16>}]} {
    %c16_i32 = arith.constant 16 : i32
    %0 = arith.muli %arg1, %c16_i32 : i32
    %c0 = arith.constant 0 : index
    %c0_0 = arith.constant 0 : index
    %1 = vector.load %arg4[%c0, %c0_0] : memref<1x16xf32, #tpu.memory_space<vmem>>, vector<1x16xf32>
    %c0_i32 = arith.constant 0 : i32
    %c16_i32_1 = arith.constant 16 : i32
    %2 = arith.addi %c0_i32, %c16_i32_1 : i32
    %c1_i32 = arith.constant 1 : i32
    scf.for %arg6 = %c0_i32 to %2 step %c1_i32  : i32 {
      %cst = arith.constant 0.000000e+00 : f32
      %3 = vector.broadcast %cst : f32 to vector<16x16xf32>
      %4 = arith.addi %0, %arg6 : i32
      %c0_i32_3 = arith.constant 0 : i32
      %5 = arith.addi %4, %c0_i32_3 : i32
      %c0_4 = arith.constant 0 : index
      %6 = arith.index_cast %5 : i32 to index
      %c0_5 = arith.constant 0 : index
      %c0_6 = arith.constant 0 : index
      %7 = vector.load %arg2[%c0_4, %6, %c0_5, %c0_6] : memref<4x17x17x4xbf16, #tpu.memory_space<vmem>>, vector<1x1x16x4xbf16>
      %8 = vector.shape_cast %7 : vector<1x1x16x4xbf16> to vector<16x4xbf16>
      %c0_7 = arith.constant 0 : index
      %c0_8 = arith.constant 0 : index
      %c0_9 = arith.constant 0 : index
      %9 = vector.load %arg3[%c0_7, %c0_8, %c0_9] : memref<16x4x16xbf16, #tpu.memory_space<vmem>>, vector<1x4x16xbf16>
      %10 = vector.shape_cast %9 : vector<1x4x16xbf16> to vector<4x16xbf16>
      %cst_10 = arith.constant dense<0.000000e+00> : vector<16x16xf32>
      %11 = tpu.matmul %8, %10, %cst_10 {dimension_numbers = #tpu.dot_dimension_numbers<[1], [0], [0], [1], [0, 0, 1, 1], [], []>} : vector<16x4xbf16>, vector<4x16xbf16>, vector<16x16xf32> -> vector<16x16xf32>
      %12 = arith.addf %3, %11 : vector<16x16xf32>
      %13 = arith.addi %0, %arg6 : i32
      %c0_i32_11 = arith.constant 0 : i32
      %14 = arith.addi %13, %c0_i32_11 : i32
      %c1 = arith.constant 1 : index
      %15 = arith.index_cast %14 : i32 to index
      %c0_12 = arith.constant 0 : index
      %c0_13 = arith.constant 0 : index
      %16 = vector.load %arg2[%c1, %15, %c0_12, %c0_13] : memref<4x17x17x4xbf16, #tpu.memory_space<vmem>>, vector<1x1x16x4xbf16>
      %17 = vector.shape_cast %16 : vector<1x1x16x4xbf16> to vector<16x4xbf16>
      %c1_14 = arith.constant 1 : index
      %c0_15 = arith.constant 0 : index
      %c0_16 = arith.constant 0 : index
      %18 = vector.load %arg3[%c1_14, %c0_15, %c0_16] : memref<16x4x16xbf16, #tpu.memory_space<vmem>>, vector<1x4x16xbf16>
      %19 = vector.shape_cast %18 : vector<1x4x16xbf16> to vector<4x16xbf16>
      %cst_17 = arith.constant dense<0.000000e+00> : vector<16x16xf32>
      %20 = tpu.matmul %17, %19, %cst_17 {dimension_numbers = #tpu.dot_dimension_numbers<[1], [0], [0], [1], [0, 0, 1, 1], [], []>} : vector<16x4xbf16>, vector<4x16xbf16>, vector<16x16xf32> -> vector<16x16xf32>
      %21 = arith.addf %12, %20 : vector<16x16xf32>
      %22 = arith.addi %0, %arg6 : i32
      %c0_i32_18 = arith.constant 0 : i32
      %23 = arith.addi %22, %c0_i32_18 : i32
      %c0_19 = arith.constant 0 : index
      %24 = arith.index_cast %23 : i32 to index
      %c1_20 = arith.constant 1 : index
      %c0_21 = arith.constant 0 : index
      %25 = vector.load %arg2[%c0_19, %24, %c1_20, %c0_21] : memref<4x17x17x4xbf16, #tpu.memory_space<vmem>>, vector<1x1x16x4xbf16>
      %26 = vector.shape_cast %25 : vector<1x1x16x4xbf16> to vector<16x4xbf16>
      %c2 = arith.constant 2 : index
      %c0_22 = arith.constant 0 : index
      %c0_23 = arith.constant 0 : index
      %27 = vector.load %arg3[%c2, %c0_22, %c0_23] : memref<16x4x16xbf16, #tpu.memory_space<vmem>>, vector<1x4x16xbf16>
      %28 = vector.shape_cast %27 : vector<1x4x16xbf16> to vector<4x16xbf16>
      %cst_24 = arith.constant dense<0.000000e+00> : vector<16x16xf32>
      %29 = tpu.matmul %26, %28, %cst_24 {dimension_numbers = #tpu.dot_dimension_numbers<[1], [0], [0], [1], [0, 0, 1, 1], [], []>} : vector<16x4xbf16>, vector<4x16xbf16>, vector<16x16xf32> -> vector<16x16xf32>
      %30 = arith.addf %21, %29 : vector<16x16xf32>
      %31 = arith.addi %0, %arg6 : i32
      %c0_i32_25 = arith.constant 0 : i32
      %32 = arith.addi %31, %c0_i32_25 : i32
      %c1_26 = arith.constant 1 : index
      %33 = arith.index_cast %32 : i32 to index
      %c1_27 = arith.constant 1 : index
      %c0_28 = arith.constant 0 : index
      %34 = vector.load %arg2[%c1_26, %33, %c1_27, %c0_28] : memref<4x17x17x4xbf16, #tpu.memory_space<vmem>>, vector<1x1x16x4xbf16>
      %35 = vector.shape_cast %34 : vector<1x1x16x4xbf16> to vector<16x4xbf16>
      %c3 = arith.constant 3 : index
      %c0_29 = arith.constant 0 : index
      %c0_30 = arith.constant 0 : index
      %36 = vector.load %arg3[%c3, %c0_29, %c0_30] : memref<16x4x16xbf16, #tpu.memory_space<vmem>>, vector<1x4x16xbf16>
      %37 = vector.shape_cast %36 : vector<1x4x16xbf16> to vector<4x16xbf16>
      %cst_31 = arith.constant dense<0.000000e+00> : vector<16x16xf32>
      %38 = tpu.matmul %35, %37, %cst_31 {dimension_numbers = #tpu.dot_dimension_numbers<[1], [0], [0], [1], [0, 0, 1, 1], [], []>} : vector<16x4xbf16>, vector<4x16xbf16>, vector<16x16xf32> -> vector<16x16xf32>
      %39 = arith.addf %30, %38 : vector<16x16xf32>
      %40 = arith.addi %0, %arg6 : i32
      %c0_i32_32 = arith.constant 0 : i32
      %41 = arith.addi %40, %c0_i32_32 : i32
      %c2_33 = arith.constant 2 : index
      %42 = arith.index_cast %41 : i32 to index
      %c0_34 = arith.constant 0 : index
      %c0_35 = arith.constant 0 : index
      %43 = vector.load %arg2[%c2_33, %42, %c0_34, %c0_35] : memref<4x17x17x4xbf16, #tpu.memory_space<vmem>>, vector<1x1x16x4xbf16>
      %44 = vector.shape_cast %43 : vector<1x1x16x4xbf16> to vector<16x4xbf16>
      %c4 = arith.constant 4 : index
      %c0_36 = arith.constant 0 : index
      %c0_37 = arith.constant 0 : index
      %45 = vector.load %arg3[%c4, %c0_36, %c0_37] : memref<16x4x16xbf16, #tpu.memory_space<vmem>>, vector<1x4x16xbf16>
      %46 = vector.shape_cast %45 : vector<1x4x16xbf16> to vector<4x16xbf16>
      %cst_38 = arith.constant dense<0.000000e+00> : vector<16x16xf32>
      %47 = tpu.matmul %44, %46, %cst_38 {dimension_numbers = #tpu.dot_dimension_numbers<[1], [0], [0], [1], [0, 0, 1, 1], [], []>} : vector<16x4xbf16>, vector<4x16xbf16>, vector<16x16xf32> -> vector<16x16xf32>
      %48 = arith.addf %39, %47 : vector<16x16xf32>
      %49 = arith.addi %0, %arg6 : i32
      %c0_i32_39 = arith.constant 0 : i32
      %50 = arith.addi %49, %c0_i32_39 : i32
      %c3_40 = arith.constant 3 : index
      %51 = arith.index_cast %50 : i32 to index
      %c0_41 = arith.constant 0 : index
      %c0_42 = arith.constant 0 : index
      %52 = vector.load %arg2[%c3_40, %51, %c0_41, %c0_42] : memref<4x17x17x4xbf16, #tpu.memory_space<vmem>>, vector<1x1x16x4xbf16>
      %53 = vector.shape_cast %52 : vector<1x1x16x4xbf16> to vector<16x4xbf16>
      %c5 = arith.constant 5 : index
      %c0_43 = arith.constant 0 : index
      %c0_44 = arith.constant 0 : index
      %54 = vector.load %arg3[%c5, %c0_43, %c0_44] : memref<16x4x16xbf16, #tpu.memory_space<vmem>>, vector<1x4x16xbf16>
      %55 = vector.shape_cast %54 : vector<1x4x16xbf16> to vector<4x16xbf16>
      %cst_45 = arith.constant dense<0.000000e+00> : vector<16x16xf32>
      %56 = tpu.matmul %53, %55, %cst_45 {dimension_numbers = #tpu.dot_dimension_numbers<[1], [0], [0], [1], [0, 0, 1, 1], [], []>} : vector<16x4xbf16>, vector<4x16xbf16>, vector<16x16xf32> -> vector<16x16xf32>
      %57 = arith.addf %48, %56 : vector<16x16xf32>
      %58 = arith.addi %0, %arg6 : i32
      %c0_i32_46 = arith.constant 0 : i32
      %59 = arith.addi %58, %c0_i32_46 : i32
      %c2_47 = arith.constant 2 : index
      %60 = arith.index_cast %59 : i32 to index
      %c1_48 = arith.constant 1 : index
      %c0_49 = arith.constant 0 : index
      %61 = vector.load %arg2[%c2_47, %60, %c1_48, %c0_49] : memref<4x17x17x4xbf16, #tpu.memory_space<vmem>>, vector<1x1x16x4xbf16>
      %62 = vector.shape_cast %61 : vector<1x1x16x4xbf16> to vector<16x4xbf16>
      %c6 = arith.constant 6 : index
      %c0_50 = arith.constant 0 : index
      %c0_51 = arith.constant 0 : index
      %63 = vector.load %arg3[%c6, %c0_50, %c0_51] : memref<16x4x16xbf16, #tpu.memory_space<vmem>>, vector<1x4x16xbf16>
      %64 = vector.shape_cast %63 : vector<1x4x16xbf16> to vector<4x16xbf16>
      %cst_52 = arith.constant dense<0.000000e+00> : vector<16x16xf32>
      %65 = tpu.matmul %62, %64, %cst_52 {dimension_numbers = #tpu.dot_dimension_numbers<[1], [0], [0], [1], [0, 0, 1, 1], [], []>} : vector<16x4xbf16>, vector<4x16xbf16>, vector<16x16xf32> -> vector<16x16xf32>
      %66 = arith.addf %57, %65 : vector<16x16xf32>
      %67 = arith.addi %0, %arg6 : i32
      %c0_i32_53 = arith.constant 0 : i32
      %68 = arith.addi %67, %c0_i32_53 : i32
      %c3_54 = arith.constant 3 : index
      %69 = arith.index_cast %68 : i32 to index
      %c1_55 = arith.constant 1 : index
      %c0_56 = arith.constant 0 : index
      %70 = vector.load %arg2[%c3_54, %69, %c1_55, %c0_56] : memref<4x17x17x4xbf16, #tpu.memory_space<vmem>>, vector<1x1x16x4xbf16>
      %71 = vector.shape_cast %70 : vector<1x1x16x4xbf16> to vector<16x4xbf16>
      %c7 = arith.constant 7 : index
      %c0_57 = arith.constant 0 : index
      %c0_58 = arith.constant 0 : index
      %72 = vector.load %arg3[%c7, %c0_57, %c0_58] : memref<16x4x16xbf16, #tpu.memory_space<vmem>>, vector<1x4x16xbf16>
      %73 = vector.shape_cast %72 : vector<1x4x16xbf16> to vector<4x16xbf16>
      %cst_59 = arith.constant dense<0.000000e+00> : vector<16x16xf32>
      %74 = tpu.matmul %71, %73, %cst_59 {dimension_numbers = #tpu.dot_dimension_numbers<[1], [0], [0], [1], [0, 0, 1, 1], [], []>} : vector<16x4xbf16>, vector<4x16xbf16>, vector<16x16xf32> -> vector<16x16xf32>
      %75 = arith.addf %66, %74 : vector<16x16xf32>
      %76 = arith.addi %0, %arg6 : i32
      %c1_i32_60 = arith.constant 1 : i32
      %77 = arith.addi %76, %c1_i32_60 : i32
      %c0_61 = arith.constant 0 : index
      %78 = arith.index_cast %77 : i32 to index
      %c0_62 = arith.constant 0 : index
      %c0_63 = arith.constant 0 : index
      %79 = vector.load %arg2[%c0_61, %78, %c0_62, %c0_63] : memref<4x17x17x4xbf16, #tpu.memory_space<vmem>>, vector<1x1x16x4xbf16>
      %80 = vector.shape_cast %79 : vector<1x1x16x4xbf16> to vector<16x4xbf16>
      %c8 = arith.constant 8 : index
      %c0_64 = arith.constant 0 : index
      %c0_65 = arith.constant 0 : index
      %81 = vector.load %arg3[%c8, %c0_64, %c0_65] : memref<16x4x16xbf16, #tpu.memory_space<vmem>>, vector<1x4x16xbf16>
      %82 = vector.shape_cast %81 : vector<1x4x16xbf16> to vector<4x16xbf16>
      %cst_66 = arith.constant dense<0.000000e+00> : vector<16x16xf32>
      %83 = tpu.matmul %80, %82, %cst_66 {dimension_numbers = #tpu.dot_dimension_numbers<[1], [0], [0], [1], [0, 0, 1, 1], [], []>} : vector<16x4xbf16>, vector<4x16xbf16>, vector<16x16xf32> -> vector<16x16xf32>
      %84 = arith.addf %75, %83 : vector<16x16xf32>
      %85 = arith.addi %0, %arg6 : i32
      %c1_i32_67 = arith.constant 1 : i32
      %86 = arith.addi %85, %c1_i32_67 : i32
      %c1_68 = arith.constant 1 : index
      %87 = arith.index_cast %86 : i32 to index
      %c0_69 = arith.constant 0 : index
      %c0_70 = arith.constant 0 : index
      %88 = vector.load %arg2[%c1_68, %87, %c0_69, %c0_70] : memref<4x17x17x4xbf16, #tpu.memory_space<vmem>>, vector<1x1x16x4xbf16>
      %89 = vector.shape_cast %88 : vector<1x1x16x4xbf16> to vector<16x4xbf16>
      %c9 = arith.constant 9 : index
      %c0_71 = arith.constant 0 : index
      %c0_72 = arith.constant 0 : index
      %90 = vector.load %arg3[%c9, %c0_71, %c0_72] : memref<16x4x16xbf16, #tpu.memory_space<vmem>>, vector<1x4x16xbf16>
      %91 = vector.shape_cast %90 : vector<1x4x16xbf16> to vector<4x16xbf16>
      %cst_73 = arith.constant dense<0.000000e+00> : vector<16x16xf32>
      %92 = tpu.matmul %89, %91, %cst_73 {dimension_numbers = #tpu.dot_dimension_numbers<[1], [0], [0], [1], [0, 0, 1, 1], [], []>} : vector<16x4xbf16>, vector<4x16xbf16>, vector<16x16xf32> -> vector<16x16xf32>
      %93 = arith.addf %84, %92 : vector<16x16xf32>
      %94 = arith.addi %0, %arg6 : i32
      %c1_i32_74 = arith.constant 1 : i32
      %95 = arith.addi %94, %c1_i32_74 : i32
      %c0_75 = arith.constant 0 : index
      %96 = arith.index_cast %95 : i32 to index
      %c1_76 = arith.constant 1 : index
      %c0_77 = arith.constant 0 : index
      %97 = vector.load %arg2[%c0_75, %96, %c1_76, %c0_77] : memref<4x17x17x4xbf16, #tpu.memory_space<vmem>>, vector<1x1x16x4xbf16>
      %98 = vector.shape_cast %97 : vector<1x1x16x4xbf16> to vector<16x4xbf16>
      %c10 = arith.constant 10 : index
      %c0_78 = arith.constant 0 : index
      %c0_79 = arith.constant 0 : index
      %99 = vector.load %arg3[%c10, %c0_78, %c0_79] : memref<16x4x16xbf16, #tpu.memory_space<vmem>>, vector<1x4x16xbf16>
      %100 = vector.shape_cast %99 : vector<1x4x16xbf16> to vector<4x16xbf16>
      %cst_80 = arith.constant dense<0.000000e+00> : vector<16x16xf32>
      %101 = tpu.matmul %98, %100, %cst_80 {dimension_numbers = #tpu.dot_dimension_numbers<[1], [0], [0], [1], [0, 0, 1, 1], [], []>} : vector<16x4xbf16>, vector<4x16xbf16>, vector<16x16xf32> -> vector<16x16xf32>
      %102 = arith.addf %93, %101 : vector<16x16xf32>
      %103 = arith.addi %0, %arg6 : i32
      %c1_i32_81 = arith.constant 1 : i32
      %104 = arith.addi %103, %c1_i32_81 : i32
      %c1_82 = arith.constant 1 : index
      %105 = arith.index_cast %104 : i32 to index
      %c1_83 = arith.constant 1 : index
      %c0_84 = arith.constant 0 : index
      %106 = vector.load %arg2[%c1_82, %105, %c1_83, %c0_84] : memref<4x17x17x4xbf16, #tpu.memory_space<vmem>>, vector<1x1x16x4xbf16>
      %107 = vector.shape_cast %106 : vector<1x1x16x4xbf16> to vector<16x4xbf16>
      %c11 = arith.constant 11 : index
      %c0_85 = arith.constant 0 : index
      %c0_86 = arith.constant 0 : index
      %108 = vector.load %arg3[%c11, %c0_85, %c0_86] : memref<16x4x16xbf16, #tpu.memory_space<vmem>>, vector<1x4x16xbf16>
      %109 = vector.shape_cast %108 : vector<1x4x16xbf16> to vector<4x16xbf16>
      %cst_87 = arith.constant dense<0.000000e+00> : vector<16x16xf32>
      %110 = tpu.matmul %107, %109, %cst_87 {dimension_numbers = #tpu.dot_dimension_numbers<[1], [0], [0], [1], [0, 0, 1, 1], [], []>} : vector<16x4xbf16>, vector<4x16xbf16>, vector<16x16xf32> -> vector<16x16xf32>
      %111 = arith.addf %102, %110 : vector<16x16xf32>
      %112 = arith.addi %0, %arg6 : i32
      %c1_i32_88 = arith.constant 1 : i32
      %113 = arith.addi %112, %c1_i32_88 : i32
      %c2_89 = arith.constant 2 : index
      %114 = arith.index_cast %113 : i32 to index
      %c0_90 = arith.constant 0 : index
      %c0_91 = arith.constant 0 : index
      %115 = vector.load %arg2[%c2_89, %114, %c0_90, %c0_91] : memref<4x17x17x4xbf16, #tpu.memory_space<vmem>>, vector<1x1x16x4xbf16>
      %116 = vector.shape_cast %115 : vector<1x1x16x4xbf16> to vector<16x4xbf16>
      %c12 = arith.constant 12 : index
      %c0_92 = arith.constant 0 : index
      %c0_93 = arith.constant 0 : index
      %117 = vector.load %arg3[%c12, %c0_92, %c0_93] : memref<16x4x16xbf16, #tpu.memory_space<vmem>>, vector<1x4x16xbf16>
      %118 = vector.shape_cast %117 : vector<1x4x16xbf16> to vector<4x16xbf16>
      %cst_94 = arith.constant dense<0.000000e+00> : vector<16x16xf32>
      %119 = tpu.matmul %116, %118, %cst_94 {dimension_numbers = #tpu.dot_dimension_numbers<[1], [0], [0], [1], [0, 0, 1, 1], [], []>} : vector<16x4xbf16>, vector<4x16xbf16>, vector<16x16xf32> -> vector<16x16xf32>
      %120 = arith.addf %111, %119 : vector<16x16xf32>
      %121 = arith.addi %0, %arg6 : i32
      %c1_i32_95 = arith.constant 1 : i32
      %122 = arith.addi %121, %c1_i32_95 : i32
      %c3_96 = arith.constant 3 : index
      %123 = arith.index_cast %122 : i32 to index
      %c0_97 = arith.constant 0 : index
      %c0_98 = arith.constant 0 : index
      %124 = vector.load %arg2[%c3_96, %123, %c0_97, %c0_98] : memref<4x17x17x4xbf16, #tpu.memory_space<vmem>>, vector<1x1x16x4xbf16>
      %125 = vector.shape_cast %124 : vector<1x1x16x4xbf16> to vector<16x4xbf16>
      %c13 = arith.constant 13 : index
      %c0_99 = arith.constant 0 : index
      %c0_100 = arith.constant 0 : index
      %126 = vector.load %arg3[%c13, %c0_99, %c0_100] : memref<16x4x16xbf16, #tpu.memory_space<vmem>>, vector<1x4x16xbf16>
      %127 = vector.shape_cast %126 : vector<1x4x16xbf16> to vector<4x16xbf16>
      %cst_101 = arith.constant dense<0.000000e+00> : vector<16x16xf32>
      %128 = tpu.matmul %125, %127, %cst_101 {dimension_numbers = #tpu.dot_dimension_numbers<[1], [0], [0], [1], [0, 0, 1, 1], [], []>} : vector<16x4xbf16>, vector<4x16xbf16>, vector<16x16xf32> -> vector<16x16xf32>
      %129 = arith.addf %120, %128 : vector<16x16xf32>
      %130 = arith.addi %0, %arg6 : i32
      %c1_i32_102 = arith.constant 1 : i32
      %131 = arith.addi %130, %c1_i32_102 : i32
      %c2_103 = arith.constant 2 : index
      %132 = arith.index_cast %131 : i32 to index
      %c1_104 = arith.constant 1 : index
      %c0_105 = arith.constant 0 : index
      %133 = vector.load %arg2[%c2_103, %132, %c1_104, %c0_105] : memref<4x17x17x4xbf16, #tpu.memory_space<vmem>>, vector<1x1x16x4xbf16>
      %134 = vector.shape_cast %133 : vector<1x1x16x4xbf16> to vector<16x4xbf16>
      %c14 = arith.constant 14 : index
      %c0_106 = arith.constant 0 : index
      %c0_107 = arith.constant 0 : index
      %135 = vector.load %arg3[%c14, %c0_106, %c0_107] : memref<16x4x16xbf16, #tpu.memory_space<vmem>>, vector<1x4x16xbf16>
      %136 = vector.shape_cast %135 : vector<1x4x16xbf16> to vector<4x16xbf16>
      %cst_108 = arith.constant dense<0.000000e+00> : vector<16x16xf32>
      %137 = tpu.matmul %134, %136, %cst_108 {dimension_numbers = #tpu.dot_dimension_numbers<[1], [0], [0], [1], [0, 0, 1, 1], [], []>} : vector<16x4xbf16>, vector<4x16xbf16>, vector<16x16xf32> -> vector<16x16xf32>
      %138 = arith.addf %129, %137 : vector<16x16xf32>
      %139 = arith.addi %0, %arg6 : i32
      %c1_i32_109 = arith.constant 1 : i32
      %140 = arith.addi %139, %c1_i32_109 : i32
      %c3_110 = arith.constant 3 : index
      %141 = arith.index_cast %140 : i32 to index
      %c1_111 = arith.constant 1 : index
      %c0_112 = arith.constant 0 : index
      %142 = vector.load %arg2[%c3_110, %141, %c1_111, %c0_112] : memref<4x17x17x4xbf16, #tpu.memory_space<vmem>>, vector<1x1x16x4xbf16>
      %143 = vector.shape_cast %142 : vector<1x1x16x4xbf16> to vector<16x4xbf16>
      %c15 = arith.constant 15 : index
      %c0_113 = arith.constant 0 : index
      %c0_114 = arith.constant 0 : index
      %144 = vector.load %arg3[%c15, %c0_113, %c0_114] : memref<16x4x16xbf16, #tpu.memory_space<vmem>>, vector<1x4x16xbf16>
      %145 = vector.shape_cast %144 : vector<1x4x16xbf16> to vector<4x16xbf16>
      %cst_115 = arith.constant dense<0.000000e+00> : vector<16x16xf32>
      %146 = tpu.matmul %143, %145, %cst_115 {dimension_numbers = #tpu.dot_dimension_numbers<[1], [0], [0], [1], [0, 0, 1, 1], [], []>} : vector<16x4xbf16>, vector<4x16xbf16>, vector<16x16xf32> -> vector<16x16xf32>
      %147 = arith.addf %138, %146 : vector<16x16xf32>
      %148 = vector.broadcast %1 : vector<1x16xf32> to vector<16x16xf32>
      %149 = arith.addf %147, %148 : vector<16x16xf32>
      %cst_116 = arith.constant 2.000000e-01 : f32
      %150 = vector.broadcast %cst_116 : f32 to vector<16x16xf32>
      %151 = arith.mulf %150, %149 : vector<16x16xf32>
      %152 = arith.maximumf %149, %151 : vector<16x16xf32>
      %153 = arith.truncf %152 : vector<16x16xf32> to vector<16x16xbf16>
      %c0_117 = arith.constant 0 : index
      %154 = arith.index_cast %arg6 : i32 to index
      %c0_118 = arith.constant 0 : index
      %c0_119 = arith.constant 0 : index
      %155 = vector.load %arg5[%c0_117, %154, %c0_118, %c0_119] : memref<1x16x16x16xbf16, #tpu.memory_space<vmem>>, vector<1x1x16x16xbf16>
      %156 = vector.shape_cast %155 : vector<1x1x16x16xbf16> to vector<16x16xbf16>
      %157 = vector.shape_cast %153 : vector<16x16xbf16> to vector<1x1x16x16xbf16>
      tpu.vector_store %arg5[%c0_117, %154, %c0_118, %c0_119], %157 {strides = array<i32>} : memref<1x16x16x16xbf16, #tpu.memory_space<vmem>>, vector<1x1x16x16xbf16>,
    }
    %c16_i32_2 = arith.constant 16 : i32
    return
  }
  func.func @transform_0(%arg0: i32, %arg1: i32) -> (i32, i32, i32, i32) {
    %c0_i32 = arith.constant 0 : i32
    %c0_i32_0 = arith.constant 0 : i32
    %c0_i32_1 = arith.constant 0 : i32
    %c0_i32_2 = arith.constant 0 : i32
    return %arg0, %c0_i32, %c0_i32_0, %c0_i32_1 : i32, i32, i32, i32
  }
  func.func @transform_1(%arg0: i32, %arg1: i32) -> (i32, i32, i32) {
    %c0_i32 = arith.constant 0 : i32
    %c0_i32_0 = arith.constant 0 : i32
    %c0_i32_1 = arith.constant 0 : i32
    %c0_i32_2 = arith.constant 0 : i32
    return %c0_i32, %c0_i32_0, %c0_i32_1 : i32, i32, i32
  }
  func.func @transform_2(%arg0: i32, %arg1: i32) -> (i32, i32) {
    %c0_i32 = arith.constant 0 : i32
    %c0_i32_0 = arith.constant 0 : i32
    %c0_i32_1 = arith.constant 0 : i32
    return %c0_i32, %c0_i32_0 : i32, i32
  }
  func.func @transform_3(%arg0: i32, %arg1: i32) -> (i32, i32, i32, i32) {
    %c0_i32 = arith.constant 0 : i32
    %c0_i32_0 = arith.constant 0 : i32
    %c0_i32_1 = arith.constant 0 : i32
    return %arg0, %arg1, %c0_i32, %c0_i32_0 : i32, i32, i32, i32
  }
}

module attributes {stable_mosaic.version = 11 : i64} {
  func.func @_bn_act_kernel(%arg0: i32, %arg1: i32, %arg2: memref<1x8x8x32xbf16, #tpu.memory_space<vmem>>, %arg3: memref<1x32xf32, #tpu.memory_space<vmem>>, %arg4: memref<1x32xf32, #tpu.memory_space<vmem>>, %arg5: memref<1x8x8x32xbf16, #tpu.memory_space<vmem>>) attributes {dimension_semantics = [#tpu.dimension_semantics<parallel>, #tpu.dimension_semantics<parallel>], iteration_bounds = array<i64: 2, 1>, scalar_prefetch = 0 : i64, scratch_operands = 0 : i64, tpu.core_type = #tpu.core_type<tc>, window_params = [{transform_indices = @transform_0, window_bounds = array<i64: 1, 8, 8, 32>}, {pipeline_mode = #tpu.pipeline_mode<synchronous>, transform_indices = @transform_1, window_bounds = array<i64: 1, 32>}, {pipeline_mode = #tpu.pipeline_mode<synchronous>, transform_indices = @transform_2, window_bounds = array<i64: 1, 32>}, {transform_indices = @transform_3, window_bounds = array<i64: 1, 8, 8, 32>}]} {
    %c0 = arith.constant 0 : index
    %c0_0 = arith.constant 0 : index
    %c0_1 = arith.constant 0 : index
    %c0_2 = arith.constant 0 : index
    %0 = vector.load %arg2[%c0, %c0_0, %c0_1, %c0_2] : memref<1x8x8x32xbf16, #tpu.memory_space<vmem>>, vector<1x8x8x32xbf16>
    %1 = vector.shape_cast %0 : vector<1x8x8x32xbf16> to vector<8x8x32xbf16>
    %2 = arith.extf %1 : vector<8x8x32xbf16> to vector<8x8x32xf32>
    %c0_3 = arith.constant 0 : index
    %c0_4 = arith.constant 0 : index
    %3 = vector.load %arg3[%c0_3, %c0_4] : memref<1x32xf32, #tpu.memory_space<vmem>>, vector<1x32xf32>
    %4 = vector.shape_cast %3 : vector<1x32xf32> to vector<1x1x32xf32>
    %5 = vector.broadcast %4 : vector<1x1x32xf32> to vector<8x8x32xf32>
    %6 = arith.mulf %2, %5 : vector<8x8x32xf32>
    %c0_5 = arith.constant 0 : index
    %c0_6 = arith.constant 0 : index
    %7 = vector.load %arg4[%c0_5, %c0_6] : memref<1x32xf32, #tpu.memory_space<vmem>>, vector<1x32xf32>
    %8 = vector.shape_cast %7 : vector<1x32xf32> to vector<1x1x32xf32>
    %9 = vector.broadcast %8 : vector<1x1x32xf32> to vector<8x8x32xf32>
    %10 = arith.addf %6, %9 : vector<8x8x32xf32>
    %cst = arith.constant 2.000000e-01 : f32
    %11 = vector.broadcast %cst : f32 to vector<8x8x32xf32>
    %12 = arith.mulf %11, %10 : vector<8x8x32xf32>
    %13 = arith.maximumf %10, %12 : vector<8x8x32xf32>
    %14 = arith.truncf %13 : vector<8x8x32xf32> to vector<8x8x32xbf16>
    %c0_7 = arith.constant 0 : index
    %c0_8 = arith.constant 0 : index
    %c0_9 = arith.constant 0 : index
    %c0_10 = arith.constant 0 : index
    %15 = vector.load %arg5[%c0_7, %c0_8, %c0_9, %c0_10] : memref<1x8x8x32xbf16, #tpu.memory_space<vmem>>, vector<1x8x8x32xbf16>
    %16 = vector.shape_cast %15 : vector<1x8x8x32xbf16> to vector<8x8x32xbf16>
    %17 = vector.shape_cast %14 : vector<8x8x32xbf16> to vector<1x8x8x32xbf16>
    tpu.vector_store %arg5[%c0_7, %c0_8, %c0_9, %c0_10], %17 {strides = array<i32>} : memref<1x8x8x32xbf16, #tpu.memory_space<vmem>>, vector<1x8x8x32xbf16>,
    return
  }
  func.func @transform_0(%arg0: i32, %arg1: i32) -> (i32, i32, i32, i32) {
    %c0_i32 = arith.constant 0 : i32
    %c0_i32_0 = arith.constant 0 : i32
    %c0_i32_1 = arith.constant 0 : i32
    return %arg0, %arg1, %c0_i32, %c0_i32_0 : i32, i32, i32, i32
  }
  func.func @transform_1(%arg0: i32, %arg1: i32) -> (i32, i32) {
    %c0_i32 = arith.constant 0 : i32
    %c0_i32_0 = arith.constant 0 : i32
    %c0_i32_1 = arith.constant 0 : i32
    return %c0_i32, %c0_i32_0 : i32, i32
  }
  func.func @transform_2(%arg0: i32, %arg1: i32) -> (i32, i32) {
    %c0_i32 = arith.constant 0 : i32
    %c0_i32_0 = arith.constant 0 : i32
    %c0_i32_1 = arith.constant 0 : i32
    return %c0_i32, %c0_i32_0 : i32, i32
  }
  func.func @transform_3(%arg0: i32, %arg1: i32) -> (i32, i32, i32, i32) {
    %c0_i32 = arith.constant 0 : i32
    %c0_i32_0 = arith.constant 0 : i32
    %c0_i32_1 = arith.constant 0 : i32
    return %arg0, %arg1, %c0_i32, %c0_i32_0 : i32, i32, i32, i32
  }
}

module attributes {stable_mosaic.version = 11 : i64} {
  func.func @_conv_tap_kernel(%arg0: i32, %arg1: i32, %arg2: memref<4x9x9x16xbf16, #tpu.memory_space<vmem>>, %arg3: memref<16x16x32xbf16, #tpu.memory_space<vmem>>, %arg4: memref<1x8x8x32xbf16, #tpu.memory_space<vmem>>, %arg5: memref<1x32xf32, #tpu.memory_space<vmem>>, %arg6: memref<1x32xf32, #tpu.memory_space<vmem>>) attributes {dimension_semantics = [#tpu.dimension_semantics<arbitrary>, #tpu.dimension_semantics<arbitrary>], iteration_bounds = array<i64: 2, 1>, scalar_prefetch = 0 : i64, scratch_operands = 0 : i64, tpu.core_type = #tpu.core_type<tc>, window_params = [{transform_indices = @transform_0, window_bounds = array<i64: 4, 9, 9, 16>}, {pipeline_mode = #tpu.pipeline_mode<synchronous>, transform_indices = @transform_1, window_bounds = array<i64: 16, 16, 32>}, {transform_indices = @transform_2, window_bounds = array<i64: 1, 8, 8, 32>}, {pipeline_mode = #tpu.pipeline_mode<synchronous>, transform_indices = @transform_3, window_bounds = array<i64: 1, 32>}, {pipeline_mode = #tpu.pipeline_mode<synchronous>, transform_indices = @transform_4, window_bounds = array<i64: 1, 32>}]} {
    %c8_i32 = arith.constant 8 : i32
    %0 = arith.muli %arg1, %c8_i32 : i32
    %c0_i32 = arith.constant 0 : i32
    %1 = arith.cmpi eq, %arg0, %c0_i32 : i32
    %c0_i32_0 = arith.constant 0 : i32
    %2 = arith.cmpi eq, %arg1, %c0_i32_0 : i32
    %3 = arith.andi %1, %2 : i1
    %4 = arith.extui %3 : i1 to i32
    %c0_i32_1 = arith.constant 0 : i32
    %5 = arith.cmpi ne, %4, %c0_i32_1 : i32
    scf.if %5 {
      %cst = arith.constant 0.000000e+00 : f32
      %7 = vector.broadcast %cst : f32 to vector<1x32xf32>
      %c0 = arith.constant 0 : index
      %c0_5 = arith.constant 0 : index
      %8 = vector.load %arg5[%c0, %c0_5] : memref<1x32xf32, #tpu.memory_space<vmem>>, vector<1x32xf32>
      tpu.vector_store %arg5[%c0, %c0_5], %7 {strides = array<i32>} : memref<1x32xf32, #tpu.memory_space<vmem>>, vector<1x32xf32>,
      %cst_6 = arith.constant 0.000000e+00 : f32
      %9 = vector.broadcast %cst_6 : f32 to vector<1x32xf32>
      %c0_7 = arith.constant 0 : index
      %c0_8 = arith.constant 0 : index
      %10 = vector.load %arg6[%c0_7, %c0_8] : memref<1x32xf32, #tpu.memory_space<vmem>>, vector<1x32xf32>
      tpu.vector_store %arg6[%c0_7, %c0_8], %9 {strides = array<i32>} : memref<1x32xf32, #tpu.memory_space<vmem>>, vector<1x32xf32>,
    } else {
    }
    %c0_i32_2 = arith.constant 0 : i32
    %c8_i32_3 = arith.constant 8 : i32
    %6 = arith.addi %c0_i32_2, %c8_i32_3 : i32
    %c1_i32 = arith.constant 1 : i32
    scf.for %arg7 = %c0_i32_2 to %6 step %c1_i32  : i32 {
      %cst = arith.constant 0.000000e+00 : f32
      %7 = vector.broadcast %cst : f32 to vector<8x32xf32>
      %8 = arith.addi %0, %arg7 : i32
      %c0_i32_5 = arith.constant 0 : i32
      %9 = arith.addi %8, %c0_i32_5 : i32
      %c0 = arith.constant 0 : index
      %10 = arith.index_cast %9 : i32 to index
      %c0_6 = arith.constant 0 : index
      %c0_7 = arith.constant 0 : index
      %11 = vector.load %arg2[%c0, %10, %c0_6, %c0_7] : memref<4x9x9x16xbf16, #tpu.memory_space<vmem>>, vector<1x1x8x16xbf16>
      %12 = vector.shape_cast %11 : vector<1x1x8x16xbf16> to vector<8x16xbf16>
      %c0_8 = arith.constant 0 : index
      %c0_9 = arith.constant 0 : index
      %c0_10 = arith.constant 0 : index
      %13 = vector.load %arg3[%c0_8, %c0_9, %c0_10] : memref<16x16x32xbf16, #tpu.memory_space<vmem>>, vector<1x16x32xbf16>
      %14 = vector.shape_cast %13 : vector<1x16x32xbf16> to vector<16x32xbf16>
      %cst_11 = arith.constant dense<0.000000e+00> : vector<8x32xf32>
      %15 = tpu.matmul %12, %14, %cst_11 {dimension_numbers = #tpu.dot_dimension_numbers<[1], [0], [0], [1], [0, 0, 1, 1], [], []>} : vector<8x16xbf16>, vector<16x32xbf16>, vector<8x32xf32> -> vector<8x32xf32>
      %16 = arith.addf %7, %15 : vector<8x32xf32>
      %17 = arith.addi %0, %arg7 : i32
      %c0_i32_12 = arith.constant 0 : i32
      %18 = arith.addi %17, %c0_i32_12 : i32
      %c1 = arith.constant 1 : index
      %19 = arith.index_cast %18 : i32 to index
      %c0_13 = arith.constant 0 : index
      %c0_14 = arith.constant 0 : index
      %20 = vector.load %arg2[%c1, %19, %c0_13, %c0_14] : memref<4x9x9x16xbf16, #tpu.memory_space<vmem>>, vector<1x1x8x16xbf16>
      %21 = vector.shape_cast %20 : vector<1x1x8x16xbf16> to vector<8x16xbf16>
      %c1_15 = arith.constant 1 : index
      %c0_16 = arith.constant 0 : index
      %c0_17 = arith.constant 0 : index
      %22 = vector.load %arg3[%c1_15, %c0_16, %c0_17] : memref<16x16x32xbf16, #tpu.memory_space<vmem>>, vector<1x16x32xbf16>
      %23 = vector.shape_cast %22 : vector<1x16x32xbf16> to vector<16x32xbf16>
      %cst_18 = arith.constant dense<0.000000e+00> : vector<8x32xf32>
      %24 = tpu.matmul %21, %23, %cst_18 {dimension_numbers = #tpu.dot_dimension_numbers<[1], [0], [0], [1], [0, 0, 1, 1], [], []>} : vector<8x16xbf16>, vector<16x32xbf16>, vector<8x32xf32> -> vector<8x32xf32>
      %25 = arith.addf %16, %24 : vector<8x32xf32>
      %26 = arith.addi %0, %arg7 : i32
      %c0_i32_19 = arith.constant 0 : i32
      %27 = arith.addi %26, %c0_i32_19 : i32
      %c0_20 = arith.constant 0 : index
      %28 = arith.index_cast %27 : i32 to index
      %c1_21 = arith.constant 1 : index
      %c0_22 = arith.constant 0 : index
      %29 = vector.load %arg2[%c0_20, %28, %c1_21, %c0_22] : memref<4x9x9x16xbf16, #tpu.memory_space<vmem>>, vector<1x1x8x16xbf16>
      %30 = vector.shape_cast %29 : vector<1x1x8x16xbf16> to vector<8x16xbf16>
      %c2 = arith.constant 2 : index
      %c0_23 = arith.constant 0 : index
      %c0_24 = arith.constant 0 : index
      %31 = vector.load %arg3[%c2, %c0_23, %c0_24] : memref<16x16x32xbf16, #tpu.memory_space<vmem>>, vector<1x16x32xbf16>
      %32 = vector.shape_cast %31 : vector<1x16x32xbf16> to vector<16x32xbf16>
      %cst_25 = arith.constant dense<0.000000e+00> : vector<8x32xf32>
      %33 = tpu.matmul %30, %32, %cst_25 {dimension_numbers = #tpu.dot_dimension_numbers<[1], [0], [0], [1], [0, 0, 1, 1], [], []>} : vector<8x16xbf16>, vector<16x32xbf16>, vector<8x32xf32> -> vector<8x32xf32>
      %34 = arith.addf %25, %33 : vector<8x32xf32>
      %35 = arith.addi %0, %arg7 : i32
      %c0_i32_26 = arith.constant 0 : i32
      %36 = arith.addi %35, %c0_i32_26 : i32
      %c1_27 = arith.constant 1 : index
      %37 = arith.index_cast %36 : i32 to index
      %c1_28 = arith.constant 1 : index
      %c0_29 = arith.constant 0 : index
      %38 = vector.load %arg2[%c1_27, %37, %c1_28, %c0_29] : memref<4x9x9x16xbf16, #tpu.memory_space<vmem>>, vector<1x1x8x16xbf16>
      %39 = vector.shape_cast %38 : vector<1x1x8x16xbf16> to vector<8x16xbf16>
      %c3 = arith.constant 3 : index
      %c0_30 = arith.constant 0 : index
      %c0_31 = arith.constant 0 : index
      %40 = vector.load %arg3[%c3, %c0_30, %c0_31] : memref<16x16x32xbf16, #tpu.memory_space<vmem>>, vector<1x16x32xbf16>
      %41 = vector.shape_cast %40 : vector<1x16x32xbf16> to vector<16x32xbf16>
      %cst_32 = arith.constant dense<0.000000e+00> : vector<8x32xf32>
      %42 = tpu.matmul %39, %41, %cst_32 {dimension_numbers = #tpu.dot_dimension_numbers<[1], [0], [0], [1], [0, 0, 1, 1], [], []>} : vector<8x16xbf16>, vector<16x32xbf16>, vector<8x32xf32> -> vector<8x32xf32>
      %43 = arith.addf %34, %42 : vector<8x32xf32>
      %44 = arith.addi %0, %arg7 : i32
      %c0_i32_33 = arith.constant 0 : i32
      %45 = arith.addi %44, %c0_i32_33 : i32
      %c2_34 = arith.constant 2 : index
      %46 = arith.index_cast %45 : i32 to index
      %c0_35 = arith.constant 0 : index
      %c0_36 = arith.constant 0 : index
      %47 = vector.load %arg2[%c2_34, %46, %c0_35, %c0_36] : memref<4x9x9x16xbf16, #tpu.memory_space<vmem>>, vector<1x1x8x16xbf16>
      %48 = vector.shape_cast %47 : vector<1x1x8x16xbf16> to vector<8x16xbf16>
      %c4 = arith.constant 4 : index
      %c0_37 = arith.constant 0 : index
      %c0_38 = arith.constant 0 : index
      %49 = vector.load %arg3[%c4, %c0_37, %c0_38] : memref<16x16x32xbf16, #tpu.memory_space<vmem>>, vector<1x16x32xbf16>
      %50 = vector.shape_cast %49 : vector<1x16x32xbf16> to vector<16x32xbf16>
      %cst_39 = arith.constant dense<0.000000e+00> : vector<8x32xf32>
      %51 = tpu.matmul %48, %50, %cst_39 {dimension_numbers = #tpu.dot_dimension_numbers<[1], [0], [0], [1], [0, 0, 1, 1], [], []>} : vector<8x16xbf16>, vector<16x32xbf16>, vector<8x32xf32> -> vector<8x32xf32>
      %52 = arith.addf %43, %51 : vector<8x32xf32>
      %53 = arith.addi %0, %arg7 : i32
      %c0_i32_40 = arith.constant 0 : i32
      %54 = arith.addi %53, %c0_i32_40 : i32
      %c3_41 = arith.constant 3 : index
      %55 = arith.index_cast %54 : i32 to index
      %c0_42 = arith.constant 0 : index
      %c0_43 = arith.constant 0 : index
      %56 = vector.load %arg2[%c3_41, %55, %c0_42, %c0_43] : memref<4x9x9x16xbf16, #tpu.memory_space<vmem>>, vector<1x1x8x16xbf16>
      %57 = vector.shape_cast %56 : vector<1x1x8x16xbf16> to vector<8x16xbf16>
      %c5 = arith.constant 5 : index
      %c0_44 = arith.constant 0 : index
      %c0_45 = arith.constant 0 : index
      %58 = vector.load %arg3[%c5, %c0_44, %c0_45] : memref<16x16x32xbf16, #tpu.memory_space<vmem>>, vector<1x16x32xbf16>
      %59 = vector.shape_cast %58 : vector<1x16x32xbf16> to vector<16x32xbf16>
      %cst_46 = arith.constant dense<0.000000e+00> : vector<8x32xf32>
      %60 = tpu.matmul %57, %59, %cst_46 {dimension_numbers = #tpu.dot_dimension_numbers<[1], [0], [0], [1], [0, 0, 1, 1], [], []>} : vector<8x16xbf16>, vector<16x32xbf16>, vector<8x32xf32> -> vector<8x32xf32>
      %61 = arith.addf %52, %60 : vector<8x32xf32>
      %62 = arith.addi %0, %arg7 : i32
      %c0_i32_47 = arith.constant 0 : i32
      %63 = arith.addi %62, %c0_i32_47 : i32
      %c2_48 = arith.constant 2 : index
      %64 = arith.index_cast %63 : i32 to index
      %c1_49 = arith.constant 1 : index
      %c0_50 = arith.constant 0 : index
      %65 = vector.load %arg2[%c2_48, %64, %c1_49, %c0_50] : memref<4x9x9x16xbf16, #tpu.memory_space<vmem>>, vector<1x1x8x16xbf16>
      %66 = vector.shape_cast %65 : vector<1x1x8x16xbf16> to vector<8x16xbf16>
      %c6 = arith.constant 6 : index
      %c0_51 = arith.constant 0 : index
      %c0_52 = arith.constant 0 : index
      %67 = vector.load %arg3[%c6, %c0_51, %c0_52] : memref<16x16x32xbf16, #tpu.memory_space<vmem>>, vector<1x16x32xbf16>
      %68 = vector.shape_cast %67 : vector<1x16x32xbf16> to vector<16x32xbf16>
      %cst_53 = arith.constant dense<0.000000e+00> : vector<8x32xf32>
      %69 = tpu.matmul %66, %68, %cst_53 {dimension_numbers = #tpu.dot_dimension_numbers<[1], [0], [0], [1], [0, 0, 1, 1], [], []>} : vector<8x16xbf16>, vector<16x32xbf16>, vector<8x32xf32> -> vector<8x32xf32>
      %70 = arith.addf %61, %69 : vector<8x32xf32>
      %71 = arith.addi %0, %arg7 : i32
      %c0_i32_54 = arith.constant 0 : i32
      %72 = arith.addi %71, %c0_i32_54 : i32
      %c3_55 = arith.constant 3 : index
      %73 = arith.index_cast %72 : i32 to index
      %c1_56 = arith.constant 1 : index
      %c0_57 = arith.constant 0 : index
      %74 = vector.load %arg2[%c3_55, %73, %c1_56, %c0_57] : memref<4x9x9x16xbf16, #tpu.memory_space<vmem>>, vector<1x1x8x16xbf16>
      %75 = vector.shape_cast %74 : vector<1x1x8x16xbf16> to vector<8x16xbf16>
      %c7 = arith.constant 7 : index
      %c0_58 = arith.constant 0 : index
      %c0_59 = arith.constant 0 : index
      %76 = vector.load %arg3[%c7, %c0_58, %c0_59] : memref<16x16x32xbf16, #tpu.memory_space<vmem>>, vector<1x16x32xbf16>
      %77 = vector.shape_cast %76 : vector<1x16x32xbf16> to vector<16x32xbf16>
      %cst_60 = arith.constant dense<0.000000e+00> : vector<8x32xf32>
      %78 = tpu.matmul %75, %77, %cst_60 {dimension_numbers = #tpu.dot_dimension_numbers<[1], [0], [0], [1], [0, 0, 1, 1], [], []>} : vector<8x16xbf16>, vector<16x32xbf16>, vector<8x32xf32> -> vector<8x32xf32>
      %79 = arith.addf %70, %78 : vector<8x32xf32>
      %80 = arith.addi %0, %arg7 : i32
      %c1_i32_61 = arith.constant 1 : i32
      %81 = arith.addi %80, %c1_i32_61 : i32
      %c0_62 = arith.constant 0 : index
      %82 = arith.index_cast %81 : i32 to index
      %c0_63 = arith.constant 0 : index
      %c0_64 = arith.constant 0 : index
      %83 = vector.load %arg2[%c0_62, %82, %c0_63, %c0_64] : memref<4x9x9x16xbf16, #tpu.memory_space<vmem>>, vector<1x1x8x16xbf16>
      %84 = vector.shape_cast %83 : vector<1x1x8x16xbf16> to vector<8x16xbf16>
      %c8 = arith.constant 8 : index
      %c0_65 = arith.constant 0 : index
      %c0_66 = arith.constant 0 : index
      %85 = vector.load %arg3[%c8, %c0_65, %c0_66] : memref<16x16x32xbf16, #tpu.memory_space<vmem>>, vector<1x16x32xbf16>
      %86 = vector.shape_cast %85 : vector<1x16x32xbf16> to vector<16x32xbf16>
      %cst_67 = arith.constant dense<0.000000e+00> : vector<8x32xf32>
      %87 = tpu.matmul %84, %86, %cst_67 {dimension_numbers = #tpu.dot_dimension_numbers<[1], [0], [0], [1], [0, 0, 1, 1], [], []>} : vector<8x16xbf16>, vector<16x32xbf16>, vector<8x32xf32> -> vector<8x32xf32>
      %88 = arith.addf %79, %87 : vector<8x32xf32>
      %89 = arith.addi %0, %arg7 : i32
      %c1_i32_68 = arith.constant 1 : i32
      %90 = arith.addi %89, %c1_i32_68 : i32
      %c1_69 = arith.constant 1 : index
      %91 = arith.index_cast %90 : i32 to index
      %c0_70 = arith.constant 0 : index
      %c0_71 = arith.constant 0 : index
      %92 = vector.load %arg2[%c1_69, %91, %c0_70, %c0_71] : memref<4x9x9x16xbf16, #tpu.memory_space<vmem>>, vector<1x1x8x16xbf16>
      %93 = vector.shape_cast %92 : vector<1x1x8x16xbf16> to vector<8x16xbf16>
      %c9 = arith.constant 9 : index
      %c0_72 = arith.constant 0 : index
      %c0_73 = arith.constant 0 : index
      %94 = vector.load %arg3[%c9, %c0_72, %c0_73] : memref<16x16x32xbf16, #tpu.memory_space<vmem>>, vector<1x16x32xbf16>
      %95 = vector.shape_cast %94 : vector<1x16x32xbf16> to vector<16x32xbf16>
      %cst_74 = arith.constant dense<0.000000e+00> : vector<8x32xf32>
      %96 = tpu.matmul %93, %95, %cst_74 {dimension_numbers = #tpu.dot_dimension_numbers<[1], [0], [0], [1], [0, 0, 1, 1], [], []>} : vector<8x16xbf16>, vector<16x32xbf16>, vector<8x32xf32> -> vector<8x32xf32>
      %97 = arith.addf %88, %96 : vector<8x32xf32>
      %98 = arith.addi %0, %arg7 : i32
      %c1_i32_75 = arith.constant 1 : i32
      %99 = arith.addi %98, %c1_i32_75 : i32
      %c0_76 = arith.constant 0 : index
      %100 = arith.index_cast %99 : i32 to index
      %c1_77 = arith.constant 1 : index
      %c0_78 = arith.constant 0 : index
      %101 = vector.load %arg2[%c0_76, %100, %c1_77, %c0_78] : memref<4x9x9x16xbf16, #tpu.memory_space<vmem>>, vector<1x1x8x16xbf16>
      %102 = vector.shape_cast %101 : vector<1x1x8x16xbf16> to vector<8x16xbf16>
      %c10 = arith.constant 10 : index
      %c0_79 = arith.constant 0 : index
      %c0_80 = arith.constant 0 : index
      %103 = vector.load %arg3[%c10, %c0_79, %c0_80] : memref<16x16x32xbf16, #tpu.memory_space<vmem>>, vector<1x16x32xbf16>
      %104 = vector.shape_cast %103 : vector<1x16x32xbf16> to vector<16x32xbf16>
      %cst_81 = arith.constant dense<0.000000e+00> : vector<8x32xf32>
      %105 = tpu.matmul %102, %104, %cst_81 {dimension_numbers = #tpu.dot_dimension_numbers<[1], [0], [0], [1], [0, 0, 1, 1], [], []>} : vector<8x16xbf16>, vector<16x32xbf16>, vector<8x32xf32> -> vector<8x32xf32>
      %106 = arith.addf %97, %105 : vector<8x32xf32>
      %107 = arith.addi %0, %arg7 : i32
      %c1_i32_82 = arith.constant 1 : i32
      %108 = arith.addi %107, %c1_i32_82 : i32
      %c1_83 = arith.constant 1 : index
      %109 = arith.index_cast %108 : i32 to index
      %c1_84 = arith.constant 1 : index
      %c0_85 = arith.constant 0 : index
      %110 = vector.load %arg2[%c1_83, %109, %c1_84, %c0_85] : memref<4x9x9x16xbf16, #tpu.memory_space<vmem>>, vector<1x1x8x16xbf16>
      %111 = vector.shape_cast %110 : vector<1x1x8x16xbf16> to vector<8x16xbf16>
      %c11 = arith.constant 11 : index
      %c0_86 = arith.constant 0 : index
      %c0_87 = arith.constant 0 : index
      %112 = vector.load %arg3[%c11, %c0_86, %c0_87] : memref<16x16x32xbf16, #tpu.memory_space<vmem>>, vector<1x16x32xbf16>
      %113 = vector.shape_cast %112 : vector<1x16x32xbf16> to vector<16x32xbf16>
      %cst_88 = arith.constant dense<0.000000e+00> : vector<8x32xf32>
      %114 = tpu.matmul %111, %113, %cst_88 {dimension_numbers = #tpu.dot_dimension_numbers<[1], [0], [0], [1], [0, 0, 1, 1], [], []>} : vector<8x16xbf16>, vector<16x32xbf16>, vector<8x32xf32> -> vector<8x32xf32>
      %115 = arith.addf %106, %114 : vector<8x32xf32>
      %116 = arith.addi %0, %arg7 : i32
      %c1_i32_89 = arith.constant 1 : i32
      %117 = arith.addi %116, %c1_i32_89 : i32
      %c2_90 = arith.constant 2 : index
      %118 = arith.index_cast %117 : i32 to index
      %c0_91 = arith.constant 0 : index
      %c0_92 = arith.constant 0 : index
      %119 = vector.load %arg2[%c2_90, %118, %c0_91, %c0_92] : memref<4x9x9x16xbf16, #tpu.memory_space<vmem>>, vector<1x1x8x16xbf16>
      %120 = vector.shape_cast %119 : vector<1x1x8x16xbf16> to vector<8x16xbf16>
      %c12 = arith.constant 12 : index
      %c0_93 = arith.constant 0 : index
      %c0_94 = arith.constant 0 : index
      %121 = vector.load %arg3[%c12, %c0_93, %c0_94] : memref<16x16x32xbf16, #tpu.memory_space<vmem>>, vector<1x16x32xbf16>
      %122 = vector.shape_cast %121 : vector<1x16x32xbf16> to vector<16x32xbf16>
      %cst_95 = arith.constant dense<0.000000e+00> : vector<8x32xf32>
      %123 = tpu.matmul %120, %122, %cst_95 {dimension_numbers = #tpu.dot_dimension_numbers<[1], [0], [0], [1], [0, 0, 1, 1], [], []>} : vector<8x16xbf16>, vector<16x32xbf16>, vector<8x32xf32> -> vector<8x32xf32>
      %124 = arith.addf %115, %123 : vector<8x32xf32>
      %125 = arith.addi %0, %arg7 : i32
      %c1_i32_96 = arith.constant 1 : i32
      %126 = arith.addi %125, %c1_i32_96 : i32
      %c3_97 = arith.constant 3 : index
      %127 = arith.index_cast %126 : i32 to index
      %c0_98 = arith.constant 0 : index
      %c0_99 = arith.constant 0 : index
      %128 = vector.load %arg2[%c3_97, %127, %c0_98, %c0_99] : memref<4x9x9x16xbf16, #tpu.memory_space<vmem>>, vector<1x1x8x16xbf16>
      %129 = vector.shape_cast %128 : vector<1x1x8x16xbf16> to vector<8x16xbf16>
      %c13 = arith.constant 13 : index
      %c0_100 = arith.constant 0 : index
      %c0_101 = arith.constant 0 : index
      %130 = vector.load %arg3[%c13, %c0_100, %c0_101] : memref<16x16x32xbf16, #tpu.memory_space<vmem>>, vector<1x16x32xbf16>
      %131 = vector.shape_cast %130 : vector<1x16x32xbf16> to vector<16x32xbf16>
      %cst_102 = arith.constant dense<0.000000e+00> : vector<8x32xf32>
      %132 = tpu.matmul %129, %131, %cst_102 {dimension_numbers = #tpu.dot_dimension_numbers<[1], [0], [0], [1], [0, 0, 1, 1], [], []>} : vector<8x16xbf16>, vector<16x32xbf16>, vector<8x32xf32> -> vector<8x32xf32>
      %133 = arith.addf %124, %132 : vector<8x32xf32>
      %134 = arith.addi %0, %arg7 : i32
      %c1_i32_103 = arith.constant 1 : i32
      %135 = arith.addi %134, %c1_i32_103 : i32
      %c2_104 = arith.constant 2 : index
      %136 = arith.index_cast %135 : i32 to index
      %c1_105 = arith.constant 1 : index
      %c0_106 = arith.constant 0 : index
      %137 = vector.load %arg2[%c2_104, %136, %c1_105, %c0_106] : memref<4x9x9x16xbf16, #tpu.memory_space<vmem>>, vector<1x1x8x16xbf16>
      %138 = vector.shape_cast %137 : vector<1x1x8x16xbf16> to vector<8x16xbf16>
      %c14 = arith.constant 14 : index
      %c0_107 = arith.constant 0 : index
      %c0_108 = arith.constant 0 : index
      %139 = vector.load %arg3[%c14, %c0_107, %c0_108] : memref<16x16x32xbf16, #tpu.memory_space<vmem>>, vector<1x16x32xbf16>
      %140 = vector.shape_cast %139 : vector<1x16x32xbf16> to vector<16x32xbf16>
      %cst_109 = arith.constant dense<0.000000e+00> : vector<8x32xf32>
      %141 = tpu.matmul %138, %140, %cst_109 {dimension_numbers = #tpu.dot_dimension_numbers<[1], [0], [0], [1], [0, 0, 1, 1], [], []>} : vector<8x16xbf16>, vector<16x32xbf16>, vector<8x32xf32> -> vector<8x32xf32>
      %142 = arith.addf %133, %141 : vector<8x32xf32>
      %143 = arith.addi %0, %arg7 : i32
      %c1_i32_110 = arith.constant 1 : i32
      %144 = arith.addi %143, %c1_i32_110 : i32
      %c3_111 = arith.constant 3 : index
      %145 = arith.index_cast %144 : i32 to index
      %c1_112 = arith.constant 1 : index
      %c0_113 = arith.constant 0 : index
      %146 = vector.load %arg2[%c3_111, %145, %c1_112, %c0_113] : memref<4x9x9x16xbf16, #tpu.memory_space<vmem>>, vector<1x1x8x16xbf16>
      %147 = vector.shape_cast %146 : vector<1x1x8x16xbf16> to vector<8x16xbf16>
      %c15 = arith.constant 15 : index
      %c0_114 = arith.constant 0 : index
      %c0_115 = arith.constant 0 : index
      %148 = vector.load %arg3[%c15, %c0_114, %c0_115] : memref<16x16x32xbf16, #tpu.memory_space<vmem>>, vector<1x16x32xbf16>
      %149 = vector.shape_cast %148 : vector<1x16x32xbf16> to vector<16x32xbf16>
      %cst_116 = arith.constant dense<0.000000e+00> : vector<8x32xf32>
      %150 = tpu.matmul %147, %149, %cst_116 {dimension_numbers = #tpu.dot_dimension_numbers<[1], [0], [0], [1], [0, 0, 1, 1], [], []>} : vector<8x16xbf16>, vector<16x32xbf16>, vector<8x32xf32> -> vector<8x32xf32>
      %151 = arith.addf %142, %150 : vector<8x32xf32>
      %152 = arith.truncf %151 : vector<8x32xf32> to vector<8x32xbf16>
      %c0_117 = arith.constant 0 : index
      %153 = arith.index_cast %arg7 : i32 to index
      %c0_118 = arith.constant 0 : index
      %c0_119 = arith.constant 0 : index
      %154 = vector.load %arg4[%c0_117, %153, %c0_118, %c0_119] : memref<1x8x8x32xbf16, #tpu.memory_space<vmem>>, vector<1x1x8x32xbf16>
      %155 = vector.shape_cast %154 : vector<1x1x8x32xbf16> to vector<8x32xbf16>
      %156 = vector.shape_cast %152 : vector<8x32xbf16> to vector<1x1x8x32xbf16>
      tpu.vector_store %arg4[%c0_117, %153, %c0_118, %c0_119], %156 {strides = array<i32>} : memref<1x8x8x32xbf16, #tpu.memory_space<vmem>>, vector<1x1x8x32xbf16>,
      %c0_120 = arith.constant 0 : index
      %c0_121 = arith.constant 0 : index
      %157 = vector.load %arg5[%c0_120, %c0_121] : memref<1x32xf32, #tpu.memory_space<vmem>>, vector<1x32xf32>
      %cst_122 = arith.constant dense<0.000000e+00> : vector<32xf32>
      %158 = vector.multi_reduction <add>, %151, %cst_122 [0] : vector<8x32xf32> to vector<32xf32>
      %159 = vector.shape_cast %158 : vector<32xf32> to vector<1x32xf32>
      %160 = arith.addf %157, %159 : vector<1x32xf32>
      %c0_123 = arith.constant 0 : index
      %c0_124 = arith.constant 0 : index
      %161 = vector.load %arg5[%c0_123, %c0_124] : memref<1x32xf32, #tpu.memory_space<vmem>>, vector<1x32xf32>
      tpu.vector_store %arg5[%c0_123, %c0_124], %160 {strides = array<i32>} : memref<1x32xf32, #tpu.memory_space<vmem>>, vector<1x32xf32>,
      %c0_125 = arith.constant 0 : index
      %c0_126 = arith.constant 0 : index
      %162 = vector.load %arg6[%c0_125, %c0_126] : memref<1x32xf32, #tpu.memory_space<vmem>>, vector<1x32xf32>
      %163 = arith.mulf %151, %151 : vector<8x32xf32>
      %cst_127 = arith.constant dense<0.000000e+00> : vector<32xf32>
      %164 = vector.multi_reduction <add>, %163, %cst_127 [0] : vector<8x32xf32> to vector<32xf32>
      %165 = vector.shape_cast %164 : vector<32xf32> to vector<1x32xf32>
      %166 = arith.addf %162, %165 : vector<1x32xf32>
      %c0_128 = arith.constant 0 : index
      %c0_129 = arith.constant 0 : index
      %167 = vector.load %arg6[%c0_128, %c0_129] : memref<1x32xf32, #tpu.memory_space<vmem>>, vector<1x32xf32>
      tpu.vector_store %arg6[%c0_128, %c0_129], %166 {strides = array<i32>} : memref<1x32xf32, #tpu.memory_space<vmem>>, vector<1x32xf32>,
    }
    %c8_i32_4 = arith.constant 8 : i32
    return
  }
  func.func @transform_0(%arg0: i32, %arg1: i32) -> (i32, i32, i32, i32) {
    %c0_i32 = arith.constant 0 : i32
    %c0_i32_0 = arith.constant 0 : i32
    %c0_i32_1 = arith.constant 0 : i32
    %c0_i32_2 = arith.constant 0 : i32
    return %arg0, %c0_i32, %c0_i32_0, %c0_i32_1 : i32, i32, i32, i32
  }
  func.func @transform_1(%arg0: i32, %arg1: i32) -> (i32, i32, i32) {
    %c0_i32 = arith.constant 0 : i32
    %c0_i32_0 = arith.constant 0 : i32
    %c0_i32_1 = arith.constant 0 : i32
    %c0_i32_2 = arith.constant 0 : i32
    return %c0_i32, %c0_i32_0, %c0_i32_1 : i32, i32, i32
  }
  func.func @transform_2(%arg0: i32, %arg1: i32) -> (i32, i32, i32, i32) {
    %c0_i32 = arith.constant 0 : i32
    %c0_i32_0 = arith.constant 0 : i32
    %c0_i32_1 = arith.constant 0 : i32
    return %arg0, %arg1, %c0_i32, %c0_i32_0 : i32, i32, i32, i32
  }
  func.func @transform_3(%arg0: i32, %arg1: i32) -> (i32, i32) {
    %c0_i32 = arith.constant 0 : i32
    %c0_i32_0 = arith.constant 0 : i32
    %c0_i32_1 = arith.constant 0 : i32
    return %c0_i32, %c0_i32_0 : i32, i32
  }
  func.func @transform_4(%arg0: i32, %arg1: i32) -> (i32, i32) {
    %c0_i32 = arith.constant 0 : i32
    %c0_i32_0 = arith.constant 0 : i32
    %c0_i32_1 = arith.constant 0 : i32
    return %c0_i32, %c0_i32_0 : i32, i32
  }
}

module attributes {stable_mosaic.version = 11 : i64} {
  func.func @_bn_act_kernel(%arg0: i32, %arg1: i32, %arg2: memref<1x4x4x64xbf16, #tpu.memory_space<vmem>>, %arg3: memref<1x64xf32, #tpu.memory_space<vmem>>, %arg4: memref<1x64xf32, #tpu.memory_space<vmem>>, %arg5: memref<1x4x4x64xbf16, #tpu.memory_space<vmem>>) attributes {dimension_semantics = [#tpu.dimension_semantics<parallel>, #tpu.dimension_semantics<parallel>], iteration_bounds = array<i64: 2, 1>, scalar_prefetch = 0 : i64, scratch_operands = 0 : i64, tpu.core_type = #tpu.core_type<tc>, window_params = [{transform_indices = @transform_0, window_bounds = array<i64: 1, 4, 4, 64>}, {pipeline_mode = #tpu.pipeline_mode<synchronous>, transform_indices = @transform_1, window_bounds = array<i64: 1, 64>}, {pipeline_mode = #tpu.pipeline_mode<synchronous>, transform_indices = @transform_2, window_bounds = array<i64: 1, 64>}, {transform_indices = @transform_3, window_bounds = array<i64: 1, 4, 4, 64>}]} {
    %c0 = arith.constant 0 : index
    %c0_0 = arith.constant 0 : index
    %c0_1 = arith.constant 0 : index
    %c0_2 = arith.constant 0 : index
    %0 = vector.load %arg2[%c0, %c0_0, %c0_1, %c0_2] : memref<1x4x4x64xbf16, #tpu.memory_space<vmem>>, vector<1x4x4x64xbf16>
    %1 = vector.shape_cast %0 : vector<1x4x4x64xbf16> to vector<4x4x64xbf16>
    %2 = arith.extf %1 : vector<4x4x64xbf16> to vector<4x4x64xf32>
    %c0_3 = arith.constant 0 : index
    %c0_4 = arith.constant 0 : index
    %3 = vector.load %arg3[%c0_3, %c0_4] : memref<1x64xf32, #tpu.memory_space<vmem>>, vector<1x64xf32>
    %4 = vector.shape_cast %3 : vector<1x64xf32> to vector<1x1x64xf32>
    %5 = vector.broadcast %4 : vector<1x1x64xf32> to vector<4x4x64xf32>
    %6 = arith.mulf %2, %5 : vector<4x4x64xf32>
    %c0_5 = arith.constant 0 : index
    %c0_6 = arith.constant 0 : index
    %7 = vector.load %arg4[%c0_5, %c0_6] : memref<1x64xf32, #tpu.memory_space<vmem>>, vector<1x64xf32>
    %8 = vector.shape_cast %7 : vector<1x64xf32> to vector<1x1x64xf32>
    %9 = vector.broadcast %8 : vector<1x1x64xf32> to vector<4x4x64xf32>
    %10 = arith.addf %6, %9 : vector<4x4x64xf32>
    %cst = arith.constant 2.000000e-01 : f32
    %11 = vector.broadcast %cst : f32 to vector<4x4x64xf32>
    %12 = arith.mulf %11, %10 : vector<4x4x64xf32>
    %13 = arith.maximumf %10, %12 : vector<4x4x64xf32>
    %14 = arith.truncf %13 : vector<4x4x64xf32> to vector<4x4x64xbf16>
    %c0_7 = arith.constant 0 : index
    %c0_8 = arith.constant 0 : index
    %c0_9 = arith.constant 0 : index
    %c0_10 = arith.constant 0 : index
    %15 = vector.load %arg5[%c0_7, %c0_8, %c0_9, %c0_10] : memref<1x4x4x64xbf16, #tpu.memory_space<vmem>>, vector<1x4x4x64xbf16>
    %16 = vector.shape_cast %15 : vector<1x4x4x64xbf16> to vector<4x4x64xbf16>
    %17 = vector.shape_cast %14 : vector<4x4x64xbf16> to vector<1x4x4x64xbf16>
    tpu.vector_store %arg5[%c0_7, %c0_8, %c0_9, %c0_10], %17 {strides = array<i32>} : memref<1x4x4x64xbf16, #tpu.memory_space<vmem>>, vector<1x4x4x64xbf16>,
    return
  }
  func.func @transform_0(%arg0: i32, %arg1: i32) -> (i32, i32, i32, i32) {
    %c0_i32 = arith.constant 0 : i32
    %c0_i32_0 = arith.constant 0 : i32
    %c0_i32_1 = arith.constant 0 : i32
    return %arg0, %arg1, %c0_i32, %c0_i32_0 : i32, i32, i32, i32
  }
  func.func @transform_1(%arg0: i32, %arg1: i32) -> (i32, i32) {
    %c0_i32 = arith.constant 0 : i32
    %c0_i32_0 = arith.constant 0 : i32
    %c0_i32_1 = arith.constant 0 : i32
    return %c0_i32, %c0_i32_0 : i32, i32
  }
  func.func @transform_2(%arg0: i32, %arg1: i32) -> (i32, i32) {
    %c0_i32 = arith.constant 0 : i32
    %c0_i32_0 = arith.constant 0 : i32
    %c0_i32_1 = arith.constant 0 : i32
    return %c0_i32, %c0_i32_0 : i32, i32
  }
  func.func @transform_3(%arg0: i32, %arg1: i32) -> (i32, i32, i32, i32) {
    %c0_i32 = arith.constant 0 : i32
    %c0_i32_0 = arith.constant 0 : i32
    %c0_i32_1 = arith.constant 0 : i32
    return %arg0, %arg1, %c0_i32, %c0_i32_0 : i32, i32, i32, i32
  }
}

module attributes {stable_mosaic.version = 11 : i64} {
  func.func @_conv_tap_kernel(%arg0: i32, %arg1: i32, %arg2: memref<4x5x5x32xbf16, #tpu.memory_space<vmem>>, %arg3: memref<16x32x64xbf16, #tpu.memory_space<vmem>>, %arg4: memref<1x4x4x64xbf16, #tpu.memory_space<vmem>>, %arg5: memref<1x64xf32, #tpu.memory_space<vmem>>, %arg6: memref<1x64xf32, #tpu.memory_space<vmem>>) attributes {dimension_semantics = [#tpu.dimension_semantics<arbitrary>, #tpu.dimension_semantics<arbitrary>], iteration_bounds = array<i64: 2, 1>, scalar_prefetch = 0 : i64, scratch_operands = 0 : i64, tpu.core_type = #tpu.core_type<tc>, window_params = [{transform_indices = @transform_0, window_bounds = array<i64: 4, 5, 5, 32>}, {pipeline_mode = #tpu.pipeline_mode<synchronous>, transform_indices = @transform_1, window_bounds = array<i64: 16, 32, 64>}, {transform_indices = @transform_2, window_bounds = array<i64: 1, 4, 4, 64>}, {pipeline_mode = #tpu.pipeline_mode<synchronous>, transform_indices = @transform_3, window_bounds = array<i64: 1, 64>}, {pipeline_mode = #tpu.pipeline_mode<synchronous>, transform_indices = @transform_4, window_bounds = array<i64: 1, 64>}]} {
    %c4_i32 = arith.constant 4 : i32
    %0 = arith.muli %arg1, %c4_i32 : i32
    %c0_i32 = arith.constant 0 : i32
    %1 = arith.cmpi eq, %arg0, %c0_i32 : i32
    %c0_i32_0 = arith.constant 0 : i32
    %2 = arith.cmpi eq, %arg1, %c0_i32_0 : i32
    %3 = arith.andi %1, %2 : i1
    %4 = arith.extui %3 : i1 to i32
    %c0_i32_1 = arith.constant 0 : i32
    %5 = arith.cmpi ne, %4, %c0_i32_1 : i32
    scf.if %5 {
      %cst = arith.constant 0.000000e+00 : f32
      %7 = vector.broadcast %cst : f32 to vector<1x64xf32>
      %c0 = arith.constant 0 : index
      %c0_5 = arith.constant 0 : index
      %8 = vector.load %arg5[%c0, %c0_5] : memref<1x64xf32, #tpu.memory_space<vmem>>, vector<1x64xf32>
      tpu.vector_store %arg5[%c0, %c0_5], %7 {strides = array<i32>} : memref<1x64xf32, #tpu.memory_space<vmem>>, vector<1x64xf32>,
      %cst_6 = arith.constant 0.000000e+00 : f32
      %9 = vector.broadcast %cst_6 : f32 to vector<1x64xf32>
      %c0_7 = arith.constant 0 : index
      %c0_8 = arith.constant 0 : index
      %10 = vector.load %arg6[%c0_7, %c0_8] : memref<1x64xf32, #tpu.memory_space<vmem>>, vector<1x64xf32>
      tpu.vector_store %arg6[%c0_7, %c0_8], %9 {strides = array<i32>} : memref<1x64xf32, #tpu.memory_space<vmem>>, vector<1x64xf32>,
    } else {
    }
    %c0_i32_2 = arith.constant 0 : i32
    %c4_i32_3 = arith.constant 4 : i32
    %6 = arith.addi %c0_i32_2, %c4_i32_3 : i32
    %c1_i32 = arith.constant 1 : i32
    scf.for %arg7 = %c0_i32_2 to %6 step %c1_i32  : i32 {
      %cst = arith.constant 0.000000e+00 : f32
      %7 = vector.broadcast %cst : f32 to vector<4x64xf32>
      %8 = arith.addi %0, %arg7 : i32
      %c0_i32_5 = arith.constant 0 : i32
      %9 = arith.addi %8, %c0_i32_5 : i32
      %c0 = arith.constant 0 : index
      %10 = arith.index_cast %9 : i32 to index
      %c0_6 = arith.constant 0 : index
      %c0_7 = arith.constant 0 : index
      %11 = vector.load %arg2[%c0, %10, %c0_6, %c0_7] : memref<4x5x5x32xbf16, #tpu.memory_space<vmem>>, vector<1x1x4x32xbf16>
      %12 = vector.shape_cast %11 : vector<1x1x4x32xbf16> to vector<4x32xbf16>
      %c0_8 = arith.constant 0 : index
      %c0_9 = arith.constant 0 : index
      %c0_10 = arith.constant 0 : index
      %13 = vector.load %arg3[%c0_8, %c0_9, %c0_10] : memref<16x32x64xbf16, #tpu.memory_space<vmem>>, vector<1x32x64xbf16>
      %14 = vector.shape_cast %13 : vector<1x32x64xbf16> to vector<32x64xbf16>
      %cst_11 = arith.constant dense<0.000000e+00> : vector<4x64xf32>
      %15 = tpu.matmul %12, %14, %cst_11 {dimension_numbers = #tpu.dot_dimension_numbers<[1], [0], [0], [1], [0, 0, 1, 1], [], []>} : vector<4x32xbf16>, vector<32x64xbf16>, vector<4x64xf32> -> vector<4x64xf32>
      %16 = arith.addf %7, %15 : vector<4x64xf32>
      %17 = arith.addi %0, %arg7 : i32
      %c0_i32_12 = arith.constant 0 : i32
      %18 = arith.addi %17, %c0_i32_12 : i32
      %c1 = arith.constant 1 : index
      %19 = arith.index_cast %18 : i32 to index
      %c0_13 = arith.constant 0 : index
      %c0_14 = arith.constant 0 : index
      %20 = vector.load %arg2[%c1, %19, %c0_13, %c0_14] : memref<4x5x5x32xbf16, #tpu.memory_space<vmem>>, vector<1x1x4x32xbf16>
      %21 = vector.shape_cast %20 : vector<1x1x4x32xbf16> to vector<4x32xbf16>
      %c1_15 = arith.constant 1 : index
      %c0_16 = arith.constant 0 : index
      %c0_17 = arith.constant 0 : index
      %22 = vector.load %arg3[%c1_15, %c0_16, %c0_17] : memref<16x32x64xbf16, #tpu.memory_space<vmem>>, vector<1x32x64xbf16>
      %23 = vector.shape_cast %22 : vector<1x32x64xbf16> to vector<32x64xbf16>
      %cst_18 = arith.constant dense<0.000000e+00> : vector<4x64xf32>
      %24 = tpu.matmul %21, %23, %cst_18 {dimension_numbers = #tpu.dot_dimension_numbers<[1], [0], [0], [1], [0, 0, 1, 1], [], []>} : vector<4x32xbf16>, vector<32x64xbf16>, vector<4x64xf32> -> vector<4x64xf32>
      %25 = arith.addf %16, %24 : vector<4x64xf32>
      %26 = arith.addi %0, %arg7 : i32
      %c0_i32_19 = arith.constant 0 : i32
      %27 = arith.addi %26, %c0_i32_19 : i32
      %c0_20 = arith.constant 0 : index
      %28 = arith.index_cast %27 : i32 to index
      %c1_21 = arith.constant 1 : index
      %c0_22 = arith.constant 0 : index
      %29 = vector.load %arg2[%c0_20, %28, %c1_21, %c0_22] : memref<4x5x5x32xbf16, #tpu.memory_space<vmem>>, vector<1x1x4x32xbf16>
      %30 = vector.shape_cast %29 : vector<1x1x4x32xbf16> to vector<4x32xbf16>
      %c2 = arith.constant 2 : index
      %c0_23 = arith.constant 0 : index
      %c0_24 = arith.constant 0 : index
      %31 = vector.load %arg3[%c2, %c0_23, %c0_24] : memref<16x32x64xbf16, #tpu.memory_space<vmem>>, vector<1x32x64xbf16>
      %32 = vector.shape_cast %31 : vector<1x32x64xbf16> to vector<32x64xbf16>
      %cst_25 = arith.constant dense<0.000000e+00> : vector<4x64xf32>
      %33 = tpu.matmul %30, %32, %cst_25 {dimension_numbers = #tpu.dot_dimension_numbers<[1], [0], [0], [1], [0, 0, 1, 1], [], []>} : vector<4x32xbf16>, vector<32x64xbf16>, vector<4x64xf32> -> vector<4x64xf32>
      %34 = arith.addf %25, %33 : vector<4x64xf32>
      %35 = arith.addi %0, %arg7 : i32
      %c0_i32_26 = arith.constant 0 : i32
      %36 = arith.addi %35, %c0_i32_26 : i32
      %c1_27 = arith.constant 1 : index
      %37 = arith.index_cast %36 : i32 to index
      %c1_28 = arith.constant 1 : index
      %c0_29 = arith.constant 0 : index
      %38 = vector.load %arg2[%c1_27, %37, %c1_28, %c0_29] : memref<4x5x5x32xbf16, #tpu.memory_space<vmem>>, vector<1x1x4x32xbf16>
      %39 = vector.shape_cast %38 : vector<1x1x4x32xbf16> to vector<4x32xbf16>
      %c3 = arith.constant 3 : index
      %c0_30 = arith.constant 0 : index
      %c0_31 = arith.constant 0 : index
      %40 = vector.load %arg3[%c3, %c0_30, %c0_31] : memref<16x32x64xbf16, #tpu.memory_space<vmem>>, vector<1x32x64xbf16>
      %41 = vector.shape_cast %40 : vector<1x32x64xbf16> to vector<32x64xbf16>
      %cst_32 = arith.constant dense<0.000000e+00> : vector<4x64xf32>
      %42 = tpu.matmul %39, %41, %cst_32 {dimension_numbers = #tpu.dot_dimension_numbers<[1], [0], [0], [1], [0, 0, 1, 1], [], []>} : vector<4x32xbf16>, vector<32x64xbf16>, vector<4x64xf32> -> vector<4x64xf32>
      %43 = arith.addf %34, %42 : vector<4x64xf32>
      %44 = arith.addi %0, %arg7 : i32
      %c0_i32_33 = arith.constant 0 : i32
      %45 = arith.addi %44, %c0_i32_33 : i32
      %c2_34 = arith.constant 2 : index
      %46 = arith.index_cast %45 : i32 to index
      %c0_35 = arith.constant 0 : index
      %c0_36 = arith.constant 0 : index
      %47 = vector.load %arg2[%c2_34, %46, %c0_35, %c0_36] : memref<4x5x5x32xbf16, #tpu.memory_space<vmem>>, vector<1x1x4x32xbf16>
      %48 = vector.shape_cast %47 : vector<1x1x4x32xbf16> to vector<4x32xbf16>
      %c4 = arith.constant 4 : index
      %c0_37 = arith.constant 0 : index
      %c0_38 = arith.constant 0 : index
      %49 = vector.load %arg3[%c4, %c0_37, %c0_38] : memref<16x32x64xbf16, #tpu.memory_space<vmem>>, vector<1x32x64xbf16>
      %50 = vector.shape_cast %49 : vector<1x32x64xbf16> to vector<32x64xbf16>
      %cst_39 = arith.constant dense<0.000000e+00> : vector<4x64xf32>
      %51 = tpu.matmul %48, %50, %cst_39 {dimension_numbers = #tpu.dot_dimension_numbers<[1], [0], [0], [1], [0, 0, 1, 1], [], []>} : vector<4x32xbf16>, vector<32x64xbf16>, vector<4x64xf32> -> vector<4x64xf32>
      %52 = arith.addf %43, %51 : vector<4x64xf32>
      %53 = arith.addi %0, %arg7 : i32
      %c0_i32_40 = arith.constant 0 : i32
      %54 = arith.addi %53, %c0_i32_40 : i32
      %c3_41 = arith.constant 3 : index
      %55 = arith.index_cast %54 : i32 to index
      %c0_42 = arith.constant 0 : index
      %c0_43 = arith.constant 0 : index
      %56 = vector.load %arg2[%c3_41, %55, %c0_42, %c0_43] : memref<4x5x5x32xbf16, #tpu.memory_space<vmem>>, vector<1x1x4x32xbf16>
      %57 = vector.shape_cast %56 : vector<1x1x4x32xbf16> to vector<4x32xbf16>
      %c5 = arith.constant 5 : index
      %c0_44 = arith.constant 0 : index
      %c0_45 = arith.constant 0 : index
      %58 = vector.load %arg3[%c5, %c0_44, %c0_45] : memref<16x32x64xbf16, #tpu.memory_space<vmem>>, vector<1x32x64xbf16>
      %59 = vector.shape_cast %58 : vector<1x32x64xbf16> to vector<32x64xbf16>
      %cst_46 = arith.constant dense<0.000000e+00> : vector<4x64xf32>
      %60 = tpu.matmul %57, %59, %cst_46 {dimension_numbers = #tpu.dot_dimension_numbers<[1], [0], [0], [1], [0, 0, 1, 1], [], []>} : vector<4x32xbf16>, vector<32x64xbf16>, vector<4x64xf32> -> vector<4x64xf32>
      %61 = arith.addf %52, %60 : vector<4x64xf32>
      %62 = arith.addi %0, %arg7 : i32
      %c0_i32_47 = arith.constant 0 : i32
      %63 = arith.addi %62, %c0_i32_47 : i32
      %c2_48 = arith.constant 2 : index
      %64 = arith.index_cast %63 : i32 to index
      %c1_49 = arith.constant 1 : index
      %c0_50 = arith.constant 0 : index
      %65 = vector.load %arg2[%c2_48, %64, %c1_49, %c0_50] : memref<4x5x5x32xbf16, #tpu.memory_space<vmem>>, vector<1x1x4x32xbf16>
      %66 = vector.shape_cast %65 : vector<1x1x4x32xbf16> to vector<4x32xbf16>
      %c6 = arith.constant 6 : index
      %c0_51 = arith.constant 0 : index
      %c0_52 = arith.constant 0 : index
      %67 = vector.load %arg3[%c6, %c0_51, %c0_52] : memref<16x32x64xbf16, #tpu.memory_space<vmem>>, vector<1x32x64xbf16>
      %68 = vector.shape_cast %67 : vector<1x32x64xbf16> to vector<32x64xbf16>
      %cst_53 = arith.constant dense<0.000000e+00> : vector<4x64xf32>
      %69 = tpu.matmul %66, %68, %cst_53 {dimension_numbers = #tpu.dot_dimension_numbers<[1], [0], [0], [1], [0, 0, 1, 1], [], []>} : vector<4x32xbf16>, vector<32x64xbf16>, vector<4x64xf32> -> vector<4x64xf32>
      %70 = arith.addf %61, %69 : vector<4x64xf32>
      %71 = arith.addi %0, %arg7 : i32
      %c0_i32_54 = arith.constant 0 : i32
      %72 = arith.addi %71, %c0_i32_54 : i32
      %c3_55 = arith.constant 3 : index
      %73 = arith.index_cast %72 : i32 to index
      %c1_56 = arith.constant 1 : index
      %c0_57 = arith.constant 0 : index
      %74 = vector.load %arg2[%c3_55, %73, %c1_56, %c0_57] : memref<4x5x5x32xbf16, #tpu.memory_space<vmem>>, vector<1x1x4x32xbf16>
      %75 = vector.shape_cast %74 : vector<1x1x4x32xbf16> to vector<4x32xbf16>
      %c7 = arith.constant 7 : index
      %c0_58 = arith.constant 0 : index
      %c0_59 = arith.constant 0 : index
      %76 = vector.load %arg3[%c7, %c0_58, %c0_59] : memref<16x32x64xbf16, #tpu.memory_space<vmem>>, vector<1x32x64xbf16>
      %77 = vector.shape_cast %76 : vector<1x32x64xbf16> to vector<32x64xbf16>
      %cst_60 = arith.constant dense<0.000000e+00> : vector<4x64xf32>
      %78 = tpu.matmul %75, %77, %cst_60 {dimension_numbers = #tpu.dot_dimension_numbers<[1], [0], [0], [1], [0, 0, 1, 1], [], []>} : vector<4x32xbf16>, vector<32x64xbf16>, vector<4x64xf32> -> vector<4x64xf32>
      %79 = arith.addf %70, %78 : vector<4x64xf32>
      %80 = arith.addi %0, %arg7 : i32
      %c1_i32_61 = arith.constant 1 : i32
      %81 = arith.addi %80, %c1_i32_61 : i32
      %c0_62 = arith.constant 0 : index
      %82 = arith.index_cast %81 : i32 to index
      %c0_63 = arith.constant 0 : index
      %c0_64 = arith.constant 0 : index
      %83 = vector.load %arg2[%c0_62, %82, %c0_63, %c0_64] : memref<4x5x5x32xbf16, #tpu.memory_space<vmem>>, vector<1x1x4x32xbf16>
      %84 = vector.shape_cast %83 : vector<1x1x4x32xbf16> to vector<4x32xbf16>
      %c8 = arith.constant 8 : index
      %c0_65 = arith.constant 0 : index
      %c0_66 = arith.constant 0 : index
      %85 = vector.load %arg3[%c8, %c0_65, %c0_66] : memref<16x32x64xbf16, #tpu.memory_space<vmem>>, vector<1x32x64xbf16>
      %86 = vector.shape_cast %85 : vector<1x32x64xbf16> to vector<32x64xbf16>
      %cst_67 = arith.constant dense<0.000000e+00> : vector<4x64xf32>
      %87 = tpu.matmul %84, %86, %cst_67 {dimension_numbers = #tpu.dot_dimension_numbers<[1], [0], [0], [1], [0, 0, 1, 1], [], []>} : vector<4x32xbf16>, vector<32x64xbf16>, vector<4x64xf32> -> vector<4x64xf32>
      %88 = arith.addf %79, %87 : vector<4x64xf32>
      %89 = arith.addi %0, %arg7 : i32
      %c1_i32_68 = arith.constant 1 : i32
      %90 = arith.addi %89, %c1_i32_68 : i32
      %c1_69 = arith.constant 1 : index
      %91 = arith.index_cast %90 : i32 to index
      %c0_70 = arith.constant 0 : index
      %c0_71 = arith.constant 0 : index
      %92 = vector.load %arg2[%c1_69, %91, %c0_70, %c0_71] : memref<4x5x5x32xbf16, #tpu.memory_space<vmem>>, vector<1x1x4x32xbf16>
      %93 = vector.shape_cast %92 : vector<1x1x4x32xbf16> to vector<4x32xbf16>
      %c9 = arith.constant 9 : index
      %c0_72 = arith.constant 0 : index
      %c0_73 = arith.constant 0 : index
      %94 = vector.load %arg3[%c9, %c0_72, %c0_73] : memref<16x32x64xbf16, #tpu.memory_space<vmem>>, vector<1x32x64xbf16>
      %95 = vector.shape_cast %94 : vector<1x32x64xbf16> to vector<32x64xbf16>
      %cst_74 = arith.constant dense<0.000000e+00> : vector<4x64xf32>
      %96 = tpu.matmul %93, %95, %cst_74 {dimension_numbers = #tpu.dot_dimension_numbers<[1], [0], [0], [1], [0, 0, 1, 1], [], []>} : vector<4x32xbf16>, vector<32x64xbf16>, vector<4x64xf32> -> vector<4x64xf32>
      %97 = arith.addf %88, %96 : vector<4x64xf32>
      %98 = arith.addi %0, %arg7 : i32
      %c1_i32_75 = arith.constant 1 : i32
      %99 = arith.addi %98, %c1_i32_75 : i32
      %c0_76 = arith.constant 0 : index
      %100 = arith.index_cast %99 : i32 to index
      %c1_77 = arith.constant 1 : index
      %c0_78 = arith.constant 0 : index
      %101 = vector.load %arg2[%c0_76, %100, %c1_77, %c0_78] : memref<4x5x5x32xbf16, #tpu.memory_space<vmem>>, vector<1x1x4x32xbf16>
      %102 = vector.shape_cast %101 : vector<1x1x4x32xbf16> to vector<4x32xbf16>
      %c10 = arith.constant 10 : index
      %c0_79 = arith.constant 0 : index
      %c0_80 = arith.constant 0 : index
      %103 = vector.load %arg3[%c10, %c0_79, %c0_80] : memref<16x32x64xbf16, #tpu.memory_space<vmem>>, vector<1x32x64xbf16>
      %104 = vector.shape_cast %103 : vector<1x32x64xbf16> to vector<32x64xbf16>
      %cst_81 = arith.constant dense<0.000000e+00> : vector<4x64xf32>
      %105 = tpu.matmul %102, %104, %cst_81 {dimension_numbers = #tpu.dot_dimension_numbers<[1], [0], [0], [1], [0, 0, 1, 1], [], []>} : vector<4x32xbf16>, vector<32x64xbf16>, vector<4x64xf32> -> vector<4x64xf32>
      %106 = arith.addf %97, %105 : vector<4x64xf32>
      %107 = arith.addi %0, %arg7 : i32
      %c1_i32_82 = arith.constant 1 : i32
      %108 = arith.addi %107, %c1_i32_82 : i32
      %c1_83 = arith.constant 1 : index
      %109 = arith.index_cast %108 : i32 to index
      %c1_84 = arith.constant 1 : index
      %c0_85 = arith.constant 0 : index
      %110 = vector.load %arg2[%c1_83, %109, %c1_84, %c0_85] : memref<4x5x5x32xbf16, #tpu.memory_space<vmem>>, vector<1x1x4x32xbf16>
      %111 = vector.shape_cast %110 : vector<1x1x4x32xbf16> to vector<4x32xbf16>
      %c11 = arith.constant 11 : index
      %c0_86 = arith.constant 0 : index
      %c0_87 = arith.constant 0 : index
      %112 = vector.load %arg3[%c11, %c0_86, %c0_87] : memref<16x32x64xbf16, #tpu.memory_space<vmem>>, vector<1x32x64xbf16>
      %113 = vector.shape_cast %112 : vector<1x32x64xbf16> to vector<32x64xbf16>
      %cst_88 = arith.constant dense<0.000000e+00> : vector<4x64xf32>
      %114 = tpu.matmul %111, %113, %cst_88 {dimension_numbers = #tpu.dot_dimension_numbers<[1], [0], [0], [1], [0, 0, 1, 1], [], []>} : vector<4x32xbf16>, vector<32x64xbf16>, vector<4x64xf32> -> vector<4x64xf32>
      %115 = arith.addf %106, %114 : vector<4x64xf32>
      %116 = arith.addi %0, %arg7 : i32
      %c1_i32_89 = arith.constant 1 : i32
      %117 = arith.addi %116, %c1_i32_89 : i32
      %c2_90 = arith.constant 2 : index
      %118 = arith.index_cast %117 : i32 to index
      %c0_91 = arith.constant 0 : index
      %c0_92 = arith.constant 0 : index
      %119 = vector.load %arg2[%c2_90, %118, %c0_91, %c0_92] : memref<4x5x5x32xbf16, #tpu.memory_space<vmem>>, vector<1x1x4x32xbf16>
      %120 = vector.shape_cast %119 : vector<1x1x4x32xbf16> to vector<4x32xbf16>
      %c12 = arith.constant 12 : index
      %c0_93 = arith.constant 0 : index
      %c0_94 = arith.constant 0 : index
      %121 = vector.load %arg3[%c12, %c0_93, %c0_94] : memref<16x32x64xbf16, #tpu.memory_space<vmem>>, vector<1x32x64xbf16>
      %122 = vector.shape_cast %121 : vector<1x32x64xbf16> to vector<32x64xbf16>
      %cst_95 = arith.constant dense<0.000000e+00> : vector<4x64xf32>
      %123 = tpu.matmul %120, %122, %cst_95 {dimension_numbers = #tpu.dot_dimension_numbers<[1], [0], [0], [1], [0, 0, 1, 1], [], []>} : vector<4x32xbf16>, vector<32x64xbf16>, vector<4x64xf32> -> vector<4x64xf32>
      %124 = arith.addf %115, %123 : vector<4x64xf32>
      %125 = arith.addi %0, %arg7 : i32
      %c1_i32_96 = arith.constant 1 : i32
      %126 = arith.addi %125, %c1_i32_96 : i32
      %c3_97 = arith.constant 3 : index
      %127 = arith.index_cast %126 : i32 to index
      %c0_98 = arith.constant 0 : index
      %c0_99 = arith.constant 0 : index
      %128 = vector.load %arg2[%c3_97, %127, %c0_98, %c0_99] : memref<4x5x5x32xbf16, #tpu.memory_space<vmem>>, vector<1x1x4x32xbf16>
      %129 = vector.shape_cast %128 : vector<1x1x4x32xbf16> to vector<4x32xbf16>
      %c13 = arith.constant 13 : index
      %c0_100 = arith.constant 0 : index
      %c0_101 = arith.constant 0 : index
      %130 = vector.load %arg3[%c13, %c0_100, %c0_101] : memref<16x32x64xbf16, #tpu.memory_space<vmem>>, vector<1x32x64xbf16>
      %131 = vector.shape_cast %130 : vector<1x32x64xbf16> to vector<32x64xbf16>
      %cst_102 = arith.constant dense<0.000000e+00> : vector<4x64xf32>
      %132 = tpu.matmul %129, %131, %cst_102 {dimension_numbers = #tpu.dot_dimension_numbers<[1], [0], [0], [1], [0, 0, 1, 1], [], []>} : vector<4x32xbf16>, vector<32x64xbf16>, vector<4x64xf32> -> vector<4x64xf32>
      %133 = arith.addf %124, %132 : vector<4x64xf32>
      %134 = arith.addi %0, %arg7 : i32
      %c1_i32_103 = arith.constant 1 : i32
      %135 = arith.addi %134, %c1_i32_103 : i32
      %c2_104 = arith.constant 2 : index
      %136 = arith.index_cast %135 : i32 to index
      %c1_105 = arith.constant 1 : index
      %c0_106 = arith.constant 0 : index
      %137 = vector.load %arg2[%c2_104, %136, %c1_105, %c0_106] : memref<4x5x5x32xbf16, #tpu.memory_space<vmem>>, vector<1x1x4x32xbf16>
      %138 = vector.shape_cast %137 : vector<1x1x4x32xbf16> to vector<4x32xbf16>
      %c14 = arith.constant 14 : index
      %c0_107 = arith.constant 0 : index
      %c0_108 = arith.constant 0 : index
      %139 = vector.load %arg3[%c14, %c0_107, %c0_108] : memref<16x32x64xbf16, #tpu.memory_space<vmem>>, vector<1x32x64xbf16>
      %140 = vector.shape_cast %139 : vector<1x32x64xbf16> to vector<32x64xbf16>
      %cst_109 = arith.constant dense<0.000000e+00> : vector<4x64xf32>
      %141 = tpu.matmul %138, %140, %cst_109 {dimension_numbers = #tpu.dot_dimension_numbers<[1], [0], [0], [1], [0, 0, 1, 1], [], []>} : vector<4x32xbf16>, vector<32x64xbf16>, vector<4x64xf32> -> vector<4x64xf32>
      %142 = arith.addf %133, %141 : vector<4x64xf32>
      %143 = arith.addi %0, %arg7 : i32
      %c1_i32_110 = arith.constant 1 : i32
      %144 = arith.addi %143, %c1_i32_110 : i32
      %c3_111 = arith.constant 3 : index
      %145 = arith.index_cast %144 : i32 to index
      %c1_112 = arith.constant 1 : index
      %c0_113 = arith.constant 0 : index
      %146 = vector.load %arg2[%c3_111, %145, %c1_112, %c0_113] : memref<4x5x5x32xbf16, #tpu.memory_space<vmem>>, vector<1x1x4x32xbf16>
      %147 = vector.shape_cast %146 : vector<1x1x4x32xbf16> to vector<4x32xbf16>
      %c15 = arith.constant 15 : index
      %c0_114 = arith.constant 0 : index
      %c0_115 = arith.constant 0 : index
      %148 = vector.load %arg3[%c15, %c0_114, %c0_115] : memref<16x32x64xbf16, #tpu.memory_space<vmem>>, vector<1x32x64xbf16>
      %149 = vector.shape_cast %148 : vector<1x32x64xbf16> to vector<32x64xbf16>
      %cst_116 = arith.constant dense<0.000000e+00> : vector<4x64xf32>
      %150 = tpu.matmul %147, %149, %cst_116 {dimension_numbers = #tpu.dot_dimension_numbers<[1], [0], [0], [1], [0, 0, 1, 1], [], []>} : vector<4x32xbf16>, vector<32x64xbf16>, vector<4x64xf32> -> vector<4x64xf32>
      %151 = arith.addf %142, %150 : vector<4x64xf32>
      %152 = arith.truncf %151 : vector<4x64xf32> to vector<4x64xbf16>
      %c0_117 = arith.constant 0 : index
      %153 = arith.index_cast %arg7 : i32 to index
      %c0_118 = arith.constant 0 : index
      %c0_119 = arith.constant 0 : index
      %154 = vector.load %arg4[%c0_117, %153, %c0_118, %c0_119] : memref<1x4x4x64xbf16, #tpu.memory_space<vmem>>, vector<1x1x4x64xbf16>
      %155 = vector.shape_cast %154 : vector<1x1x4x64xbf16> to vector<4x64xbf16>
      %156 = vector.shape_cast %152 : vector<4x64xbf16> to vector<1x1x4x64xbf16>
      tpu.vector_store %arg4[%c0_117, %153, %c0_118, %c0_119], %156 {strides = array<i32>} : memref<1x4x4x64xbf16, #tpu.memory_space<vmem>>, vector<1x1x4x64xbf16>,
      %c0_120 = arith.constant 0 : index
      %c0_121 = arith.constant 0 : index
      %157 = vector.load %arg5[%c0_120, %c0_121] : memref<1x64xf32, #tpu.memory_space<vmem>>, vector<1x64xf32>
      %cst_122 = arith.constant dense<0.000000e+00> : vector<64xf32>
      %158 = vector.multi_reduction <add>, %151, %cst_122 [0] : vector<4x64xf32> to vector<64xf32>
      %159 = vector.shape_cast %158 : vector<64xf32> to vector<1x64xf32>
      %160 = arith.addf %157, %159 : vector<1x64xf32>
      %c0_123 = arith.constant 0 : index
      %c0_124 = arith.constant 0 : index
      %161 = vector.load %arg5[%c0_123, %c0_124] : memref<1x64xf32, #tpu.memory_space<vmem>>, vector<1x64xf32>
      tpu.vector_store %arg5[%c0_123, %c0_124], %160 {strides = array<i32>} : memref<1x64xf32, #tpu.memory_space<vmem>>, vector<1x64xf32>,
      %c0_125 = arith.constant 0 : index
      %c0_126 = arith.constant 0 : index
      %162 = vector.load %arg6[%c0_125, %c0_126] : memref<1x64xf32, #tpu.memory_space<vmem>>, vector<1x64xf32>
      %163 = arith.mulf %151, %151 : vector<4x64xf32>
      %cst_127 = arith.constant dense<0.000000e+00> : vector<64xf32>
      %164 = vector.multi_reduction <add>, %163, %cst_127 [0] : vector<4x64xf32> to vector<64xf32>
      %165 = vector.shape_cast %164 : vector<64xf32> to vector<1x64xf32>
      %166 = arith.addf %162, %165 : vector<1x64xf32>
      %c0_128 = arith.constant 0 : index
      %c0_129 = arith.constant 0 : index
      %167 = vector.load %arg6[%c0_128, %c0_129] : memref<1x64xf32, #tpu.memory_space<vmem>>, vector<1x64xf32>
      tpu.vector_store %arg6[%c0_128, %c0_129], %166 {strides = array<i32>} : memref<1x64xf32, #tpu.memory_space<vmem>>, vector<1x64xf32>,
    }
    %c4_i32_4 = arith.constant 4 : i32
    return
  }
  func.func @transform_0(%arg0: i32, %arg1: i32) -> (i32, i32, i32, i32) {
    %c0_i32 = arith.constant 0 : i32
    %c0_i32_0 = arith.constant 0 : i32
    %c0_i32_1 = arith.constant 0 : i32
    %c0_i32_2 = arith.constant 0 : i32
    return %arg0, %c0_i32, %c0_i32_0, %c0_i32_1 : i32, i32, i32, i32
  }
  func.func @transform_1(%arg0: i32, %arg1: i32) -> (i32, i32, i32) {
    %c0_i32 = arith.constant 0 : i32
    %c0_i32_0 = arith.constant 0 : i32
    %c0_i32_1 = arith.constant 0 : i32
    %c0_i32_2 = arith.constant 0 : i32
    return %c0_i32, %c0_i32_0, %c0_i32_1 : i32, i32, i32
  }
  func.func @transform_2(%arg0: i32, %arg1: i32) -> (i32, i32, i32, i32) {
    %c0_i32 = arith.constant 0 : i32
    %c0_i32_0 = arith.constant 0 : i32
    %c0_i32_1 = arith.constant 0 : i32
    return %arg0, %arg1, %c0_i32, %c0_i32_0 : i32, i32, i32, i32
  }
  func.func @transform_3(%arg0: i32, %arg1: i32) -> (i32, i32) {
    %c0_i32 = arith.constant 0 : i32
    %c0_i32_0 = arith.constant 0 : i32
    %c0_i32_1 = arith.constant 0 : i32
    return %c0_i32, %c0_i32_0 : i32, i32
  }
  func.func @transform_4(%arg0: i32, %arg1: i32) -> (i32, i32) {
    %c0_i32 = arith.constant 0 : i32
    %c0_i32_0 = arith.constant 0 : i32
    %c0_i32_1 = arith.constant 0 : i32
    return %c0_i32, %c0_i32_0 : i32, i32
  }
}

module attributes {stable_mosaic.version = 11 : i64} {
  func.func @_bn_act_kernel(%arg0: i32, %arg1: i32, %arg2: memref<1x3x3x128xbf16, #tpu.memory_space<vmem>>, %arg3: memref<1x128xf32, #tpu.memory_space<vmem>>, %arg4: memref<1x128xf32, #tpu.memory_space<vmem>>, %arg5: memref<1x3x3x128xbf16, #tpu.memory_space<vmem>>) attributes {dimension_semantics = [#tpu.dimension_semantics<parallel>, #tpu.dimension_semantics<parallel>], iteration_bounds = array<i64: 2, 1>, scalar_prefetch = 0 : i64, scratch_operands = 0 : i64, tpu.core_type = #tpu.core_type<tc>, window_params = [{transform_indices = @transform_0, window_bounds = array<i64: 1, 3, 3, 128>}, {pipeline_mode = #tpu.pipeline_mode<synchronous>, transform_indices = @transform_1, window_bounds = array<i64: 1, 128>}, {pipeline_mode = #tpu.pipeline_mode<synchronous>, transform_indices = @transform_2, window_bounds = array<i64: 1, 128>}, {transform_indices = @transform_3, window_bounds = array<i64: 1, 3, 3, 128>}]} {
    %c0 = arith.constant 0 : index
    %c0_0 = arith.constant 0 : index
    %c0_1 = arith.constant 0 : index
    %c0_2 = arith.constant 0 : index
    %0 = vector.load %arg2[%c0, %c0_0, %c0_1, %c0_2] : memref<1x3x3x128xbf16, #tpu.memory_space<vmem>>, vector<1x3x3x128xbf16>
    %1 = vector.shape_cast %0 : vector<1x3x3x128xbf16> to vector<3x3x128xbf16>
    %2 = arith.extf %1 : vector<3x3x128xbf16> to vector<3x3x128xf32>
    %c0_3 = arith.constant 0 : index
    %c0_4 = arith.constant 0 : index
    %3 = vector.load %arg3[%c0_3, %c0_4] : memref<1x128xf32, #tpu.memory_space<vmem>>, vector<1x128xf32>
    %4 = vector.shape_cast %3 : vector<1x128xf32> to vector<1x1x128xf32>
    %5 = vector.broadcast %4 : vector<1x1x128xf32> to vector<3x3x128xf32>
    %6 = arith.mulf %2, %5 : vector<3x3x128xf32>
    %c0_5 = arith.constant 0 : index
    %c0_6 = arith.constant 0 : index
    %7 = vector.load %arg4[%c0_5, %c0_6] : memref<1x128xf32, #tpu.memory_space<vmem>>, vector<1x128xf32>
    %8 = vector.shape_cast %7 : vector<1x128xf32> to vector<1x1x128xf32>
    %9 = vector.broadcast %8 : vector<1x1x128xf32> to vector<3x3x128xf32>
    %10 = arith.addf %6, %9 : vector<3x3x128xf32>
    %cst = arith.constant 2.000000e-01 : f32
    %11 = vector.broadcast %cst : f32 to vector<3x3x128xf32>
    %12 = arith.mulf %11, %10 : vector<3x3x128xf32>
    %13 = arith.maximumf %10, %12 : vector<3x3x128xf32>
    %14 = arith.truncf %13 : vector<3x3x128xf32> to vector<3x3x128xbf16>
    %c0_7 = arith.constant 0 : index
    %c0_8 = arith.constant 0 : index
    %c0_9 = arith.constant 0 : index
    %c0_10 = arith.constant 0 : index
    %15 = vector.load %arg5[%c0_7, %c0_8, %c0_9, %c0_10] : memref<1x3x3x128xbf16, #tpu.memory_space<vmem>>, vector<1x3x3x128xbf16>
    %16 = vector.shape_cast %15 : vector<1x3x3x128xbf16> to vector<3x3x128xbf16>
    %17 = vector.shape_cast %14 : vector<3x3x128xbf16> to vector<1x3x3x128xbf16>
    tpu.vector_store %arg5[%c0_7, %c0_8, %c0_9, %c0_10], %17 {strides = array<i32>} : memref<1x3x3x128xbf16, #tpu.memory_space<vmem>>, vector<1x3x3x128xbf16>,
    return
  }
  func.func @transform_0(%arg0: i32, %arg1: i32) -> (i32, i32, i32, i32) {
    %c0_i32 = arith.constant 0 : i32
    %c0_i32_0 = arith.constant 0 : i32
    %c0_i32_1 = arith.constant 0 : i32
    return %arg0, %arg1, %c0_i32, %c0_i32_0 : i32, i32, i32, i32
  }
  func.func @transform_1(%arg0: i32, %arg1: i32) -> (i32, i32) {
    %c0_i32 = arith.constant 0 : i32
    %c0_i32_0 = arith.constant 0 : i32
    %c0_i32_1 = arith.constant 0 : i32
    return %c0_i32, %c0_i32_0 : i32, i32
  }
  func.func @transform_2(%arg0: i32, %arg1: i32) -> (i32, i32) {
    %c0_i32 = arith.constant 0 : i32
    %c0_i32_0 = arith.constant 0 : i32
    %c0_i32_1 = arith.constant 0 : i32
    return %c0_i32, %c0_i32_0 : i32, i32
  }
  func.func @transform_3(%arg0: i32, %arg1: i32) -> (i32, i32, i32, i32) {
    %c0_i32 = arith.constant 0 : i32
    %c0_i32_0 = arith.constant 0 : i32
    %c0_i32_1 = arith.constant 0 : i32
    return %arg0, %arg1, %c0_i32, %c0_i32_0 : i32, i32, i32, i32
  }
}

module attributes {stable_mosaic.version = 11 : i64} {
  func.func @_conv_tap_kernel(%arg0: i32, %arg1: i32, %arg2: memref<1x6x6x64xbf16, #tpu.memory_space<vmem>>, %arg3: memref<16x64x128xbf16, #tpu.memory_space<vmem>>, %arg4: memref<1x3x3x128xbf16, #tpu.memory_space<vmem>>, %arg5: memref<1x128xf32, #tpu.memory_space<vmem>>, %arg6: memref<1x128xf32, #tpu.memory_space<vmem>>) attributes {dimension_semantics = [#tpu.dimension_semantics<arbitrary>, #tpu.dimension_semantics<arbitrary>], iteration_bounds = array<i64: 2, 1>, scalar_prefetch = 0 : i64, scratch_operands = 0 : i64, tpu.core_type = #tpu.core_type<tc>, window_params = [{transform_indices = @transform_0, window_bounds = array<i64: 1, 6, 6, 64>}, {pipeline_mode = #tpu.pipeline_mode<synchronous>, transform_indices = @transform_1, window_bounds = array<i64: 16, 64, 128>}, {transform_indices = @transform_2, window_bounds = array<i64: 1, 3, 3, 128>}, {pipeline_mode = #tpu.pipeline_mode<synchronous>, transform_indices = @transform_3, window_bounds = array<i64: 1, 128>}, {pipeline_mode = #tpu.pipeline_mode<synchronous>, transform_indices = @transform_4, window_bounds = array<i64: 1, 128>}]} {
    %c3_i32 = arith.constant 3 : i32
    %0 = arith.muli %arg1, %c3_i32 : i32
    %c0_i32 = arith.constant 0 : i32
    %1 = arith.cmpi eq, %arg0, %c0_i32 : i32
    %c0_i32_0 = arith.constant 0 : i32
    %2 = arith.cmpi eq, %arg1, %c0_i32_0 : i32
    %3 = arith.andi %1, %2 : i1
    %4 = arith.extui %3 : i1 to i32
    %c0_i32_1 = arith.constant 0 : i32
    %5 = arith.cmpi ne, %4, %c0_i32_1 : i32
    scf.if %5 {
      %cst = arith.constant 0.000000e+00 : f32
      %7 = vector.broadcast %cst : f32 to vector<1x128xf32>
      %c0 = arith.constant 0 : index
      %c0_5 = arith.constant 0 : index
      %8 = vector.load %arg5[%c0, %c0_5] : memref<1x128xf32, #tpu.memory_space<vmem>>, vector<1x128xf32>
      tpu.vector_store %arg5[%c0, %c0_5], %7 {strides = array<i32>} : memref<1x128xf32, #tpu.memory_space<vmem>>, vector<1x128xf32>,
      %cst_6 = arith.constant 0.000000e+00 : f32
      %9 = vector.broadcast %cst_6 : f32 to vector<1x128xf32>
      %c0_7 = arith.constant 0 : index
      %c0_8 = arith.constant 0 : index
      %10 = vector.load %arg6[%c0_7, %c0_8] : memref<1x128xf32, #tpu.memory_space<vmem>>, vector<1x128xf32>
      tpu.vector_store %arg6[%c0_7, %c0_8], %9 {strides = array<i32>} : memref<1x128xf32, #tpu.memory_space<vmem>>, vector<1x128xf32>,
    } else {
    }
    %c0_i32_2 = arith.constant 0 : i32
    %c3_i32_3 = arith.constant 3 : i32
    %6 = arith.addi %c0_i32_2, %c3_i32_3 : i32
    %c1_i32 = arith.constant 1 : i32
    scf.for %arg7 = %c0_i32_2 to %6 step %c1_i32  : i32 {
      %cst = arith.constant 0.000000e+00 : f32
      %7 = vector.broadcast %cst : f32 to vector<3x128xf32>
      %8 = arith.addi %0, %arg7 : i32
      %c0_i32_5 = arith.constant 0 : i32
      %9 = arith.addi %8, %c0_i32_5 : i32
      %c0 = arith.constant 0 : index
      %10 = arith.index_cast %9 : i32 to index
      %c0_6 = arith.constant 0 : index
      %c0_7 = arith.constant 0 : index
      %11 = vector.load %arg2[%c0, %10, %c0_6, %c0_7] : memref<1x6x6x64xbf16, #tpu.memory_space<vmem>>, vector<1x1x3x64xbf16>
      %12 = vector.shape_cast %11 : vector<1x1x3x64xbf16> to vector<3x64xbf16>
      %c0_8 = arith.constant 0 : index
      %c0_9 = arith.constant 0 : index
      %c0_10 = arith.constant 0 : index
      %13 = vector.load %arg3[%c0_8, %c0_9, %c0_10] : memref<16x64x128xbf16, #tpu.memory_space<vmem>>, vector<1x64x128xbf16>
      %14 = vector.shape_cast %13 : vector<1x64x128xbf16> to vector<64x128xbf16>
      %cst_11 = arith.constant dense<0.000000e+00> : vector<3x128xf32>
      %15 = tpu.matmul %12, %14, %cst_11 {dimension_numbers = #tpu.dot_dimension_numbers<[1], [0], [0], [1], [0, 0, 1, 1], [], []>} : vector<3x64xbf16>, vector<64x128xbf16>, vector<3x128xf32> -> vector<3x128xf32>
      %16 = arith.addf %7, %15 : vector<3x128xf32>
      %17 = arith.addi %0, %arg7 : i32
      %c0_i32_12 = arith.constant 0 : i32
      %18 = arith.addi %17, %c0_i32_12 : i32
      %c0_13 = arith.constant 0 : index
      %19 = arith.index_cast %18 : i32 to index
      %c1 = arith.constant 1 : index
      %c0_14 = arith.constant 0 : index
      %20 = vector.load %arg2[%c0_13, %19, %c1, %c0_14] : memref<1x6x6x64xbf16, #tpu.memory_space<vmem>>, vector<1x1x3x64xbf16>
      %21 = vector.shape_cast %20 : vector<1x1x3x64xbf16> to vector<3x64xbf16>
      %c1_15 = arith.constant 1 : index
      %c0_16 = arith.constant 0 : index
      %c0_17 = arith.constant 0 : index
      %22 = vector.load %arg3[%c1_15, %c0_16, %c0_17] : memref<16x64x128xbf16, #tpu.memory_space<vmem>>, vector<1x64x128xbf16>
      %23 = vector.shape_cast %22 : vector<1x64x128xbf16> to vector<64x128xbf16>
      %cst_18 = arith.constant dense<0.000000e+00> : vector<3x128xf32>
      %24 = tpu.matmul %21, %23, %cst_18 {dimension_numbers = #tpu.dot_dimension_numbers<[1], [0], [0], [1], [0, 0, 1, 1], [], []>} : vector<3x64xbf16>, vector<64x128xbf16>, vector<3x128xf32> -> vector<3x128xf32>
      %25 = arith.addf %16, %24 : vector<3x128xf32>
      %26 = arith.addi %0, %arg7 : i32
      %c0_i32_19 = arith.constant 0 : i32
      %27 = arith.addi %26, %c0_i32_19 : i32
      %c0_20 = arith.constant 0 : index
      %28 = arith.index_cast %27 : i32 to index
      %c2 = arith.constant 2 : index
      %c0_21 = arith.constant 0 : index
      %29 = vector.load %arg2[%c0_20, %28, %c2, %c0_21] : memref<1x6x6x64xbf16, #tpu.memory_space<vmem>>, vector<1x1x3x64xbf16>
      %30 = vector.shape_cast %29 : vector<1x1x3x64xbf16> to vector<3x64xbf16>
      %c2_22 = arith.constant 2 : index
      %c0_23 = arith.constant 0 : index
      %c0_24 = arith.constant 0 : index
      %31 = vector.load %arg3[%c2_22, %c0_23, %c0_24] : memref<16x64x128xbf16, #tpu.memory_space<vmem>>, vector<1x64x128xbf16>
      %32 = vector.shape_cast %31 : vector<1x64x128xbf16> to vector<64x128xbf16>
      %cst_25 = arith.constant dense<0.000000e+00> : vector<3x128xf32>
      %33 = tpu.matmul %30, %32, %cst_25 {dimension_numbers = #tpu.dot_dimension_numbers<[1], [0], [0], [1], [0, 0, 1, 1], [], []>} : vector<3x64xbf16>, vector<64x128xbf16>, vector<3x128xf32> -> vector<3x128xf32>
      %34 = arith.addf %25, %33 : vector<3x128xf32>
      %35 = arith.addi %0, %arg7 : i32
      %c0_i32_26 = arith.constant 0 : i32
      %36 = arith.addi %35, %c0_i32_26 : i32
      %c0_27 = arith.constant 0 : index
      %37 = arith.index_cast %36 : i32 to index
      %c3 = arith.constant 3 : index
      %c0_28 = arith.constant 0 : index
      %38 = vector.load %arg2[%c0_27, %37, %c3, %c0_28] : memref<1x6x6x64xbf16, #tpu.memory_space<vmem>>, vector<1x1x3x64xbf16>
      %39 = vector.shape_cast %38 : vector<1x1x3x64xbf16> to vector<3x64xbf16>
      %c3_29 = arith.constant 3 : index
      %c0_30 = arith.constant 0 : index
      %c0_31 = arith.constant 0 : index
      %40 = vector.load %arg3[%c3_29, %c0_30, %c0_31] : memref<16x64x128xbf16, #tpu.memory_space<vmem>>, vector<1x64x128xbf16>
      %41 = vector.shape_cast %40 : vector<1x64x128xbf16> to vector<64x128xbf16>
      %cst_32 = arith.constant dense<0.000000e+00> : vector<3x128xf32>
      %42 = tpu.matmul %39, %41, %cst_32 {dimension_numbers = #tpu.dot_dimension_numbers<[1], [0], [0], [1], [0, 0, 1, 1], [], []>} : vector<3x64xbf16>, vector<64x128xbf16>, vector<3x128xf32> -> vector<3x128xf32>
      %43 = arith.addf %34, %42 : vector<3x128xf32>
      %44 = arith.addi %0, %arg7 : i32
      %c1_i32_33 = arith.constant 1 : i32
      %45 = arith.addi %44, %c1_i32_33 : i32
      %c0_34 = arith.constant 0 : index
      %46 = arith.index_cast %45 : i32 to index
      %c0_35 = arith.constant 0 : index
      %c0_36 = arith.constant 0 : index
      %47 = vector.load %arg2[%c0_34, %46, %c0_35, %c0_36] : memref<1x6x6x64xbf16, #tpu.memory_space<vmem>>, vector<1x1x3x64xbf16>
      %48 = vector.shape_cast %47 : vector<1x1x3x64xbf16> to vector<3x64xbf16>
      %c4 = arith.constant 4 : index
      %c0_37 = arith.constant 0 : index
      %c0_38 = arith.constant 0 : index
      %49 = vector.load %arg3[%c4, %c0_37, %c0_38] : memref<16x64x128xbf16, #tpu.memory_space<vmem>>, vector<1x64x128xbf16>
      %50 = vector.shape_cast %49 : vector<1x64x128xbf16> to vector<64x128xbf16>
      %cst_39 = arith.constant dense<0.000000e+00> : vector<3x128xf32>
      %51 = tpu.matmul %48, %50, %cst_39 {dimension_numbers = #tpu.dot_dimension_numbers<[1], [0], [0], [1], [0, 0, 1, 1], [], []>} : vector<3x64xbf16>, vector<64x128xbf16>, vector<3x128xf32> -> vector<3x128xf32>
      %52 = arith.addf %43, %51 : vector<3x128xf32>
      %53 = arith.addi %0, %arg7 : i32
      %c1_i32_40 = arith.constant 1 : i32
      %54 = arith.addi %53, %c1_i32_40 : i32
      %c0_41 = arith.constant 0 : index
      %55 = arith.index_cast %54 : i32 to index
      %c1_42 = arith.constant 1 : index
      %c0_43 = arith.constant 0 : index
      %56 = vector.load %arg2[%c0_41, %55, %c1_42, %c0_43] : memref<1x6x6x64xbf16, #tpu.memory_space<vmem>>, vector<1x1x3x64xbf16>
      %57 = vector.shape_cast %56 : vector<1x1x3x64xbf16> to vector<3x64xbf16>
      %c5 = arith.constant 5 : index
      %c0_44 = arith.constant 0 : index
      %c0_45 = arith.constant 0 : index
      %58 = vector.load %arg3[%c5, %c0_44, %c0_45] : memref<16x64x128xbf16, #tpu.memory_space<vmem>>, vector<1x64x128xbf16>
      %59 = vector.shape_cast %58 : vector<1x64x128xbf16> to vector<64x128xbf16>
      %cst_46 = arith.constant dense<0.000000e+00> : vector<3x128xf32>
      %60 = tpu.matmul %57, %59, %cst_46 {dimension_numbers = #tpu.dot_dimension_numbers<[1], [0], [0], [1], [0, 0, 1, 1], [], []>} : vector<3x64xbf16>, vector<64x128xbf16>, vector<3x128xf32> -> vector<3x128xf32>
      %61 = arith.addf %52, %60 : vector<3x128xf32>
      %62 = arith.addi %0, %arg7 : i32
      %c1_i32_47 = arith.constant 1 : i32
      %63 = arith.addi %62, %c1_i32_47 : i32
      %c0_48 = arith.constant 0 : index
      %64 = arith.index_cast %63 : i32 to index
      %c2_49 = arith.constant 2 : index
      %c0_50 = arith.constant 0 : index
      %65 = vector.load %arg2[%c0_48, %64, %c2_49, %c0_50] : memref<1x6x6x64xbf16, #tpu.memory_space<vmem>>, vector<1x1x3x64xbf16>
      %66 = vector.shape_cast %65 : vector<1x1x3x64xbf16> to vector<3x64xbf16>
      %c6 = arith.constant 6 : index
      %c0_51 = arith.constant 0 : index
      %c0_52 = arith.constant 0 : index
      %67 = vector.load %arg3[%c6, %c0_51, %c0_52] : memref<16x64x128xbf16, #tpu.memory_space<vmem>>, vector<1x64x128xbf16>
      %68 = vector.shape_cast %67 : vector<1x64x128xbf16> to vector<64x128xbf16>
      %cst_53 = arith.constant dense<0.000000e+00> : vector<3x128xf32>
      %69 = tpu.matmul %66, %68, %cst_53 {dimension_numbers = #tpu.dot_dimension_numbers<[1], [0], [0], [1], [0, 0, 1, 1], [], []>} : vector<3x64xbf16>, vector<64x128xbf16>, vector<3x128xf32> -> vector<3x128xf32>
      %70 = arith.addf %61, %69 : vector<3x128xf32>
      %71 = arith.addi %0, %arg7 : i32
      %c1_i32_54 = arith.constant 1 : i32
      %72 = arith.addi %71, %c1_i32_54 : i32
      %c0_55 = arith.constant 0 : index
      %73 = arith.index_cast %72 : i32 to index
      %c3_56 = arith.constant 3 : index
      %c0_57 = arith.constant 0 : index
      %74 = vector.load %arg2[%c0_55, %73, %c3_56, %c0_57] : memref<1x6x6x64xbf16, #tpu.memory_space<vmem>>, vector<1x1x3x64xbf16>
      %75 = vector.shape_cast %74 : vector<1x1x3x64xbf16> to vector<3x64xbf16>
      %c7 = arith.constant 7 : index
      %c0_58 = arith.constant 0 : index
      %c0_59 = arith.constant 0 : index
      %76 = vector.load %arg3[%c7, %c0_58, %c0_59] : memref<16x64x128xbf16, #tpu.memory_space<vmem>>, vector<1x64x128xbf16>
      %77 = vector.shape_cast %76 : vector<1x64x128xbf16> to vector<64x128xbf16>
      %cst_60 = arith.constant dense<0.000000e+00> : vector<3x128xf32>
      %78 = tpu.matmul %75, %77, %cst_60 {dimension_numbers = #tpu.dot_dimension_numbers<[1], [0], [0], [1], [0, 0, 1, 1], [], []>} : vector<3x64xbf16>, vector<64x128xbf16>, vector<3x128xf32> -> vector<3x128xf32>
      %79 = arith.addf %70, %78 : vector<3x128xf32>
      %80 = arith.addi %0, %arg7 : i32
      %c2_i32 = arith.constant 2 : i32
      %81 = arith.addi %80, %c2_i32 : i32
      %c0_61 = arith.constant 0 : index
      %82 = arith.index_cast %81 : i32 to index
      %c0_62 = arith.constant 0 : index
      %c0_63 = arith.constant 0 : index
      %83 = vector.load %arg2[%c0_61, %82, %c0_62, %c0_63] : memref<1x6x6x64xbf16, #tpu.memory_space<vmem>>, vector<1x1x3x64xbf16>
      %84 = vector.shape_cast %83 : vector<1x1x3x64xbf16> to vector<3x64xbf16>
      %c8 = arith.constant 8 : index
      %c0_64 = arith.constant 0 : index
      %c0_65 = arith.constant 0 : index
      %85 = vector.load %arg3[%c8, %c0_64, %c0_65] : memref<16x64x128xbf16, #tpu.memory_space<vmem>>, vector<1x64x128xbf16>
      %86 = vector.shape_cast %85 : vector<1x64x128xbf16> to vector<64x128xbf16>
      %cst_66 = arith.constant dense<0.000000e+00> : vector<3x128xf32>
      %87 = tpu.matmul %84, %86, %cst_66 {dimension_numbers = #tpu.dot_dimension_numbers<[1], [0], [0], [1], [0, 0, 1, 1], [], []>} : vector<3x64xbf16>, vector<64x128xbf16>, vector<3x128xf32> -> vector<3x128xf32>
      %88 = arith.addf %79, %87 : vector<3x128xf32>
      %89 = arith.addi %0, %arg7 : i32
      %c2_i32_67 = arith.constant 2 : i32
      %90 = arith.addi %89, %c2_i32_67 : i32
      %c0_68 = arith.constant 0 : index
      %91 = arith.index_cast %90 : i32 to index
      %c1_69 = arith.constant 1 : index
      %c0_70 = arith.constant 0 : index
      %92 = vector.load %arg2[%c0_68, %91, %c1_69, %c0_70] : memref<1x6x6x64xbf16, #tpu.memory_space<vmem>>, vector<1x1x3x64xbf16>
      %93 = vector.shape_cast %92 : vector<1x1x3x64xbf16> to vector<3x64xbf16>
      %c9 = arith.constant 9 : index
      %c0_71 = arith.constant 0 : index
      %c0_72 = arith.constant 0 : index
      %94 = vector.load %arg3[%c9, %c0_71, %c0_72] : memref<16x64x128xbf16, #tpu.memory_space<vmem>>, vector<1x64x128xbf16>
      %95 = vector.shape_cast %94 : vector<1x64x128xbf16> to vector<64x128xbf16>
      %cst_73 = arith.constant dense<0.000000e+00> : vector<3x128xf32>
      %96 = tpu.matmul %93, %95, %cst_73 {dimension_numbers = #tpu.dot_dimension_numbers<[1], [0], [0], [1], [0, 0, 1, 1], [], []>} : vector<3x64xbf16>, vector<64x128xbf16>, vector<3x128xf32> -> vector<3x128xf32>
      %97 = arith.addf %88, %96 : vector<3x128xf32>
      %98 = arith.addi %0, %arg7 : i32
      %c2_i32_74 = arith.constant 2 : i32
      %99 = arith.addi %98, %c2_i32_74 : i32
      %c0_75 = arith.constant 0 : index
      %100 = arith.index_cast %99 : i32 to index
      %c2_76 = arith.constant 2 : index
      %c0_77 = arith.constant 0 : index
      %101 = vector.load %arg2[%c0_75, %100, %c2_76, %c0_77] : memref<1x6x6x64xbf16, #tpu.memory_space<vmem>>, vector<1x1x3x64xbf16>
      %102 = vector.shape_cast %101 : vector<1x1x3x64xbf16> to vector<3x64xbf16>
      %c10 = arith.constant 10 : index
      %c0_78 = arith.constant 0 : index
      %c0_79 = arith.constant 0 : index
      %103 = vector.load %arg3[%c10, %c0_78, %c0_79] : memref<16x64x128xbf16, #tpu.memory_space<vmem>>, vector<1x64x128xbf16>
      %104 = vector.shape_cast %103 : vector<1x64x128xbf16> to vector<64x128xbf16>
      %cst_80 = arith.constant dense<0.000000e+00> : vector<3x128xf32>
      %105 = tpu.matmul %102, %104, %cst_80 {dimension_numbers = #tpu.dot_dimension_numbers<[1], [0], [0], [1], [0, 0, 1, 1], [], []>} : vector<3x64xbf16>, vector<64x128xbf16>, vector<3x128xf32> -> vector<3x128xf32>
      %106 = arith.addf %97, %105 : vector<3x128xf32>
      %107 = arith.addi %0, %arg7 : i32
      %c2_i32_81 = arith.constant 2 : i32
      %108 = arith.addi %107, %c2_i32_81 : i32
      %c0_82 = arith.constant 0 : index
      %109 = arith.index_cast %108 : i32 to index
      %c3_83 = arith.constant 3 : index
      %c0_84 = arith.constant 0 : index
      %110 = vector.load %arg2[%c0_82, %109, %c3_83, %c0_84] : memref<1x6x6x64xbf16, #tpu.memory_space<vmem>>, vector<1x1x3x64xbf16>
      %111 = vector.shape_cast %110 : vector<1x1x3x64xbf16> to vector<3x64xbf16>
      %c11 = arith.constant 11 : index
      %c0_85 = arith.constant 0 : index
      %c0_86 = arith.constant 0 : index
      %112 = vector.load %arg3[%c11, %c0_85, %c0_86] : memref<16x64x128xbf16, #tpu.memory_space<vmem>>, vector<1x64x128xbf16>
      %113 = vector.shape_cast %112 : vector<1x64x128xbf16> to vector<64x128xbf16>
      %cst_87 = arith.constant dense<0.000000e+00> : vector<3x128xf32>
      %114 = tpu.matmul %111, %113, %cst_87 {dimension_numbers = #tpu.dot_dimension_numbers<[1], [0], [0], [1], [0, 0, 1, 1], [], []>} : vector<3x64xbf16>, vector<64x128xbf16>, vector<3x128xf32> -> vector<3x128xf32>
      %115 = arith.addf %106, %114 : vector<3x128xf32>
      %116 = arith.addi %0, %arg7 : i32
      %c3_i32_88 = arith.constant 3 : i32
      %117 = arith.addi %116, %c3_i32_88 : i32
      %c0_89 = arith.constant 0 : index
      %118 = arith.index_cast %117 : i32 to index
      %c0_90 = arith.constant 0 : index
      %c0_91 = arith.constant 0 : index
      %119 = vector.load %arg2[%c0_89, %118, %c0_90, %c0_91] : memref<1x6x6x64xbf16, #tpu.memory_space<vmem>>, vector<1x1x3x64xbf16>
      %120 = vector.shape_cast %119 : vector<1x1x3x64xbf16> to vector<3x64xbf16>
      %c12 = arith.constant 12 : index
      %c0_92 = arith.constant 0 : index
      %c0_93 = arith.constant 0 : index
      %121 = vector.load %arg3[%c12, %c0_92, %c0_93] : memref<16x64x128xbf16, #tpu.memory_space<vmem>>, vector<1x64x128xbf16>
      %122 = vector.shape_cast %121 : vector<1x64x128xbf16> to vector<64x128xbf16>
      %cst_94 = arith.constant dense<0.000000e+00> : vector<3x128xf32>
      %123 = tpu.matmul %120, %122, %cst_94 {dimension_numbers = #tpu.dot_dimension_numbers<[1], [0], [0], [1], [0, 0, 1, 1], [], []>} : vector<3x64xbf16>, vector<64x128xbf16>, vector<3x128xf32> -> vector<3x128xf32>
      %124 = arith.addf %115, %123 : vector<3x128xf32>
      %125 = arith.addi %0, %arg7 : i32
      %c3_i32_95 = arith.constant 3 : i32
      %126 = arith.addi %125, %c3_i32_95 : i32
      %c0_96 = arith.constant 0 : index
      %127 = arith.index_cast %126 : i32 to index
      %c1_97 = arith.constant 1 : index
      %c0_98 = arith.constant 0 : index
      %128 = vector.load %arg2[%c0_96, %127, %c1_97, %c0_98] : memref<1x6x6x64xbf16, #tpu.memory_space<vmem>>, vector<1x1x3x64xbf16>
      %129 = vector.shape_cast %128 : vector<1x1x3x64xbf16> to vector<3x64xbf16>
      %c13 = arith.constant 13 : index
      %c0_99 = arith.constant 0 : index
      %c0_100 = arith.constant 0 : index
      %130 = vector.load %arg3[%c13, %c0_99, %c0_100] : memref<16x64x128xbf16, #tpu.memory_space<vmem>>, vector<1x64x128xbf16>
      %131 = vector.shape_cast %130 : vector<1x64x128xbf16> to vector<64x128xbf16>
      %cst_101 = arith.constant dense<0.000000e+00> : vector<3x128xf32>
      %132 = tpu.matmul %129, %131, %cst_101 {dimension_numbers = #tpu.dot_dimension_numbers<[1], [0], [0], [1], [0, 0, 1, 1], [], []>} : vector<3x64xbf16>, vector<64x128xbf16>, vector<3x128xf32> -> vector<3x128xf32>
      %133 = arith.addf %124, %132 : vector<3x128xf32>
      %134 = arith.addi %0, %arg7 : i32
      %c3_i32_102 = arith.constant 3 : i32
      %135 = arith.addi %134, %c3_i32_102 : i32
      %c0_103 = arith.constant 0 : index
      %136 = arith.index_cast %135 : i32 to index
      %c2_104 = arith.constant 2 : index
      %c0_105 = arith.constant 0 : index
      %137 = vector.load %arg2[%c0_103, %136, %c2_104, %c0_105] : memref<1x6x6x64xbf16, #tpu.memory_space<vmem>>, vector<1x1x3x64xbf16>
      %138 = vector.shape_cast %137 : vector<1x1x3x64xbf16> to vector<3x64xbf16>
      %c14 = arith.constant 14 : index
      %c0_106 = arith.constant 0 : index
      %c0_107 = arith.constant 0 : index
      %139 = vector.load %arg3[%c14, %c0_106, %c0_107] : memref<16x64x128xbf16, #tpu.memory_space<vmem>>, vector<1x64x128xbf16>
      %140 = vector.shape_cast %139 : vector<1x64x128xbf16> to vector<64x128xbf16>
      %cst_108 = arith.constant dense<0.000000e+00> : vector<3x128xf32>
      %141 = tpu.matmul %138, %140, %cst_108 {dimension_numbers = #tpu.dot_dimension_numbers<[1], [0], [0], [1], [0, 0, 1, 1], [], []>} : vector<3x64xbf16>, vector<64x128xbf16>, vector<3x128xf32> -> vector<3x128xf32>
      %142 = arith.addf %133, %141 : vector<3x128xf32>
      %143 = arith.addi %0, %arg7 : i32
      %c3_i32_109 = arith.constant 3 : i32
      %144 = arith.addi %143, %c3_i32_109 : i32
      %c0_110 = arith.constant 0 : index
      %145 = arith.index_cast %144 : i32 to index
      %c3_111 = arith.constant 3 : index
      %c0_112 = arith.constant 0 : index
      %146 = vector.load %arg2[%c0_110, %145, %c3_111, %c0_112] : memref<1x6x6x64xbf16, #tpu.memory_space<vmem>>, vector<1x1x3x64xbf16>
      %147 = vector.shape_cast %146 : vector<1x1x3x64xbf16> to vector<3x64xbf16>
      %c15 = arith.constant 15 : index
      %c0_113 = arith.constant 0 : index
      %c0_114 = arith.constant 0 : index
      %148 = vector.load %arg3[%c15, %c0_113, %c0_114] : memref<16x64x128xbf16, #tpu.memory_space<vmem>>, vector<1x64x128xbf16>
      %149 = vector.shape_cast %148 : vector<1x64x128xbf16> to vector<64x128xbf16>
      %cst_115 = arith.constant dense<0.000000e+00> : vector<3x128xf32>
      %150 = tpu.matmul %147, %149, %cst_115 {dimension_numbers = #tpu.dot_dimension_numbers<[1], [0], [0], [1], [0, 0, 1, 1], [], []>} : vector<3x64xbf16>, vector<64x128xbf16>, vector<3x128xf32> -> vector<3x128xf32>
      %151 = arith.addf %142, %150 : vector<3x128xf32>
      %152 = arith.truncf %151 : vector<3x128xf32> to vector<3x128xbf16>
      %c0_116 = arith.constant 0 : index
      %153 = arith.index_cast %arg7 : i32 to index
      %c0_117 = arith.constant 0 : index
      %c0_118 = arith.constant 0 : index
      %154 = vector.load %arg4[%c0_116, %153, %c0_117, %c0_118] : memref<1x3x3x128xbf16, #tpu.memory_space<vmem>>, vector<1x1x3x128xbf16>
      %155 = vector.shape_cast %154 : vector<1x1x3x128xbf16> to vector<3x128xbf16>
      %156 = vector.shape_cast %152 : vector<3x128xbf16> to vector<1x1x3x128xbf16>
      tpu.vector_store %arg4[%c0_116, %153, %c0_117, %c0_118], %156 {strides = array<i32>} : memref<1x3x3x128xbf16, #tpu.memory_space<vmem>>, vector<1x1x3x128xbf16>,
      %c0_119 = arith.constant 0 : index
      %c0_120 = arith.constant 0 : index
      %157 = vector.load %arg5[%c0_119, %c0_120] : memref<1x128xf32, #tpu.memory_space<vmem>>, vector<1x128xf32>
      %cst_121 = arith.constant dense<0.000000e+00> : vector<128xf32>
      %158 = vector.multi_reduction <add>, %151, %cst_121 [0] : vector<3x128xf32> to vector<128xf32>
      %159 = vector.shape_cast %158 : vector<128xf32> to vector<1x128xf32>
      %160 = arith.addf %157, %159 : vector<1x128xf32>
      %c0_122 = arith.constant 0 : index
      %c0_123 = arith.constant 0 : index
      %161 = vector.load %arg5[%c0_122, %c0_123] : memref<1x128xf32, #tpu.memory_space<vmem>>, vector<1x128xf32>
      tpu.vector_store %arg5[%c0_122, %c0_123], %160 {strides = array<i32>} : memref<1x128xf32, #tpu.memory_space<vmem>>, vector<1x128xf32>,
      %c0_124 = arith.constant 0 : index
      %c0_125 = arith.constant 0 : index
      %162 = vector.load %arg6[%c0_124, %c0_125] : memref<1x128xf32, #tpu.memory_space<vmem>>, vector<1x128xf32>
      %163 = arith.mulf %151, %151 : vector<3x128xf32>
      %cst_126 = arith.constant dense<0.000000e+00> : vector<128xf32>
      %164 = vector.multi_reduction <add>, %163, %cst_126 [0] : vector<3x128xf32> to vector<128xf32>
      %165 = vector.shape_cast %164 : vector<128xf32> to vector<1x128xf32>
      %166 = arith.addf %162, %165 : vector<1x128xf32>
      %c0_127 = arith.constant 0 : index
      %c0_128 = arith.constant 0 : index
      %167 = vector.load %arg6[%c0_127, %c0_128] : memref<1x128xf32, #tpu.memory_space<vmem>>, vector<1x128xf32>
      tpu.vector_store %arg6[%c0_127, %c0_128], %166 {strides = array<i32>} : memref<1x128xf32, #tpu.memory_space<vmem>>, vector<1x128xf32>,
    }
    %c3_i32_4 = arith.constant 3 : i32
    return
  }
  func.func @transform_0(%arg0: i32, %arg1: i32) -> (i32, i32, i32, i32) {
    %c0_i32 = arith.constant 0 : i32
    %c0_i32_0 = arith.constant 0 : i32
    %c0_i32_1 = arith.constant 0 : i32
    %c0_i32_2 = arith.constant 0 : i32
    return %arg0, %c0_i32, %c0_i32_0, %c0_i32_1 : i32, i32, i32, i32
  }
  func.func @transform_1(%arg0: i32, %arg1: i32) -> (i32, i32, i32) {
    %c0_i32 = arith.constant 0 : i32
    %c0_i32_0 = arith.constant 0 : i32
    %c0_i32_1 = arith.constant 0 : i32
    %c0_i32_2 = arith.constant 0 : i32
    return %c0_i32, %c0_i32_0, %c0_i32_1 : i32, i32, i32
  }
  func.func @transform_2(%arg0: i32, %arg1: i32) -> (i32, i32, i32, i32) {
    %c0_i32 = arith.constant 0 : i32
    %c0_i32_0 = arith.constant 0 : i32
    %c0_i32_1 = arith.constant 0 : i32
    return %arg0, %arg1, %c0_i32, %c0_i32_0 : i32, i32, i32, i32
  }
  func.func @transform_3(%arg0: i32, %arg1: i32) -> (i32, i32) {
    %c0_i32 = arith.constant 0 : i32
    %c0_i32_0 = arith.constant 0 : i32
    %c0_i32_1 = arith.constant 0 : i32
    return %c0_i32, %c0_i32_0 : i32, i32
  }
  func.func @transform_4(%arg0: i32, %arg1: i32) -> (i32, i32) {
    %c0_i32 = arith.constant 0 : i32
    %c0_i32_0 = arith.constant 0 : i32
    %c0_i32_1 = arith.constant 0 : i32
    return %c0_i32, %c0_i32_0 : i32, i32
  }
}

module attributes {stable_mosaic.version = 11 : i64} {
  func.func @_conv_tap_kernel(%arg0: i32, %arg1: i32, %arg2: memref<1x5x5x128xbf16, #tpu.memory_space<vmem>>, %arg3: memref<16x128x128xbf16, #tpu.memory_space<vmem>>, %arg4: memref<1x128xf32, #tpu.memory_space<vmem>>, %arg5: memref<1x2x2x128xbf16, #tpu.memory_space<vmem>>) attributes {dimension_semantics = [#tpu.dimension_semantics<parallel>, #tpu.dimension_semantics<parallel>], iteration_bounds = array<i64: 2, 1>, scalar_prefetch = 0 : i64, scratch_operands = 0 : i64, tpu.core_type = #tpu.core_type<tc>, window_params = [{transform_indices = @transform_0, window_bounds = array<i64: 1, 5, 5, 128>}, {pipeline_mode = #tpu.pipeline_mode<synchronous>, transform_indices = @transform_1, window_bounds = array<i64: 16, 128, 128>}, {pipeline_mode = #tpu.pipeline_mode<synchronous>, transform_indices = @transform_2, window_bounds = array<i64: 1, 128>}, {transform_indices = @transform_3, window_bounds = array<i64: 1, 2, 2, 128>}]} {
    %c2_i32 = arith.constant 2 : i32
    %0 = arith.muli %arg1, %c2_i32 : i32
    %c0 = arith.constant 0 : index
    %c0_0 = arith.constant 0 : index
    %1 = vector.load %arg4[%c0, %c0_0] : memref<1x128xf32, #tpu.memory_space<vmem>>, vector<1x128xf32>
    %c0_i32 = arith.constant 0 : i32
    %c2_i32_1 = arith.constant 2 : i32
    %2 = arith.addi %c0_i32, %c2_i32_1 : i32
    %c1_i32 = arith.constant 1 : i32
    scf.for %arg6 = %c0_i32 to %2 step %c1_i32  : i32 {
      %cst = arith.constant 0.000000e+00 : f32
      %3 = vector.broadcast %cst : f32 to vector<2x128xf32>
      %4 = arith.addi %0, %arg6 : i32
      %c0_i32_3 = arith.constant 0 : i32
      %5 = arith.addi %4, %c0_i32_3 : i32
      %c0_4 = arith.constant 0 : index
      %6 = arith.index_cast %5 : i32 to index
      %c0_5 = arith.constant 0 : index
      %c0_6 = arith.constant 0 : index
      %7 = vector.load %arg2[%c0_4, %6, %c0_5, %c0_6] : memref<1x5x5x128xbf16, #tpu.memory_space<vmem>>, vector<1x1x2x128xbf16>
      %8 = vector.shape_cast %7 : vector<1x1x2x128xbf16> to vector<2x128xbf16>
      %c0_7 = arith.constant 0 : index
      %c0_8 = arith.constant 0 : index
      %c0_9 = arith.constant 0 : index
      %9 = vector.load %arg3[%c0_7, %c0_8, %c0_9] : memref<16x128x128xbf16, #tpu.memory_space<vmem>>, vector<1x128x128xbf16>
      %10 = vector.shape_cast %9 : vector<1x128x128xbf16> to vector<128x128xbf16>
      %cst_10 = arith.constant dense<0.000000e+00> : vector<2x128xf32>
      %11 = tpu.matmul %8, %10, %cst_10 {dimension_numbers = #tpu.dot_dimension_numbers<[1], [0], [0], [1], [0, 0, 1, 1], [], []>} : vector<2x128xbf16>, vector<128x128xbf16>, vector<2x128xf32> -> vector<2x128xf32>
      %12 = arith.addf %3, %11 : vector<2x128xf32>
      %13 = arith.addi %0, %arg6 : i32
      %c0_i32_11 = arith.constant 0 : i32
      %14 = arith.addi %13, %c0_i32_11 : i32
      %c0_12 = arith.constant 0 : index
      %15 = arith.index_cast %14 : i32 to index
      %c1 = arith.constant 1 : index
      %c0_13 = arith.constant 0 : index
      %16 = vector.load %arg2[%c0_12, %15, %c1, %c0_13] : memref<1x5x5x128xbf16, #tpu.memory_space<vmem>>, vector<1x1x2x128xbf16>
      %17 = vector.shape_cast %16 : vector<1x1x2x128xbf16> to vector<2x128xbf16>
      %c1_14 = arith.constant 1 : index
      %c0_15 = arith.constant 0 : index
      %c0_16 = arith.constant 0 : index
      %18 = vector.load %arg3[%c1_14, %c0_15, %c0_16] : memref<16x128x128xbf16, #tpu.memory_space<vmem>>, vector<1x128x128xbf16>
      %19 = vector.shape_cast %18 : vector<1x128x128xbf16> to vector<128x128xbf16>
      %cst_17 = arith.constant dense<0.000000e+00> : vector<2x128xf32>
      %20 = tpu.matmul %17, %19, %cst_17 {dimension_numbers = #tpu.dot_dimension_numbers<[1], [0], [0], [1], [0, 0, 1, 1], [], []>} : vector<2x128xbf16>, vector<128x128xbf16>, vector<2x128xf32> -> vector<2x128xf32>
      %21 = arith.addf %12, %20 : vector<2x128xf32>
      %22 = arith.addi %0, %arg6 : i32
      %c0_i32_18 = arith.constant 0 : i32
      %23 = arith.addi %22, %c0_i32_18 : i32
      %c0_19 = arith.constant 0 : index
      %24 = arith.index_cast %23 : i32 to index
      %c2 = arith.constant 2 : index
      %c0_20 = arith.constant 0 : index
      %25 = vector.load %arg2[%c0_19, %24, %c2, %c0_20] : memref<1x5x5x128xbf16, #tpu.memory_space<vmem>>, vector<1x1x2x128xbf16>
      %26 = vector.shape_cast %25 : vector<1x1x2x128xbf16> to vector<2x128xbf16>
      %c2_21 = arith.constant 2 : index
      %c0_22 = arith.constant 0 : index
      %c0_23 = arith.constant 0 : index
      %27 = vector.load %arg3[%c2_21, %c0_22, %c0_23] : memref<16x128x128xbf16, #tpu.memory_space<vmem>>, vector<1x128x128xbf16>
      %28 = vector.shape_cast %27 : vector<1x128x128xbf16> to vector<128x128xbf16>
      %cst_24 = arith.constant dense<0.000000e+00> : vector<2x128xf32>
      %29 = tpu.matmul %26, %28, %cst_24 {dimension_numbers = #tpu.dot_dimension_numbers<[1], [0], [0], [1], [0, 0, 1, 1], [], []>} : vector<2x128xbf16>, vector<128x128xbf16>, vector<2x128xf32> -> vector<2x128xf32>
      %30 = arith.addf %21, %29 : vector<2x128xf32>
      %31 = arith.addi %0, %arg6 : i32
      %c0_i32_25 = arith.constant 0 : i32
      %32 = arith.addi %31, %c0_i32_25 : i32
      %c0_26 = arith.constant 0 : index
      %33 = arith.index_cast %32 : i32 to index
      %c3 = arith.constant 3 : index
      %c0_27 = arith.constant 0 : index
      %34 = vector.load %arg2[%c0_26, %33, %c3, %c0_27] : memref<1x5x5x128xbf16, #tpu.memory_space<vmem>>, vector<1x1x2x128xbf16>
      %35 = vector.shape_cast %34 : vector<1x1x2x128xbf16> to vector<2x128xbf16>
      %c3_28 = arith.constant 3 : index
      %c0_29 = arith.constant 0 : index
      %c0_30 = arith.constant 0 : index
      %36 = vector.load %arg3[%c3_28, %c0_29, %c0_30] : memref<16x128x128xbf16, #tpu.memory_space<vmem>>, vector<1x128x128xbf16>
      %37 = vector.shape_cast %36 : vector<1x128x128xbf16> to vector<128x128xbf16>
      %cst_31 = arith.constant dense<0.000000e+00> : vector<2x128xf32>
      %38 = tpu.matmul %35, %37, %cst_31 {dimension_numbers = #tpu.dot_dimension_numbers<[1], [0], [0], [1], [0, 0, 1, 1], [], []>} : vector<2x128xbf16>, vector<128x128xbf16>, vector<2x128xf32> -> vector<2x128xf32>
      %39 = arith.addf %30, %38 : vector<2x128xf32>
      %40 = arith.addi %0, %arg6 : i32
      %c1_i32_32 = arith.constant 1 : i32
      %41 = arith.addi %40, %c1_i32_32 : i32
      %c0_33 = arith.constant 0 : index
      %42 = arith.index_cast %41 : i32 to index
      %c0_34 = arith.constant 0 : index
      %c0_35 = arith.constant 0 : index
      %43 = vector.load %arg2[%c0_33, %42, %c0_34, %c0_35] : memref<1x5x5x128xbf16, #tpu.memory_space<vmem>>, vector<1x1x2x128xbf16>
      %44 = vector.shape_cast %43 : vector<1x1x2x128xbf16> to vector<2x128xbf16>
      %c4 = arith.constant 4 : index
      %c0_36 = arith.constant 0 : index
      %c0_37 = arith.constant 0 : index
      %45 = vector.load %arg3[%c4, %c0_36, %c0_37] : memref<16x128x128xbf16, #tpu.memory_space<vmem>>, vector<1x128x128xbf16>
      %46 = vector.shape_cast %45 : vector<1x128x128xbf16> to vector<128x128xbf16>
      %cst_38 = arith.constant dense<0.000000e+00> : vector<2x128xf32>
      %47 = tpu.matmul %44, %46, %cst_38 {dimension_numbers = #tpu.dot_dimension_numbers<[1], [0], [0], [1], [0, 0, 1, 1], [], []>} : vector<2x128xbf16>, vector<128x128xbf16>, vector<2x128xf32> -> vector<2x128xf32>
      %48 = arith.addf %39, %47 : vector<2x128xf32>
      %49 = arith.addi %0, %arg6 : i32
      %c1_i32_39 = arith.constant 1 : i32
      %50 = arith.addi %49, %c1_i32_39 : i32
      %c0_40 = arith.constant 0 : index
      %51 = arith.index_cast %50 : i32 to index
      %c1_41 = arith.constant 1 : index
      %c0_42 = arith.constant 0 : index
      %52 = vector.load %arg2[%c0_40, %51, %c1_41, %c0_42] : memref<1x5x5x128xbf16, #tpu.memory_space<vmem>>, vector<1x1x2x128xbf16>
      %53 = vector.shape_cast %52 : vector<1x1x2x128xbf16> to vector<2x128xbf16>
      %c5 = arith.constant 5 : index
      %c0_43 = arith.constant 0 : index
      %c0_44 = arith.constant 0 : index
      %54 = vector.load %arg3[%c5, %c0_43, %c0_44] : memref<16x128x128xbf16, #tpu.memory_space<vmem>>, vector<1x128x128xbf16>
      %55 = vector.shape_cast %54 : vector<1x128x128xbf16> to vector<128x128xbf16>
      %cst_45 = arith.constant dense<0.000000e+00> : vector<2x128xf32>
      %56 = tpu.matmul %53, %55, %cst_45 {dimension_numbers = #tpu.dot_dimension_numbers<[1], [0], [0], [1], [0, 0, 1, 1], [], []>} : vector<2x128xbf16>, vector<128x128xbf16>, vector<2x128xf32> -> vector<2x128xf32>
      %57 = arith.addf %48, %56 : vector<2x128xf32>
      %58 = arith.addi %0, %arg6 : i32
      %c1_i32_46 = arith.constant 1 : i32
      %59 = arith.addi %58, %c1_i32_46 : i32
      %c0_47 = arith.constant 0 : index
      %60 = arith.index_cast %59 : i32 to index
      %c2_48 = arith.constant 2 : index
      %c0_49 = arith.constant 0 : index
      %61 = vector.load %arg2[%c0_47, %60, %c2_48, %c0_49] : memref<1x5x5x128xbf16, #tpu.memory_space<vmem>>, vector<1x1x2x128xbf16>
      %62 = vector.shape_cast %61 : vector<1x1x2x128xbf16> to vector<2x128xbf16>
      %c6 = arith.constant 6 : index
      %c0_50 = arith.constant 0 : index
      %c0_51 = arith.constant 0 : index
      %63 = vector.load %arg3[%c6, %c0_50, %c0_51] : memref<16x128x128xbf16, #tpu.memory_space<vmem>>, vector<1x128x128xbf16>
      %64 = vector.shape_cast %63 : vector<1x128x128xbf16> to vector<128x128xbf16>
      %cst_52 = arith.constant dense<0.000000e+00> : vector<2x128xf32>
      %65 = tpu.matmul %62, %64, %cst_52 {dimension_numbers = #tpu.dot_dimension_numbers<[1], [0], [0], [1], [0, 0, 1, 1], [], []>} : vector<2x128xbf16>, vector<128x128xbf16>, vector<2x128xf32> -> vector<2x128xf32>
      %66 = arith.addf %57, %65 : vector<2x128xf32>
      %67 = arith.addi %0, %arg6 : i32
      %c1_i32_53 = arith.constant 1 : i32
      %68 = arith.addi %67, %c1_i32_53 : i32
      %c0_54 = arith.constant 0 : index
      %69 = arith.index_cast %68 : i32 to index
      %c3_55 = arith.constant 3 : index
      %c0_56 = arith.constant 0 : index
      %70 = vector.load %arg2[%c0_54, %69, %c3_55, %c0_56] : memref<1x5x5x128xbf16, #tpu.memory_space<vmem>>, vector<1x1x2x128xbf16>
      %71 = vector.shape_cast %70 : vector<1x1x2x128xbf16> to vector<2x128xbf16>
      %c7 = arith.constant 7 : index
      %c0_57 = arith.constant 0 : index
      %c0_58 = arith.constant 0 : index
      %72 = vector.load %arg3[%c7, %c0_57, %c0_58] : memref<16x128x128xbf16, #tpu.memory_space<vmem>>, vector<1x128x128xbf16>
      %73 = vector.shape_cast %72 : vector<1x128x128xbf16> to vector<128x128xbf16>
      %cst_59 = arith.constant dense<0.000000e+00> : vector<2x128xf32>
      %74 = tpu.matmul %71, %73, %cst_59 {dimension_numbers = #tpu.dot_dimension_numbers<[1], [0], [0], [1], [0, 0, 1, 1], [], []>} : vector<2x128xbf16>, vector<128x128xbf16>, vector<2x128xf32> -> vector<2x128xf32>
      %75 = arith.addf %66, %74 : vector<2x128xf32>
      %76 = arith.addi %0, %arg6 : i32
      %c2_i32_60 = arith.constant 2 : i32
      %77 = arith.addi %76, %c2_i32_60 : i32
      %c0_61 = arith.constant 0 : index
      %78 = arith.index_cast %77 : i32 to index
      %c0_62 = arith.constant 0 : index
      %c0_63 = arith.constant 0 : index
      %79 = vector.load %arg2[%c0_61, %78, %c0_62, %c0_63] : memref<1x5x5x128xbf16, #tpu.memory_space<vmem>>, vector<1x1x2x128xbf16>
      %80 = vector.shape_cast %79 : vector<1x1x2x128xbf16> to vector<2x128xbf16>
      %c8 = arith.constant 8 : index
      %c0_64 = arith.constant 0 : index
      %c0_65 = arith.constant 0 : index
      %81 = vector.load %arg3[%c8, %c0_64, %c0_65] : memref<16x128x128xbf16, #tpu.memory_space<vmem>>, vector<1x128x128xbf16>
      %82 = vector.shape_cast %81 : vector<1x128x128xbf16> to vector<128x128xbf16>
      %cst_66 = arith.constant dense<0.000000e+00> : vector<2x128xf32>
      %83 = tpu.matmul %80, %82, %cst_66 {dimension_numbers = #tpu.dot_dimension_numbers<[1], [0], [0], [1], [0, 0, 1, 1], [], []>} : vector<2x128xbf16>, vector<128x128xbf16>, vector<2x128xf32> -> vector<2x128xf32>
      %84 = arith.addf %75, %83 : vector<2x128xf32>
      %85 = arith.addi %0, %arg6 : i32
      %c2_i32_67 = arith.constant 2 : i32
      %86 = arith.addi %85, %c2_i32_67 : i32
      %c0_68 = arith.constant 0 : index
      %87 = arith.index_cast %86 : i32 to index
      %c1_69 = arith.constant 1 : index
      %c0_70 = arith.constant 0 : index
      %88 = vector.load %arg2[%c0_68, %87, %c1_69, %c0_70] : memref<1x5x5x128xbf16, #tpu.memory_space<vmem>>, vector<1x1x2x128xbf16>
      %89 = vector.shape_cast %88 : vector<1x1x2x128xbf16> to vector<2x128xbf16>
      %c9 = arith.constant 9 : index
      %c0_71 = arith.constant 0 : index
      %c0_72 = arith.constant 0 : index
      %90 = vector.load %arg3[%c9, %c0_71, %c0_72] : memref<16x128x128xbf16, #tpu.memory_space<vmem>>, vector<1x128x128xbf16>
      %91 = vector.shape_cast %90 : vector<1x128x128xbf16> to vector<128x128xbf16>
      %cst_73 = arith.constant dense<0.000000e+00> : vector<2x128xf32>
      %92 = tpu.matmul %89, %91, %cst_73 {dimension_numbers = #tpu.dot_dimension_numbers<[1], [0], [0], [1], [0, 0, 1, 1], [], []>} : vector<2x128xbf16>, vector<128x128xbf16>, vector<2x128xf32> -> vector<2x128xf32>
      %93 = arith.addf %84, %92 : vector<2x128xf32>
      %94 = arith.addi %0, %arg6 : i32
      %c2_i32_74 = arith.constant 2 : i32
      %95 = arith.addi %94, %c2_i32_74 : i32
      %c0_75 = arith.constant 0 : index
      %96 = arith.index_cast %95 : i32 to index
      %c2_76 = arith.constant 2 : index
      %c0_77 = arith.constant 0 : index
      %97 = vector.load %arg2[%c0_75, %96, %c2_76, %c0_77] : memref<1x5x5x128xbf16, #tpu.memory_space<vmem>>, vector<1x1x2x128xbf16>
      %98 = vector.shape_cast %97 : vector<1x1x2x128xbf16> to vector<2x128xbf16>
      %c10 = arith.constant 10 : index
      %c0_78 = arith.constant 0 : index
      %c0_79 = arith.constant 0 : index
      %99 = vector.load %arg3[%c10, %c0_78, %c0_79] : memref<16x128x128xbf16, #tpu.memory_space<vmem>>, vector<1x128x128xbf16>
      %100 = vector.shape_cast %99 : vector<1x128x128xbf16> to vector<128x128xbf16>
      %cst_80 = arith.constant dense<0.000000e+00> : vector<2x128xf32>
      %101 = tpu.matmul %98, %100, %cst_80 {dimension_numbers = #tpu.dot_dimension_numbers<[1], [0], [0], [1], [0, 0, 1, 1], [], []>} : vector<2x128xbf16>, vector<128x128xbf16>, vector<2x128xf32> -> vector<2x128xf32>
      %102 = arith.addf %93, %101 : vector<2x128xf32>
      %103 = arith.addi %0, %arg6 : i32
      %c2_i32_81 = arith.constant 2 : i32
      %104 = arith.addi %103, %c2_i32_81 : i32
      %c0_82 = arith.constant 0 : index
      %105 = arith.index_cast %104 : i32 to index
      %c3_83 = arith.constant 3 : index
      %c0_84 = arith.constant 0 : index
      %106 = vector.load %arg2[%c0_82, %105, %c3_83, %c0_84] : memref<1x5x5x128xbf16, #tpu.memory_space<vmem>>, vector<1x1x2x128xbf16>
      %107 = vector.shape_cast %106 : vector<1x1x2x128xbf16> to vector<2x128xbf16>
      %c11 = arith.constant 11 : index
      %c0_85 = arith.constant 0 : index
      %c0_86 = arith.constant 0 : index
      %108 = vector.load %arg3[%c11, %c0_85, %c0_86] : memref<16x128x128xbf16, #tpu.memory_space<vmem>>, vector<1x128x128xbf16>
      %109 = vector.shape_cast %108 : vector<1x128x128xbf16> to vector<128x128xbf16>
      %cst_87 = arith.constant dense<0.000000e+00> : vector<2x128xf32>
      %110 = tpu.matmul %107, %109, %cst_87 {dimension_numbers = #tpu.dot_dimension_numbers<[1], [0], [0], [1], [0, 0, 1, 1], [], []>} : vector<2x128xbf16>, vector<128x128xbf16>, vector<2x128xf32> -> vector<2x128xf32>
      %111 = arith.addf %102, %110 : vector<2x128xf32>
      %112 = arith.addi %0, %arg6 : i32
      %c3_i32 = arith.constant 3 : i32
      %113 = arith.addi %112, %c3_i32 : i32
      %c0_88 = arith.constant 0 : index
      %114 = arith.index_cast %113 : i32 to index
      %c0_89 = arith.constant 0 : index
      %c0_90 = arith.constant 0 : index
      %115 = vector.load %arg2[%c0_88, %114, %c0_89, %c0_90] : memref<1x5x5x128xbf16, #tpu.memory_space<vmem>>, vector<1x1x2x128xbf16>
      %116 = vector.shape_cast %115 : vector<1x1x2x128xbf16> to vector<2x128xbf16>
      %c12 = arith.constant 12 : index
      %c0_91 = arith.constant 0 : index
      %c0_92 = arith.constant 0 : index
      %117 = vector.load %arg3[%c12, %c0_91, %c0_92] : memref<16x128x128xbf16, #tpu.memory_space<vmem>>, vector<1x128x128xbf16>
      %118 = vector.shape_cast %117 : vector<1x128x128xbf16> to vector<128x128xbf16>
      %cst_93 = arith.constant dense<0.000000e+00> : vector<2x128xf32>
      %119 = tpu.matmul %116, %118, %cst_93 {dimension_numbers = #tpu.dot_dimension_numbers<[1], [0], [0], [1], [0, 0, 1, 1], [], []>} : vector<2x128xbf16>, vector<128x128xbf16>, vector<2x128xf32> -> vector<2x128xf32>
      %120 = arith.addf %111, %119 : vector<2x128xf32>
      %121 = arith.addi %0, %arg6 : i32
      %c3_i32_94 = arith.constant 3 : i32
      %122 = arith.addi %121, %c3_i32_94 : i32
      %c0_95 = arith.constant 0 : index
      %123 = arith.index_cast %122 : i32 to index
      %c1_96 = arith.constant 1 : index
      %c0_97 = arith.constant 0 : index
      %124 = vector.load %arg2[%c0_95, %123, %c1_96, %c0_97] : memref<1x5x5x128xbf16, #tpu.memory_space<vmem>>, vector<1x1x2x128xbf16>
      %125 = vector.shape_cast %124 : vector<1x1x2x128xbf16> to vector<2x128xbf16>
      %c13 = arith.constant 13 : index
      %c0_98 = arith.constant 0 : index
      %c0_99 = arith.constant 0 : index
      %126 = vector.load %arg3[%c13, %c0_98, %c0_99] : memref<16x128x128xbf16, #tpu.memory_space<vmem>>, vector<1x128x128xbf16>
      %127 = vector.shape_cast %126 : vector<1x128x128xbf16> to vector<128x128xbf16>
      %cst_100 = arith.constant dense<0.000000e+00> : vector<2x128xf32>
      %128 = tpu.matmul %125, %127, %cst_100 {dimension_numbers = #tpu.dot_dimension_numbers<[1], [0], [0], [1], [0, 0, 1, 1], [], []>} : vector<2x128xbf16>, vector<128x128xbf16>, vector<2x128xf32> -> vector<2x128xf32>
      %129 = arith.addf %120, %128 : vector<2x128xf32>
      %130 = arith.addi %0, %arg6 : i32
      %c3_i32_101 = arith.constant 3 : i32
      %131 = arith.addi %130, %c3_i32_101 : i32
      %c0_102 = arith.constant 0 : index
      %132 = arith.index_cast %131 : i32 to index
      %c2_103 = arith.constant 2 : index
      %c0_104 = arith.constant 0 : index
      %133 = vector.load %arg2[%c0_102, %132, %c2_103, %c0_104] : memref<1x5x5x128xbf16, #tpu.memory_space<vmem>>, vector<1x1x2x128xbf16>
      %134 = vector.shape_cast %133 : vector<1x1x2x128xbf16> to vector<2x128xbf16>
      %c14 = arith.constant 14 : index
      %c0_105 = arith.constant 0 : index
      %c0_106 = arith.constant 0 : index
      %135 = vector.load %arg3[%c14, %c0_105, %c0_106] : memref<16x128x128xbf16, #tpu.memory_space<vmem>>, vector<1x128x128xbf16>
      %136 = vector.shape_cast %135 : vector<1x128x128xbf16> to vector<128x128xbf16>
      %cst_107 = arith.constant dense<0.000000e+00> : vector<2x128xf32>
      %137 = tpu.matmul %134, %136, %cst_107 {dimension_numbers = #tpu.dot_dimension_numbers<[1], [0], [0], [1], [0, 0, 1, 1], [], []>} : vector<2x128xbf16>, vector<128x128xbf16>, vector<2x128xf32> -> vector<2x128xf32>
      %138 = arith.addf %129, %137 : vector<2x128xf32>
      %139 = arith.addi %0, %arg6 : i32
      %c3_i32_108 = arith.constant 3 : i32
      %140 = arith.addi %139, %c3_i32_108 : i32
      %c0_109 = arith.constant 0 : index
      %141 = arith.index_cast %140 : i32 to index
      %c3_110 = arith.constant 3 : index
      %c0_111 = arith.constant 0 : index
      %142 = vector.load %arg2[%c0_109, %141, %c3_110, %c0_111] : memref<1x5x5x128xbf16, #tpu.memory_space<vmem>>, vector<1x1x2x128xbf16>
      %143 = vector.shape_cast %142 : vector<1x1x2x128xbf16> to vector<2x128xbf16>
      %c15 = arith.constant 15 : index
      %c0_112 = arith.constant 0 : index
      %c0_113 = arith.constant 0 : index
      %144 = vector.load %arg3[%c15, %c0_112, %c0_113] : memref<16x128x128xbf16, #tpu.memory_space<vmem>>, vector<1x128x128xbf16>
      %145 = vector.shape_cast %144 : vector<1x128x128xbf16> to vector<128x128xbf16>
      %cst_114 = arith.constant dense<0.000000e+00> : vector<2x128xf32>
      %146 = tpu.matmul %143, %145, %cst_114 {dimension_numbers = #tpu.dot_dimension_numbers<[1], [0], [0], [1], [0, 0, 1, 1], [], []>} : vector<2x128xbf16>, vector<128x128xbf16>, vector<2x128xf32> -> vector<2x128xf32>
      %147 = arith.addf %138, %146 : vector<2x128xf32>
      %148 = vector.broadcast %1 : vector<1x128xf32> to vector<2x128xf32>
      %149 = arith.addf %147, %148 : vector<2x128xf32>
      %150 = arith.truncf %149 : vector<2x128xf32> to vector<2x128xbf16>
      %c0_115 = arith.constant 0 : index
      %151 = arith.index_cast %arg6 : i32 to index
      %c0_116 = arith.constant 0 : index
      %c0_117 = arith.constant 0 : index
      %152 = vector.load %arg5[%c0_115, %151, %c0_116, %c0_117] : memref<1x2x2x128xbf16, #tpu.memory_space<vmem>>, vector<1x1x2x128xbf16>
      %153 = vector.shape_cast %152 : vector<1x1x2x128xbf16> to vector<2x128xbf16>
      %154 = vector.shape_cast %150 : vector<2x128xbf16> to vector<1x1x2x128xbf16>
      tpu.vector_store %arg5[%c0_115, %151, %c0_116, %c0_117], %154 {strides = array<i32>} : memref<1x2x2x128xbf16, #tpu.memory_space<vmem>>, vector<1x1x2x128xbf16>,
    }
    %c2_i32_2 = arith.constant 2 : i32
    return
  }
  func.func @transform_0(%arg0: i32, %arg1: i32) -> (i32, i32, i32, i32) {
    %c0_i32 = arith.constant 0 : i32
    %c0_i32_0 = arith.constant 0 : i32
    %c0_i32_1 = arith.constant 0 : i32
    %c0_i32_2 = arith.constant 0 : i32
    return %arg0, %c0_i32, %c0_i32_0, %c0_i32_1 : i32, i32, i32, i32
  }
  func.func @transform_1(%arg0: i32, %arg1: i32) -> (i32, i32, i32) {
    %c0_i32 = arith.constant 0 : i32
    %c0_i32_0 = arith.constant 0 : i32
    %c0_i32_1 = arith.constant 0 : i32
    %c0_i32_2 = arith.constant 0 : i32
    return %c0_i32, %c0_i32_0, %c0_i32_1 : i32, i32, i32
  }
  func.func @transform_2(%arg0: i32, %arg1: i32) -> (i32, i32) {
    %c0_i32 = arith.constant 0 : i32
    %c0_i32_0 = arith.constant 0 : i32
    %c0_i32_1 = arith.constant 0 : i32
    return %c0_i32, %c0_i32_0 : i32, i32
  }
  func.func @transform_3(%arg0: i32, %arg1: i32) -> (i32, i32, i32, i32) {
    %c0_i32 = arith.constant 0 : i32
    %c0_i32_0 = arith.constant 0 : i32
    %c0_i32_1 = arith.constant 0 : i32
    return %arg0, %arg1, %c0_i32, %c0_i32_0 : i32, i32, i32, i32
  }
}

</mosaic_0001>

<bundles_post_ra>
// kernel: _lambda_.8
= control target key start
LH: loop header
LB: loop body
LE: loop exit
PB: predicated region body
PF: predicated region fallthrough
CT: control target
= control target key end

     0   :  { %s1814_s12 = smov 0   ;;  %s1816_s13 = smov 0   ;;  %s2032_s0 = inlined_call_operand.vmem [shape: bf16[8,17,17,4], index: 0, kind: input, shape index: {}]   ;;  %s2033_s1 = inlined_call_operand.vmem [shape: bf16[16,4,16], index: 1, kind: input, shape index: {}]   ;;  %s2034_s2 = inlined_call_operand.vmem [shape: f32[1,16], index: 2, kind: input, shape index: {}]   ;;  %s2035_s3 = inlined_call_operand.vmem [shape: bf16[2,16,16,16], index: 3, kind: output, shape index: {}]  }
   0x1   :  { %s1818_s14 = smov 0  }
   0x2 LB: > { %s25_s15 = sadd.s32 1, %s1782_s13  ;;  %p1459_p0 = scmp.ge.s32.totalorder %s1786_s14, 1  ;;  %s1786_s14 = sphi %s1818_s14, %s13_s14   ;;  %s1782_s13 = sphi %s1816_s13, %s2037_s13   ;;  %s1778_s12 = sphi %s1814_s12, %s2036_s12  }
   0x3   : > { %p27_p1 = scmp.ge.s32.totalorder %s25_s15, 2  ;;  %p153_p2 = scmp.lt.s32.totalorder %s1786_s14, 3 }
   0x5   : > { %s2039_s15 = smov (%p27_p1, %s25_s15), 0  ;;  %p154_p3 = pnand %p1459_p0, %p153_p2 }
   0x6   : > { %s1460_s16 = sshll.u32 (!%p154_p3), %s1778_s12, 2  ;;  %p191_p4 = scmp.lt.s32.totalorder (!%p154_p3), %s1778_s12, 1  ;;  %v1835_v0 = vld [vmem:[%s2034_s2] ss:$0 sm:$0xff] (!%p154_p3) }
   0x7   : > { %157 = sbr.rel (%p154_p3) target bundleno = 306 (0x132), region = 32  ;;  %p184_p5 = scmp.lt.s32.totalorder (!%p154_p3), %s1460_s16, 7 }
   0x8   : > { %s1847_s27 = smov (!%p154_p3), 0  }
   0xe   : > { %s2041_s12 = smov (!%p191_p4, %s1778_s12), 1  ;;  %s2043_s16 = smov (!%p184_p5, %s1460_s16), 7 }
   0xf   : > { %s1568_s19 = sshll.u32 %s2041_s12, 7  ;;  %s1701_s20 = smul.u32 204, %s2043_s16 }
  0x10   : > { %s1840_s23 = scalar_lea.vmem %s2035_s3, %s1568_s19 }
  0x11   : > { %s1845_s26 = scalar_lea.vmem %s2032_s0, %s1701_s20 }
  0x12 LB: >> { %v1468_v1 = vld [vmem:[%s2033_s1 + $0x2] sm:$0x3]  ;;  %vm233_vm0 = vcmask 1041408   ;;  %v216_v2 = vld [vmem:[%s2033_s1] sm:$0x3]  ;;  %v1792_v3 = vmov 0.0   ;;  %s1790_s27 = sphi %s1847_s27, %s209_s27  }
  0x13   : >> { %1605 = vmatprep.subr.bf16.mxu0 %v1792_v3  ;;  %v235_v4 = vsel %vm233_vm0, %v1468_v1, 0  ;;  %1611 = vmatprep.subr.bf16.mxu1 %v1792_v3  ;;  %v287_v5 = vsel %vm233_vm0, %v216_v2, 0  ;;  %s1569_s5 = smul.u32 12, %s1790_s27  ;;  %v1473_v6 = vld [vmem:[%s2033_s1 + $0x4] sm:$0x3]  ;;  %vm1793_vm1 = vmmov 0  }
  0x14   : >> { %1606 = vmatpush3.bf16.msra.mxu0 %v235_v4  ;;  %1612 = vmatpush3.bf16.msra.mxu1 %v287_v5  ;;  %v1480_v7 = vld [vmem:[%s2033_s1 + $0x6] sm:$0x3]  ;;  %vm229_vm2 = vcmask 31744   ;;  %v360_v9 = vsel %vm233_vm0, %v1473_v6, 0  ;;  %vm343_vm3 = vsmask.f32 7424 }
  0x15   : >> { %1607 = vmatprep.mubr.msk.bf16.mxu0 %vm1793_vm1, %v1792_v3  ;;  %1613 = vmatprep.mubr.msk.bf16.mxu1 %vm1793_vm1, %v1792_v3  ;;  %s1875_s10 = scalar_lea.vmem %s1845_s26, %s1569_s5  ;;  %v434_v11 = vsel %vm233_vm0, %v1480_v7, 0  ;;  %v1487_v19 = vld [vmem:[%s2033_s1 + $0x8] sm:$0x3]  ;;  %v1493_v22 = vld [vmem:[%s2033_s1 + $0xa] sm:$0x3]  ;;  %vm1313_vm4 = vcmask 125952  }
  0x16   : >> { %1617 = vmatprep.subr.bf16.mxu0 %v1792_v3  ;;  %1623 = vmatprep.subr.bf16.mxu1 %v1792_v3  ;;  %v1736_v8 = vld [vmem:[%s1875_s10 + $0xcc] sm:$0xff]   ;;  %v1737_v10 = vld [vmem:[%s1875_s10] sm:$0xff]   ;;  %v1739_v13 = vld [vmem:[%s1875_s10 + $0x8] ss:$0 sps:$4 sm:$0x11]   ;;  %v495_v31 = vsel %vm233_vm0, %v1487_v19, 0 }
  0x17   : >> { %1608 = vmatmul.mubr.msk.bf16.vlgmr.msra.gmra.mrb[0].mxu0 %vm229_vm2, %v1736_v8  ;;  %1614 = vmatmul.mubr.msk.bf16.vlgmr.msra.gmra.mrb[0].mxu1 %vm229_vm2, %v1737_v10  ;;  %v1738_v12 = vld [vmem:[%s1875_s10] sm:$0xff]   ;;  %v1740_v14 = vld [vmem:[%s1875_s10 + $0xcc] sm:$0xff]   ;;  %v352_v17 = vshll.u32 %v1739_v13, 16  ;;  %v1741_v18 = vld [vmem:[%s1875_s10 + $0xd4] ss:$0 sps:$4 sm:$0x11]  }
  0x18   : >> { %1618 = vmatpush3.bf16.msra.mxu0 %v360_v9  ;;  %1624 = vmatpush3.bf16.msra.mxu1 %v434_v11  ;;  %v345_v15 = vshrl.u32 %v1738_v12, 16  ;;  %v347_v16 = vshll.u32 %v1738_v12, 16  ;;  %v419_v20 = vshrl.u32 %v1740_v14, 16  ;;  %v421_v21 = vshll.u32 %v1740_v14, 16  ;;  %v1744_v29 = vld [vmem:[%s1875_s10 + $0x198] sm:$0xff]   ;;  %v1746_v32 = vld [vmem:[%s1875_s10 + $0x264] sm:$0xff]  }
  0x19   : >> { %1619 = vmatprep.mubr.msk.bf16.mxu0 %vm1793_vm1, %v1792_v3  ;;  %1625 = vmatprep.mubr.msk.bf16.mxu1 %vm1793_vm1, %v1792_v3  ;;  %v354_v24 = vrot.slane %v352_v17, 1  ;;  %v426_v25 = vshll.u32 %v1741_v18, 16  ;;  %v556_v34 = vsel %vm233_vm0, %v1493_v22, 0  ;;  %v1499_v36 = vld [vmem:[%s2033_s1 + $0xc] sm:$0x3]  ;;  %v617_v38 = vshll.u32 %v1744_v29, 16 }
  0x1a   : >> { %1629 = vmatprep.subr.bf16.mxu0 %v1792_v3  ;;  %1635 = vmatprep.subr.bf16.mxu1 %v1792_v3  ;;  %v349_v23 = vrot.slane %v347_v16, 1  ;;  %v423_v26 = vrot.slane %v421_v21, 1  ;;  %v1745_v37 = vld [vmem:[%s1875_s10 + $0x1a0] ss:$0 sps:$4 sm:$0x11]   ;;  %v691_v40 = vshll.u32 %v1746_v32, 16 }
  0x1b   : >> { %v428_v28 = vrot.slane %v426_v25, 1  ;;  %v1747_v39 = vld [vmem:[%s1875_s10 + $0x26c] ss:$0 sps:$4 sm:$0x11]   ;;  %v1506_v41 = vld [vmem:[%s2033_s1 + $0xe] sm:$0x3] }
  0x1c   : >> { %v350_v27 = vor.u32 %v349_v23, %v345_v15  ;;  %v424_v30 = vor.u32 %v423_v26, %v419_v20  ;;  %v1742_v42 = vld [vmem:[%s1875_s10 + $0x198] sm:$0xff]   ;;  %v1743_v43 = vld [vmem:[%s1875_s10 + $0x264] sm:$0xff]   ;;  %v630_v44 = vsel %vm233_vm0, %v1499_v36, 0  ;;  %v615_v45 = vshrl.u32 %v1744_v29, 16  ;;  %v1512_v56 = vld [vmem:[%s2033_s1 + $0x10] sm:$0x3] }
  0x1d   : >> { %v619_v46 = vrot.slane %v617_v38, 1  ;;  %v622_v47 = vshll.u32 %v1745_v37, 16  ;;  %v689_v48 = vshrl.u32 %v1746_v32, 16  ;;  %v693_v49 = vrot.slane %v691_v40, 1  ;;  %v1518_v57 = vld [vmem:[%s2033_s1 + $0x12] sm:$0x3] }
  0x1e   : >> { %v355_v33 = vsel %vm343_vm3, %v350_v27, %v354_v24  ;;  %v429_v35 = vsel %vm343_vm3, %v424_v30, %v428_v28  ;;  %v696_v50 = vshll.u32 %v1747_v39, 16  ;;  %v704_v51 = vsel %vm233_vm0, %v1506_v41, 0  ;;  %v1750_v59 = vld [vmem:[%s1875_s10 + $0xc] sm:$0xff]   ;;  %v1752_v62 = vld [vmem:[%s1875_s10 + $0xd8] sm:$0xff]   ;;  %v1524_v6 = vld [vmem:[%s2033_s1 + $0x14] sm:$0x3] }
  0x1f   : >> { %1620 = vmatmul.mubr.msk.bf16.vlgmr.msra.gmra.mrb[4].mxu0 %vm229_vm2, %v355_v33  ;;  %1626 = vmatmul.mubr.msk.bf16.vlgmr.msra.gmra.mrb[4].mxu1 %vm229_vm2, %v429_v35  ;;  %v620_v52 = vor.u32 %v619_v46, %v615_v45  ;;  %v624_v53 = vrot.slane %v622_v47, 1  ;;  %v694_v54 = vor.u32 %v693_v49, %v689_v48  ;;  %v766_v61 = vsel %vm233_vm0, %v1512_v56, 0  ;;  %v1751_v1 = vld [vmem:[%s1875_s10 + $0x14] ss:$0 sps:$4 sm:$0x11]   ;;  %v1748_v7 = vld [vmem:[%s1875_s10 + $0xc] sm:$0xff]  }
  0x20   : >> { %1630 = vmatpush3.bf16.msra.mxu0 %v495_v31  ;;  %1636 = vmatpush3.bf16.msra.mxu1 %v556_v34  ;;  %v698_v55 = vrot.slane %v696_v50, 1  ;;  %v827_v63 = vsel %vm233_vm0, %v1518_v57, 0  ;;  %v888_v2 = vshll.u32 %v1750_v59, 16  ;;  %v1753_v4 = vld [vmem:[%s1875_s10 + $0xe0] ss:$0 sps:$4 sm:$0x11]  }
  0x21   : >> { %1631 = vmatprep.mubr.msk.bf16.mxu0 %vm1793_vm1, %v1792_v3  ;;  %1637 = vmatprep.mubr.msk.bf16.mxu1 %vm1793_vm1, %v1792_v3  ;;  %v625_v58 = vsel %vm343_vm3, %v620_v52, %v624_v53  ;;  %v962_v5 = vshll.u32 %v1752_v62, 16  ;;  %v1531_v8 = vld [vmem:[%s2033_s1 + $0x16] sm:$0x3]  ;;  %v1749_v9 = vld [vmem:[%s1875_s10 + $0xd8] sm:$0xff]   ;;  %v886_v10 = vshrl.u32 %v1750_v59, 16  ;;  %v893_v12 = vshll.u32 %v1751_v1, 16 }
  0x22   : >> { %1641 = vmatprep.subr.bf16.mxu0 %v1792_v3  ;;  %1647 = vmatprep.subr.bf16.mxu1 %v1792_v3  ;;  %v699_v60 = vsel %vm343_vm3, %v694_v54, %v698_v55  ;;  %v890_v11 = vrot.slane %v888_v2, 1  ;;  %v901_v13 = vsel %vm233_vm0, %v1524_v6, 0  ;;  %v960_v14 = vshrl.u32 %v1752_v62, 16  ;;  %v1538_v22 = vld [vmem:[%s2033_s1 + $0x18] sm:$0x3]  ;;  %v1756_v25 = vld [vmem:[%s1875_s10 + $0x1a4] sm:$0xff]  }
  0x23   : >> { %v964_v15 = vrot.slane %v962_v5, 1  ;;  %v967_v16 = vshll.u32 %v1753_v4, 16  ;;  %v975_v17 = vsel %vm233_vm0, %v1531_v8, 0  ;;  %v895_v19 = vrot.slane %v893_v12, 1  ;;  %v1544_v23 = vld [vmem:[%s2033_s1 + $0x1a] sm:$0x3] }
  0x24   : >> { %v891_v18 = vor.u32 %v890_v11, %v886_v10  ;;  %v1036_v27 = vsel %vm233_vm0, %v1538_v22, 0  ;;  %v1758_v28 = vld [vmem:[%s1875_s10 + $0x270] sm:$0xff]   ;;  %v1097_v29 = vsel %vm233_vm0, %v1544_v23, 0  ;;  %v1757_v30 = vld [vmem:[%s1875_s10 + $0x1ac] ss:$0 sps:$4 sm:$0x11]  }
  0x25   : >> { %v965_v20 = vor.u32 %v964_v15, %v960_v14  ;;  %v969_v21 = vrot.slane %v967_v16, 1  ;;  %v1158_v31 = vshll.u32 %v1756_v25, 16  ;;  %v1759_v32 = vld [vmem:[%s1875_s10 + $0x278] ss:$0 sps:$4 sm:$0x11]   ;;  %v1232_v33 = vshll.u32 %v1758_v28, 16 }
  0x26   : >> { %v896_v24 = vsel %vm343_vm3, %v891_v18, %v895_v19  ;;  %v1550_v34 = vld [vmem:[%s2033_s1 + $0x1c] sm:$0x3]  ;;  %v1754_v35 = vld [vmem:[%s1875_s10 + $0x1a4] sm:$0xff]   ;;  %v1557_v36 = vld [vmem:[%s2033_s1 + $0x1e] sm:$0x3]  ;;  %v1156_v38 = vshrl.u32 %v1756_v25, 16 }
  0x27   : >> { %1632 = vmatmul.mubr.msk.bf16.vlgmr.msra.gmra.mrb[8].mxu0 %vm229_vm2, %v1742_v42  ;;  %1638 = vmatmul.mubr.msk.bf16.vlgmr.msra.gmra.mrb[8].mxu1 %vm229_vm2, %v1743_v43  ;;  %v970_v26 = vsel %vm343_vm3, %v965_v20, %v969_v21  ;;  %v1755_v37 = vld [vmem:[%s1875_s10 + $0x270] sm:$0xff]   ;;  %v1160_v39 = vrot.slane %v1158_v31, 1  ;;  %v1163_v40 = vshll.u32 %v1757_v30, 16  ;;  %v1171_v41 = vsel %vm233_vm0, %v1550_v34, 0  ;;  %s1572_s10 = sshll.u32 %s1790_s27, 3  ;;  %s209_s27 = sadd.s32 1, %s1790_s27  }
  0x28   : >> { %1642 = vmatpush3.bf16.msra.mxu0 %v630_v44  ;;  %1648 = vmatpush3.bf16.msra.mxu1 %v704_v51  ;;  %v1230_v42 = vshrl.u32 %v1758_v28, 16  ;;  %v1234_v43 = vrot.slane %v1232_v33, 1  ;;  %v1237_v44 = vshll.u32 %v1759_v32, 16  ;;  %v1245_v45 = vsel %vm233_vm0, %v1557_v36, 0  ;;  %s1312_s18 = scalar_lea.vmem %s1840_s23, %s1572_s10  ;;  %p206_p6 = scmp.ge.s32.totalorder %s209_s27, 16  }
  0x29   : >> { %1643 = vmatprep.mubr.msk.bf16.mxu0 %vm1793_vm1, %v1792_v3  ;;  %1649 = vmatprep.mubr.msk.bf16.mxu1 %vm1793_vm1, %v1792_v3  ;;  %v1161_v46 = vor.u32 %v1160_v39, %v1156_v38  ;;  %v1165_v47 = vrot.slane %v1163_v40, 1 }
  0x2a   : >> { %1653 = vmatprep.subr.bf16.mxu0 %v1792_v3  ;;  %1659 = vmatprep.subr.bf16.mxu1 %v1792_v3  ;;  %v1235_v48 = vor.u32 %v1234_v43, %v1230_v42  ;;  %v1239_v49 = vrot.slane %v1237_v44, 1 }
  0x2b   : >> { %v1166_v50 = vsel %vm343_vm3, %v1161_v46, %v1165_v47 }
  0x2c   : >> { %v1240_v51 = vsel %vm343_vm3, %v1235_v48, %v1239_v49 }
  0x2f   : >> { %1644 = vmatmul.mubr.msk.bf16.vlgmr.msra.gmra.mrb[12].mxu0 %vm229_vm2, %v625_v58  ;;  %1650 = vmatmul.mubr.msk.bf16.vlgmr.msra.gmra.mrb[12].mxu1 %vm229_vm2, %v699_v60 }
  0x30   : >> { %1654 = vmatpush3.bf16.msra.mxu0 %v766_v61  ;;  %1660 = vmatpush3.bf16.msra.mxu1 %v827_v63 }
  0x31   : >> { %1655 = vmatprep.mubr.msk.bf16.mxu0 %vm1793_vm1, %v1792_v3  ;;  %1661 = vmatprep.mubr.msk.bf16.mxu1 %vm1793_vm1, %v1792_v3 }
  0x32   : >> { %1665 = vmatprep.subr.bf16.mxu0 %v1792_v3  ;;  %1671 = vmatprep.subr.bf16.mxu1 %v1792_v3 }
  0x37   : >> { %1656 = vmatmul.mubr.msk.bf16.vlgmr.msra.gmra.mrb[16].mxu0 %vm229_vm2, %v1748_v7  ;;  %1662 = vmatmul.mubr.msk.bf16.vlgmr.msra.gmra.mrb[16].mxu1 %vm229_vm2, %v1749_v9 }
  0x38   : >> { %1666 = vmatpush3.bf16.msra.mxu0 %v901_v13  ;;  %1672 = vmatpush3.bf16.msra.mxu1 %v975_v17 }
  0x39   : >> { %1667 = vmatprep.mubr.msk.bf16.mxu0 %vm1793_vm1, %v1792_v3  ;;  %1673 = vmatprep.mubr.msk.bf16.mxu1 %vm1793_vm1, %v1792_v3 }
  0x3a   : >> { %1677 = vmatprep.subr.bf16.mxu0 %v1792_v3  ;;  %1683 = vmatprep.subr.bf16.mxu1 %v1792_v3 }
  0x3f   : >> { %1668 = vmatmul.mubr.msk.bf16.vlgmr.msra.gmra.mrb[20].mxu0 %vm229_vm2, %v896_v24  ;;  %1674 = vmatmul.mubr.msk.bf16.vlgmr.msra.gmra.mrb[20].mxu1 %vm229_vm2, %v970_v26 }
  0x40   : >> { %1678 = vmatpush3.bf16.msra.mxu0 %v1036_v27  ;;  %1684 = vmatpush3.bf16.msra.mxu1 %v1097_v29 }
  0x41   : >> { %1679 = vmatprep.mubr.msk.bf16.mxu0 %vm1793_vm1, %v1792_v3  ;;  %1685 = vmatprep.mubr.msk.bf16.mxu1 %vm1793_vm1, %v1792_v3 }
  0x42   : >> { %1689 = vmatprep.subr.bf16.mxu0 %v1792_v3  ;;  %1695 = vmatprep.subr.bf16.mxu1 %v1792_v3 }
  0x47   : >> { %1680 = vmatmul.mubr.msk.bf16.vlgmr.msra.gmra.mrb[24].mxu0 %vm229_vm2, %v1754_v35  ;;  %1686 = vmatmul.mubr.msk.bf16.vlgmr.msra.gmra.mrb[24].mxu1 %vm229_vm2, %v1755_v37 }
  0x48   : >> { %1690 = vmatpush3.bf16.msra.mxu0 %v1171_v41  ;;  %1696 = vmatpush3.bf16.msra.mxu1 %v1245_v45 }
  0x49   : >> { %1691 = vmatprep.mubr.msk.bf16.mxu0 %vm1793_vm1, %v1792_v3  ;;  %1697 = vmatprep.mubr.msk.bf16.mxu1 %vm1793_vm1, %v1792_v3 }
  0x4f   : >> { %1692 = vmatmul.mubr.msk.bf16.vlgmr.msra.gmra.mrb[28].mxu0 %vm229_vm2, %v1166_v50  ;;  %1698 = vmatmul.mubr.msk.bf16.vlgmr.msra.gmra.mrb[28].mxu1 %vm229_vm2, %v1240_v51 }
  0xea   : >> { %v271_v52 = vpop.f32.mrb[0].mxu0  ;;  %v323_v53 = vpop.f32.mrb[0].mxu1 }
  0xeb   : >> { %v1609_v54 = vpop.f32.mrb[1].mxu0  ;;  %v324_v55 = vadd.f32 %v323_v53, %v271_v52  ;;  %v1615_v56 = vpop.f32.mrb[1].mxu1 }
  0xec   : >> { %v274_v57 = vpop.f32.mrb[2].mxu0  ;;  %v326_v58 = vpop.f32.mrb[2].mxu1 }
  0xed   : >> { %v1610_v59 = vpop.f32.mrb[3].mxu0  ;;  %v327_v60 = vadd.f32 %v326_v58, %v274_v57  ;;  %v1616_v61 = vpop.f32.mrb[3].mxu1 }
  0xf2   : >> { %v396_v62 = vpop.f32.mrb[4].mxu0  ;;  %v470_v63 = vpop.f32.mrb[4].mxu1 }
  0xf3   : >> { %v403_v3 = vadd.f32 %v396_v62, %v324_v55  ;;  %v1621_v1 = vpop.f32.mrb[5].mxu0  ;;  %v1627_v2 = vpop.f32.mrb[5].mxu1 }
  0xf4   : >> { %v399_v4 = vpop.f32.mrb[6].mxu0  ;;  %v473_v7 = vpop.f32.mrb[6].mxu1 }
  0xf5   : >> { %v477_v5 = vadd.f32 %v470_v63, %v403_v3  ;;  %v404_v6 = vadd.f32 %v399_v4, %v327_v60  ;;  %v1622_v8 = vpop.f32.mrb[7].mxu0  ;;  %v1628_v9 = vpop.f32.mrb[7].mxu1 }
  0xf7   : >> { %v478_v10 = vadd.f32 %v473_v7, %v404_v6 }
  0xfa   : >> { %v531_v11 = vpop.f32.mrb[8].mxu0  ;;  %v592_v13 = vpop.f32.mrb[8].mxu1 }
  0xfb   : >> { %v538_v12 = vadd.f32 %v531_v11, %v477_v5  ;;  %v1633_v14 = vpop.f32.mrb[9].mxu0  ;;  %v1639_v15 = vpop.f32.mrb[9].mxu1 }
  0xfc   : >> { %v534_v16 = vpop.f32.mrb[10].mxu0  ;;  %v595_v19 = vpop.f32.mrb[10].mxu1 }
  0xfd   : >> { %v599_v17 = vadd.f32 %v592_v13, %v538_v12  ;;  %v539_v18 = vadd.f32 %v534_v16, %v478_v10  ;;  %v1634_v20 = vpop.f32.mrb[11].mxu0  ;;  %v1640_v21 = vpop.f32.mrb[11].mxu1 }
  0xff   : >> { %v600_v22 = vadd.f32 %v595_v19, %v539_v18 }
 0x102   : >> { %v666_v23 = vpop.f32.mrb[12].mxu0  ;;  %v740_v25 = vpop.f32.mrb[12].mxu1 }
 0x103   : >> { %v673_v24 = vadd.f32 %v666_v23, %v599_v17  ;;  %v1645_v26 = vpop.f32.mrb[13].mxu0  ;;  %v1651_v27 = vpop.f32.mrb[13].mxu1 }
 0x104   : >> { %v669_v28 = vpop.f32.mrb[14].mxu0  ;;  %v743_v31 = vpop.f32.mrb[14].mxu1 }
 0x105   : >> { %v747_v29 = vadd.f32 %v740_v25, %v673_v24  ;;  %v674_v30 = vadd.f32 %v669_v28, %v600_v22  ;;  %v1646_v32 = vpop.f32.mrb[15].mxu0  ;;  %v1652_v33 = vpop.f32.mrb[15].mxu1 }
 0x107   : >> { %v748_v34 = vadd.f32 %v743_v31, %v674_v30 }
 0x10a   : >> { %v802_v35 = vpop.f32.mrb[16].mxu0  ;;  %v863_v37 = vpop.f32.mrb[16].mxu1 }
 0x10b   : >> { %v809_v36 = vadd.f32 %v802_v35, %v747_v29  ;;  %v1657_v38 = vpop.f32.mrb[17].mxu0  ;;  %v1663_v39 = vpop.f32.mrb[17].mxu1 }
 0x10c   : >> { %v805_v40 = vpop.f32.mrb[18].mxu0  ;;  %v866_v43 = vpop.f32.mrb[18].mxu1 }
 0x10d   : >> { %v870_v41 = vadd.f32 %v863_v37, %v809_v36  ;;  %v810_v42 = vadd.f32 %v805_v40, %v748_v34  ;;  %v1658_v44 = vpop.f32.mrb[19].mxu0  ;;  %v1664_v45 = vpop.f32.mrb[19].mxu1 }
 0x10f   : >> { %v871_v46 = vadd.f32 %v866_v43, %v810_v42 }
 0x112   : >> { %v937_v47 = vpop.f32.mrb[20].mxu0  ;;  %v1011_v49 = vpop.f32.mrb[20].mxu1 }
 0x113   : >> { %v944_v48 = vadd.f32 %v937_v47, %v870_v41  ;;  %v1669_v50 = vpop.f32.mrb[21].mxu0  ;;  %v1675_v51 = vpop.f32.mrb[21].mxu1 }
 0x114   : >> { %v940_v52 = vpop.f32.mrb[22].mxu0  ;;  %v1014_v55 = vpop.f32.mrb[22].mxu1 }
 0x115   : >> { %v1018_v53 = vadd.f32 %v1011_v49, %v944_v48  ;;  %v945_v54 = vadd.f32 %v940_v52, %v871_v46  ;;  %v1670_v56 = vpop.f32.mrb[23].mxu0  ;;  %v1676_v57 = vpop.f32.mrb[23].mxu1 }
 0x117   : >> { %v1019_v58 = vadd.f32 %v1014_v55, %v945_v54 }
 0x11a   : >> { %v1072_v59 = vpop.f32.mrb[24].mxu0  ;;  %v1133_v61 = vpop.f32.mrb[24].mxu1 }
 0x11b   : >> { %v1079_v60 = vadd.f32 %v1072_v59, %v1018_v53  ;;  %v1681_v62 = vpop.f32.mrb[25].mxu0  ;;  %v1687_v3 = vpop.f32.mrb[25].mxu1 }
 0x11c   : >> { %v1075_v63 = vpop.f32.mrb[26].mxu0  ;;  %v1136_v4 = vpop.f32.mrb[26].mxu1 }
 0x11d   : >> { %v1140_v1 = vadd.f32 %v1133_v61, %v1079_v60  ;;  %v1080_v2 = vadd.f32 %v1075_v63, %v1019_v58  ;;  %v1682_v5 = vpop.f32.mrb[27].mxu0  ;;  %v1688_v6 = vpop.f32.mrb[27].mxu1 }
 0x11f   : >> { %v1141_v7 = vadd.f32 %v1136_v4, %v1080_v2 }
 0x122   : >> { %v1207_v8 = vpop.f32.mrb[28].mxu0  ;;  %v1281_v10 = vpop.f32.mrb[28].mxu1 }
 0x123   : >> { %v1214_v9 = vadd.f32 %v1207_v8, %v1140_v1  ;;  %v1693_v11 = vpop.f32.mrb[29].mxu0  ;;  %v1699_v12 = vpop.f32.mrb[29].mxu1 }
 0x124   : >> { %v1210_v13 = vpop.f32.mrb[30].mxu0  ;;  %v1284_v16 = vpop.f32.mrb[30].mxu1 }
 0x125   : >> { %v1288_v14 = vadd.f32 %v1281_v10, %v1214_v9  ;;  %v1215_v15 = vadd.f32 %v1210_v13, %v1141_v7  ;;  %v1694_v17 = vpop.f32.mrb[31].mxu0  ;;  %v1700_v18 = vpop.f32.mrb[31].mxu1 }
 0x127   : >> { %v1296_v19 = vadd.f32 %v1835_v0, %v1288_v14  ;;  %v1289_v20 = vadd.f32 %v1284_v16, %v1215_v15 }
 0x129   : >> { %v1298_v21 = vmul.f32 0.2, %v1296_v19  ;;  %v1297_v22 = vadd.f32 %v1835_v0, %v1289_v20 }
 0x12b   : >> { %v1300_v23 = vmax.f32 %v1296_v19, %v1298_v21  ;;  %v1299_v24 = vmul.f32 0.2, %v1297_v22  ;;  %208 = sbr.rel (!%p206_p6) target bundleno = 18 (0x12), region = 93 }
 0x12d   : >> { %v1570_v25 = vpack.c.bf16 %v1300_v23, %v1300_v23  ;;  %v1301_v26 = vmax.f32 %v1297_v22, %v1299_v24 }
 0x12f   : >> { %1314 = vst.msk [vmem:[%s1312_s18] sm:$0xf] %vm1313_vm4, %v1570_v25  ;;  %v1571_v27 = vpack.c.bf16 %v1301_v26, %v1301_v26 }
 0x131   : >> { %1315 = vst.msk [vmem:[%s1312_s18 + $0x4] sm:$0xf] %vm1313_vm4, %v1571_v27 }
 0x132 PF: > { %s13_s14 = sadd.s32 1, %s1786_s14   ;;  %s2036_s12 = smov %s1782_s13 }
 0x133   : > { %p10_p7 = scmp.ge.s32.totalorder %s13_s14, 4   ;;  %s2037_s13 = smov %s2039_s15 }
 0x135   :  { %12 = sbr.rel (!%p10_p7) target bundleno = 2 (0x2), region = 104 }

// kernel: _lambda_.10
= control target key start
LH: loop header
LB: loop body
LE: loop exit
PB: predicated region body
PF: predicated region fallthrough
CT: control target
= control target key end

     0   :  { %s478_s12 = smov 0   ;;  %s480_s13 = smov 0   ;;  %s532_s0 = inlined_call_operand.vmem [shape: bf16[2,8,8,32], index: 0, kind: input, shape index: {}]   ;;  %s533_s1 = inlined_call_operand.vmem [shape: f32[1,32], index: 1, kind: input, shape index: {}]   ;;  %s534_s2 = inlined_call_operand.vmem [shape: f32[1,32], index: 2, kind: input, shape index: {}]   ;;  %s535_s3 = inlined_call_operand.vmem [shape: bf16[2,8,8,32], index: 3, kind: output, shape index: {}]  }
   0x1   :  { %s482_s14 = smov 0  }
   0x2 LB: > { %s25_s15 = sadd.s32 1, %s452_s13  ;;  %p380_p0 = scmp.ge.s32.totalorder %s456_s14, 1  ;;  %s456_s14 = sphi %s482_s14, %s13_s14   ;;  %s452_s13 = sphi %s480_s13, %s537_s13   ;;  %s448_s12 = sphi %s478_s12, %s536_s12  }
   0x3   : > { %p27_p1 = scmp.ge.s32.totalorder %s25_s15, 2  ;;  %p158_p2 = scmp.lt.s32.totalorder %s456_s14, 3 }
   0x5   : > { %s539_s15 = smov (%p27_p1, %s25_s15), 0  ;;  %p159_p3 = pnand %p380_p0, %p158_p2 }
   0x6   : > { %p191_p4 = scmp.lt.s32.totalorder (!%p159_p3), %s448_s12, 1  ;;  %v385_v0 = vld [vmem:[%s533_s1] ss:$0 sm:$0xff] (!%p159_p3)  ;;  %vm280_vm0 = vcmask (!%p159_p3), 257024  }
   0x7   : > { %162 = sbr.rel (%p159_p3) target bundleno = 34 (0x22), region = 32  ;;  %v386_v9 = vld [vmem:[%s534_s2] ss:$0 sm:$0xff] (!%p159_p3) }
   0xe   : > { %s541_s12 = smov (!%p191_p4, %s448_s12), 1 }
   0xf   : > { %s389_s16 = sshll.u32 %s541_s12, 5 }
  0x10   : > { %s198_s19 = scalar_lea.vmem %s532_s0, %s389_s16  ;;  %s208_s26 = scalar_lea.vmem %s535_s3, %s389_s16 }
  0x11   : > { %v392_v1 = vld [vmem:[%s198_s19] sm:$0xff]   ;;  %v407_v2 = vld [vmem:[%s198_s19 + $0x8] sm:$0xff]   ;;  %v408_v3 = vld [vmem:[%s198_s19 + $0x10] sm:$0xff]  }
  0x12   : > { %v393_v4 = vunpack.c.l.bf16 %v392_v1  ;;  %v394_v5 = vunpack.c.h.bf16 %v392_v1  ;;  %v397_v6 = vunpack.c.l.bf16 %v407_v2  ;;  %v398_v7 = vunpack.c.h.bf16 %v407_v2  ;;  %v409_v8 = vld [vmem:[%s198_s19 + $0x18] sm:$0xff]  }
  0x13   : > { %v401_v10 = vunpack.c.l.bf16 %v408_v3  ;;  %v402_v11 = vunpack.c.h.bf16 %v408_v3  ;;  %v405_v12 = vunpack.c.l.bf16 %v409_v8  ;;  %v406_v13 = vunpack.c.h.bf16 %v409_v8 }
  0x14   : > { %v233_v14 = vmul.f32 %v393_v4, %v385_v0  ;;  %v234_v15 = vmul.f32 %v394_v5, %v385_v0  ;;  %v235_v16 = vmul.f32 %v397_v6, %v385_v0  ;;  %v236_v17 = vmul.f32 %v398_v7, %v385_v0 }
  0x15   : > { %v237_v18 = vmul.f32 %v401_v10, %v385_v0  ;;  %v238_v19 = vmul.f32 %v402_v11, %v385_v0  ;;  %v239_v20 = vmul.f32 %v405_v12, %v385_v0  ;;  %v240_v21 = vmul.f32 %v406_v13, %v385_v0 }
  0x16   : > { %v248_v22 = vadd.f32 %v386_v9, %v233_v14  ;;  %v249_v23 = vadd.f32 %v386_v9, %v234_v15  ;;  %v250_v24 = vadd.f32 %v386_v9, %v235_v16  ;;  %v251_v25 = vadd.f32 %v386_v9, %v236_v17 }
  0x17   : > { %v252_v26 = vadd.f32 %v386_v9, %v237_v18  ;;  %v253_v27 = vadd.f32 %v386_v9, %v238_v19  ;;  %v254_v28 = vadd.f32 %v386_v9, %v239_v20  ;;  %v255_v29 = vadd.f32 %v386_v9, %v240_v21 }
  0x18   : > { %v256_v30 = vmul.f32 0.2, %v248_v22  ;;  %v257_v31 = vmul.f32 0.2, %v249_v23  ;;  %v258_v32 = vmul.f32 0.2, %v250_v24 }
  0x19   : > { %v259_v33 = vmul.f32 0.2, %v251_v25  ;;  %v260_v34 = vmul.f32 0.2, %v252_v26  ;;  %v261_v35 = vmul.f32 0.2, %v253_v27 }
  0x1a   : > { %v264_v36 = vmax.f32 %v248_v22, %v256_v30  ;;  %v265_v37 = vmax.f32 %v249_v23, %v257_v31  ;;  %v266_v38 = vmax.f32 %v250_v24, %v258_v32  ;;  %v262_v39 = vmul.f32 0.2, %v254_v28 }
  0x1b   : > { %v267_v40 = vmax.f32 %v251_v25, %v259_v33  ;;  %v268_v41 = vmax.f32 %v252_v26, %v260_v34  ;;  %v269_v42 = vmax.f32 %v253_v27, %v261_v35  ;;  %v263_v43 = vmul.f32 0.2, %v255_v29 }
  0x1c   : > { %v272_v44 = vpack.c.bf16 %v264_v36, %v264_v36  ;;  %v273_v45 = vpack.c.bf16 %v265_v37, %v265_v37  ;;  %v274_v46 = vpack.c.bf16 %v266_v38, %v266_v38  ;;  %v270_v47 = vmax.f32 %v254_v28, %v262_v39 }
  0x1d   : > { %v275_v48 = vpack.c.bf16 %v267_v40, %v267_v40  ;;  %v276_v49 = vpack.c.bf16 %v268_v41, %v268_v41  ;;  %v277_v50 = vpack.c.bf16 %v269_v42, %v269_v42  ;;  %v271_v51 = vmax.f32 %v255_v29, %v263_v43 }
  0x1e   : > { %281 = vst.msk [vmem:[%s208_s26] sm:$0xf] %vm280_vm0, %v272_v44  ;;  %282 = vst.msk [vmem:[%s208_s26 + $0x4] sm:$0xf] %vm280_vm0, %v273_v45  ;;  %v278_v52 = vpack.c.bf16 %v270_v47, %v270_v47 }
  0x1f   : > { %283 = vst.msk [vmem:[%s208_s26 + $0x8] sm:$0xf] %vm280_vm0, %v274_v46  ;;  %284 = vst.msk [vmem:[%s208_s26 + $0xc] sm:$0xf] %vm280_vm0, %v275_v48  ;;  %v279_v53 = vpack.c.bf16 %v271_v51, %v271_v51 }
  0x20   : > { %285 = vst.msk [vmem:[%s208_s26 + $0x10] sm:$0xf] %vm280_vm0, %v276_v49  ;;  %286 = vst.msk [vmem:[%s208_s26 + $0x14] sm:$0xf] %vm280_vm0, %v277_v50 }
  0x21   : > { %287 = vst.msk [vmem:[%s208_s26 + $0x18] sm:$0xf] %vm280_vm0, %v278_v52  ;;  %288 = vst.msk [vmem:[%s208_s26 + $0x1c] sm:$0xf] %vm280_vm0, %v279_v53 }
  0x22 PF: > { %s13_s14 = sadd.s32 1, %s456_s14   ;;  %s536_s12 = smov %s452_s13 }
  0x23   : > { %p10_p5 = scmp.ge.s32.totalorder %s13_s14, 4   ;;  %s537_s13 = smov %s539_s15 }
  0x25   :  { %12 = sbr.rel (!%p10_p5) target bundleno = 2 (0x2), region = 62 }

// kernel: _lambda_.9
= control target key start
LH: loop header
LB: loop body
LE: loop exit
PB: predicated region body
PF: predicated region fallthrough
CT: control target
= control target key end

     0   :  { %s1836_s15 = smov 0   ;;  %s1838_s16 = smov 0   ;;  %s2033_s0 = inlined_call_operand.vmem [shape: bf16[8,9,9,16], index: 0, kind: input, shape index: {}]   ;;  %s2034_s1 = inlined_call_operand.vmem [shape: bf16[16,16,32], index: 1, kind: input, shape index: {}]   ;;  %s2035_s2 = inlined_call_operand.vmem [shape: bf16[2,8,8,32], index: 2, kind: output, shape index: {0}]   ;;  %s2036_s3 = inlined_call_operand.vmem [shape: f32[1,32], index: 3, kind: output, shape index: {1}]   ;;  %s2037_s4 = inlined_call_operand.vmem [shape: f32[1,32], index: 4, kind: output, shape index: {2}]  }
   0x1   :  { %s1840_s17 = smov 0  }
   0x2 LB: > { %s27_s18 = sadd.s32 1, %s1798_s16  ;;  %p1407_p0 = scmp.ge.s32.totalorder %s1802_s17, 1  ;;  %s1802_s17 = sphi %s1840_s17, %s15_s17   ;;  %s1798_s16 = sphi %s1838_s16, %s2039_s16   ;;  %s1794_s15 = sphi %s1836_s15, %s2038_s15  }
   0x3   : > { %p29_p1 = scmp.ge.s32.totalorder %s27_s18, 2  ;;  %p173_p2 = scmp.lt.s32.totalorder %s1802_s17, 3 }
   0x5   : > { %s2041_s18 = smov (%p29_p1, %s27_s18), 0  ;;  %p174_p3 = pnand %p1407_p0, %p173_p2 }
   0x6   : > { %s1408_s19 = sshll.u32 (!%p174_p3), %s1794_s15, 2  ;;  %p212_p4 = scmp.lt.s32.totalorder (!%p174_p3), %s1794_s15, 1 }
   0x7   : > { %177 = sbr.rel (%p174_p3) target bundleno = 346 (0x15a), region = 28  ;;  %p205_p5 = scmp.lt.s32.totalorder (!%p174_p3), %s1408_s19, 7 }
   0x8   : > { %p223_p6 = scmp.eq.s32.totalorder (!%p174_p3), %s1794_s15, 0 }
   0xe   : > { %s2043_s15 = smov (!%p212_p4, %s1794_s15), 1  ;;  %s2045_s19 = smov (!%p205_p5, %s1408_s19), 7 }
   0xf   : > { %s1522_s20 = sshll.u32 %s2043_s15, 5  ;;  %s1716_s21 = smul.u32 72, %s2045_s19  ;;  %vm229_vm0 = vcmask (%p223_p6), 253952   ;;  %v1808_v0 = vmov (%p223_p6), 0.0  }
  0x10   : > { %s1857_s24 = scalar_lea.vmem %s2035_s2, %s1522_s20  ;;  %228 = sbr.rel (!%p223_p6) target bundleno = 23 (0x17), region = 32  ;;  %230 = vst.msk [vmem:[%s2036_s3] sm:$0x1] (%p223_p6), %vm229_vm0, %v1808_v0  ;;  %231 = vst.msk [vmem:[%s2037_s4] sm:$0x1] (%p223_p6), %vm229_vm0, %v1808_v0 }
  0x11   : > { %s1862_s27 = scalar_lea.vmem %s2033_s0, %s1716_s21 }
  0x17 PF: > { %s1870_s6 = smov 0  }
  0x18 LB: >> { %v1752_v1 = vld [vmem:[%s2034_s1 + $0x8] sm:$0xff]   ;;  %v1809_v2 = vmov 0.0   ;;  %v1753_v3 = vld [vmem:[%s2034_s1 + $0x40] sm:$0xff]   ;;  %vm1810_vm1 = vmmov 0   ;;  %s1524_s11 = sshll.u32 %s1806_s6, 3  ;;  %vm258_vm2 = vcmask 130048   ;;  %s1806_s6 = sphi %s1870_s6, %s237_s6  }
  0x19   : >> { %1563 = vmatprep.subr.bf16.mxu1 %v1809_v2  ;;  %1611 = vmatprep.subr.bf16.mxu0 %v1809_v2  ;;  %s1889_s12 = scalar_lea.vmem %s1862_s27, %s1524_s11  ;;  %v1754_v4 = vld [vmem:[%s2034_s1] sm:$0xff]   ;;  %v1755_v7 = vld [vmem:[%s2034_s1 + $0x48] sm:$0xff]   ;;  %v1756_v10 = vld [vmem:[%s2034_s1 + $0x10] sm:$0xff]   ;;  %vm1236_vm3 = vcmask 261120   ;;  %vm1233_vm4 = vcmask 257024   ;;  %vm1245_vm5 = vcmask 253952  }
  0x1a   : >> { %1564 = vmatpush3.bf16.msra.mxu1 %v1752_v1  ;;  %1565 = vmatprep.mubr.msk.bf16.mxu1 %vm1810_vm1, %v1809_v2  ;;  %v1417_v5 = vld [vmem:[%s1889_s12 + $0x48] sm:$0xf]  ;;  %v242_v8 = vld [vmem:[%s1889_s12] sm:$0xf]  ;;  %v1472_v9 = vld [vmem:[%s1889_s12 + $0x50] sm:$0xf] }
  0x1b   : >> { %1612 = vmatpush3.bf16.msra.mxu0 %v1753_v3  ;;  %1613 = vmatprep.mubr.msk.bf16.mxu0 %vm1810_vm1, %v1809_v2  ;;  %v1465_v6 = vld [vmem:[%s1889_s12 + $0x8] sm:$0xf]  ;;  %v1758_v11 = vld [vmem:[%s1889_s12] sm:$0x1f]   ;;  %v1757_v13 = vld [vmem:[%s2034_s1 + $0x50] sm:$0xff]  }
  0x1c   : >> { %1569 = vmatprep.subr.bf16.mxu1 %v1809_v2  ;;  %1617 = vmatprep.subr.bf16.mxu0 %v1809_v2  ;;  %v1759_v12 = vld [vmem:[%s1889_s12 + $0x8] sm:$0x1f]   ;;  %v364_v14 = vshll.u32 %v1758_v11, 16  ;;  %v362_v16 = vshrl.u32 %v1758_v11, 16  ;;  %v1760_v21 = vld [vmem:[%s2034_s1 + $0x18] sm:$0xff]   ;;  %v1764_v34 = vld [vmem:[%s2034_s1 + $0x20] sm:$0xff]  }
  0x1d   : >> { %1566 = vmatmul.mubr.msk.bf16.vlgmr.msra.gmra.mrb[0].mxu1 %vm258_vm2, %v1417_v5  ;;  %v861_v15 = vshll.u32 %v1759_v12, 16  ;;  %v859_v18 = vshrl.u32 %v1759_v12, 16  ;;  %v1762_v22 = vld [vmem:[%s1889_s12 + $0x48] sm:$0x1f]   ;;  %v1763_v24 = vld [vmem:[%s1889_s12 + $0x50] sm:$0x1f]  }
  0x1e   : >> { %1614 = vmatmul.mubr.msk.bf16.vlgmr.msra.gmra.mrb[0].mxu0 %vm258_vm2, %v1465_v6  ;;  %1570 = vmatpush3.bf16.msra.mxu1 %v1754_v4  ;;  %v366_v17 = vrot.slane %v364_v14, 1  ;;  %v1761_v25 = vld [vmem:[%s2034_s1 + $0x58] sm:$0xff]   ;;  %v431_v26 = vshll.u32 %v1762_v22, 16  ;;  %v928_v27 = vshll.u32 %v1763_v24, 16  ;;  %v429_v28 = vshrl.u32 %v1762_v22, 16  ;;  %v1765_v35 = vld [vmem:[%s2034_s1 + $0x60] sm:$0xff]  }
  0x1f   : >> { %1618 = vmatpush3.bf16.msra.mxu0 %v1755_v7  ;;  %1571 = vmatprep.mubr.msk.bf16.mxu1 %vm1810_vm1, %v1809_v2  ;;  %v863_v19 = vrot.slane %v861_v15, 1  ;;  %v926_v30 = vshrl.u32 %v1763_v24, 16  ;;  %v1438_v36 = vld [vmem:[%s1889_s12 + $0x90] sm:$0xf]  ;;  %v1766_v37 = vld [vmem:[%s2034_s1 + $0x28] sm:$0xff]   ;;  %v1772_v55 = vld [vmem:[%s2034_s1 + $0x38] sm:$0xff]  }
  0x20   : >> { %1619 = vmatprep.mubr.msk.bf16.mxu0 %vm1810_vm1, %v1809_v2  ;;  %1575 = vmatprep.subr.bf16.mxu1 %v1809_v2  ;;  %v367_v20 = vor.u32 %v366_v17, %v362_v16  ;;  %v433_v29 = vrot.slane %v431_v26, 1  ;;  %v930_v31 = vrot.slane %v928_v27, 1  ;;  %v1493_v38 = vld [vmem:[%s1889_s12 + $0x98] sm:$0xf]  ;;  %v1767_v39 = vld [vmem:[%s2034_s1 + $0x68] sm:$0xff]   ;;  %v1768_v42 = vld [vmem:[%s2034_s1 + $0x30] sm:$0xff]  }
  0x21   : >> { %1623 = vmatprep.subr.bf16.mxu0 %v1809_v2  ;;  %v864_v23 = vor.u32 %v863_v19, %v859_v18  ;;  %v1770_v40 = vld [vmem:[%s1889_s12 + $0x90] sm:$0x1f]   ;;  %v1445_v41 = vld [vmem:[%s1889_s12 + $0xd8] sm:$0xf]  ;;  %v1500_v44 = vld [vmem:[%s1889_s12 + $0xe0] sm:$0xf] }
  0x22   : >> { %v434_v32 = vor.u32 %v433_v29, %v429_v28  ;;  %v931_v33 = vor.u32 %v930_v31, %v926_v30  ;;  %v1771_v43 = vld [vmem:[%s1889_s12 + $0x98] sm:$0x1f]   ;;  %v1769_v45 = vld [vmem:[%s2034_s1 + $0x70] sm:$0xff]   ;;  %v612_v46 = vshll.u32 %v1770_v40, 16  ;;  %v610_v48 = vshrl.u32 %v1770_v40, 16 }
  0x23   : >> { %v1109_v47 = vshll.u32 %v1771_v43, 16  ;;  %v1107_v50 = vshrl.u32 %v1771_v43, 16  ;;  %v1774_v53 = vld [vmem:[%s1889_s12 + $0xd8] sm:$0x1f]   ;;  %v1775_v56 = vld [vmem:[%s1889_s12 + $0xe0] sm:$0x1f]  }
  0x24   : >> { %v614_v49 = vrot.slane %v612_v46, 1  ;;  %v1773_v57 = vld [vmem:[%s2034_s1 + $0x78] sm:$0xff]   ;;  %v679_v58 = vshll.u32 %v1774_v53, 16  ;;  %v1176_v59 = vshll.u32 %v1775_v56, 16  ;;  %v677_v60 = vshrl.u32 %v1774_v53, 16  ;;  %s1519_s12 = sshll.u32 %s1806_s6, 2 }
  0x25   : >> { %v1111_v51 = vrot.slane %v1109_v47, 1  ;;  %v1174_v62 = vshrl.u32 %v1775_v56, 16  ;;  %s1232_s26 = scalar_lea.vmem %s1857_s24, %s1519_s12  ;;  %v1235_v24 = vld [vmem:[%s2036_s3] sm:$0x1]  ;;  %s237_s6 = sadd.s32 1, %s1806_s6  }
  0x26   : >> { %v615_v52 = vor.u32 %v614_v49, %v610_v48  ;;  %v681_v61 = vrot.slane %v679_v58, 1  ;;  %v1178_v63 = vrot.slane %v1176_v59, 1  ;;  %v1247_v27 = vld [vmem:[%s2037_s4] sm:$0x1]  ;;  %p234_p7 = scmp.ge.s32.totalorder %s237_s6, 8  }
  0x27   : >> { %v1112_v54 = vor.u32 %v1111_v51, %v1107_v50 }
  0x28   : >> { %v682_v0 = vor.u32 %v681_v61, %v677_v60  ;;  %v1179_v1 = vor.u32 %v1178_v63, %v1174_v62 }
  0x29   : >> { %1572 = vmatmul.mubr.msk.bf16.vlgmr.msra.gmra.mrb[0].mxu1 %vm258_vm2, %v242_v8 }
  0x2a   : >> { %1620 = vmatmul.mubr.msk.bf16.vlgmr.msra.gmra.mrb[0].mxu0 %vm258_vm2, %v1472_v9  ;;  %1576 = vmatpush3.bf16.msra.mxu1 %v1756_v10 }
  0x2b   : >> { %1624 = vmatpush3.bf16.msra.mxu0 %v1757_v13  ;;  %1577 = vmatprep.mubr.msk.bf16.mxu1 %vm1810_vm1, %v1809_v2 }
  0x2c   : >> { %1625 = vmatprep.mubr.msk.bf16.mxu0 %vm1810_vm1, %v1809_v2  ;;  %1581 = vmatprep.subr.bf16.mxu1 %v1809_v2 }
  0x2d   : >> { %1629 = vmatprep.subr.bf16.mxu0 %v1809_v2 }
  0x35   : >> { %1578 = vmatmul.mubr.msk.bf16.vlgmr.msra.gmra.mrb[0].mxu1 %vm258_vm2, %v367_v20 }
  0x36   : >> { %1626 = vmatmul.mubr.msk.bf16.vlgmr.msra.gmra.mrb[0].mxu0 %vm258_vm2, %v864_v23  ;;  %1582 = vmatpush3.bf16.msra.mxu1 %v1760_v21 }
  0x37   : >> { %1630 = vmatpush3.bf16.msra.mxu0 %v1761_v25  ;;  %1583 = vmatprep.mubr.msk.bf16.mxu1 %vm1810_vm1, %v1809_v2 }
  0x38   : >> { %1631 = vmatprep.mubr.msk.bf16.mxu0 %vm1810_vm1, %v1809_v2  ;;  %1587 = vmatprep.subr.bf16.mxu1 %v1809_v2 }
  0x39   : >> { %1635 = vmatprep.subr.bf16.mxu0 %v1809_v2 }
  0x41   : >> { %1584 = vmatmul.mubr.msk.bf16.vlgmr.msra.gmra.mrb[0].mxu1 %vm258_vm2, %v434_v32 }
  0x42   : >> { %1632 = vmatmul.mubr.msk.bf16.vlgmr.msra.gmra.mrb[0].mxu0 %vm258_vm2, %v931_v33  ;;  %1588 = vmatpush3.bf16.msra.mxu1 %v1764_v34 }
  0x43   : >> { %1636 = vmatpush3.bf16.msra.mxu0 %v1765_v35  ;;  %1589 = vmatprep.mubr.msk.bf16.mxu1 %vm1810_vm1, %v1809_v2 }
  0x44   : >> { %1637 = vmatprep.mubr.msk.bf16.mxu0 %vm1810_vm1, %v1809_v2  ;;  %1593 = vmatprep.subr.bf16.mxu1 %v1809_v2 }
  0x45   : >> { %1641 = vmatprep.subr.bf16.mxu0 %v1809_v2 }
  0x4d   : >> { %1590 = vmatmul.mubr.msk.bf16.vlgmr.msra.gmra.mrb[0].mxu1 %vm258_vm2, %v1438_v36 }
  0x4e   : >> { %1638 = vmatmul.mubr.msk.bf16.vlgmr.msra.gmra.mrb[0].mxu0 %vm258_vm2, %v1493_v38  ;;  %1594 = vmatpush3.bf16.msra.mxu1 %v1766_v37 }
  0x4f   : >> { %1642 = vmatpush3.bf16.msra.mxu0 %v1767_v39  ;;  %1595 = vmatprep.mubr.msk.bf16.mxu1 %vm1810_vm1, %v1809_v2 }
  0x50   : >> { %1643 = vmatprep.mubr.msk.bf16.mxu0 %vm1810_vm1, %v1809_v2  ;;  %1599 = vmatprep.subr.bf16.mxu1 %v1809_v2 }
  0x51   : >> { %1647 = vmatprep.subr.bf16.mxu0 %v1809_v2 }
  0x59   : >> { %1596 = vmatmul.mubr.msk.bf16.vlgmr.msra.gmra.mrb[0].mxu1 %vm258_vm2, %v1445_v41 }
  0x5a   : >> { %1644 = vmatmul.mubr.msk.bf16.vlgmr.msra.gmra.mrb[0].mxu0 %vm258_vm2, %v1500_v44  ;;  %1600 = vmatpush3.bf16.msra.mxu1 %v1768_v42 }
  0x5b   : >> { %1648 = vmatpush3.bf16.msra.mxu0 %v1769_v45  ;;  %1601 = vmatprep.mubr.msk.bf16.mxu1 %vm1810_vm1, %v1809_v2 }
  0x5c   : >> { %1649 = vmatprep.mubr.msk.bf16.mxu0 %vm1810_vm1, %v1809_v2  ;;  %1605 = vmatprep.subr.bf16.mxu1 %v1809_v2 }
  0x5d   : >> { %1653 = vmatprep.subr.bf16.mxu0 %v1809_v2 }
  0x65   : >> { %1602 = vmatmul.mubr.msk.bf16.vlgmr.msra.gmra.mrb[0].mxu1 %vm258_vm2, %v615_v52 }
  0x66   : >> { %1650 = vmatmul.mubr.msk.bf16.vlgmr.msra.gmra.mrb[0].mxu0 %vm258_vm2, %v1112_v54  ;;  %1606 = vmatpush3.bf16.msra.mxu1 %v1772_v55 }
  0x67   : >> { %1654 = vmatpush3.bf16.msra.mxu0 %v1773_v57  ;;  %1607 = vmatprep.mubr.msk.bf16.mxu1 %vm1810_vm1, %v1809_v2 }
  0x68   : >> { %1655 = vmatprep.mubr.msk.bf16.mxu0 %vm1810_vm1, %v1809_v2 }
  0x71   : >> { %1608 = vmatmul.mubr.msk.bf16.vlgmr.msra.gmra.mrb[0].mxu1 %vm258_vm2, %v682_v0 }
  0x72   : >> { %1656 = vmatmul.mubr.msk.bf16.vlgmr.msra.gmra.mrb[0].mxu0 %vm258_vm2, %v1179_v1 }
 0x144   : >> { %v726_v3 = vpop.f32.mrb[0].mxu1 }
 0x145   : >> { %v1223_v4 = vpop.f32.mrb[0].mxu0  ;;  %v1609_v5 = vpop.f32.mrb[1].mxu1 }
 0x146   : >> { %v1659_v6 = vadd.f32 %v1223_v4, %v726_v3  ;;  %v1657_v7 = vpop.f32.mrb[1].mxu0  ;;  %v729_v8 = vpop.f32.mrb[2].mxu1 }
 0x147   : >> { %v1226_v2 = vpop.f32.mrb[2].mxu0  ;;  %v1610_v9 = vpop.f32.mrb[3].mxu1 }
 0x148   : >> { %v1230_v10 = vpack.c.bf16 %v1659_v6, %v1659_v6  ;;  %v1237_v11 = vsel %vm1236_vm3, %v1659_v6, 0.0  ;;  %v1248_v12 = vmul.f32 %v1659_v6, %v1659_v6  ;;  %v1658_v13 = vpop.f32.mrb[3].mxu0 }
 0x149   : >> { %v1238_v14 = vrot.slane %v1237_v11, 4 }
 0x14a   : >> { %1234 = vst.msk [vmem:[%s1232_s26] sm:$0xf] %vm1233_vm4, %v1230_v10  ;;  %v1249_v15 = vsel %vm1236_vm3, %v1248_v12, 0.0 }
 0x14b   : >> { %v1239_v16 = vadd.f32 %v1238_v14, %v1237_v11  ;;  %v1250_v17 = vrot.slane %v1249_v15, 4 }
 0x14d   : >> { %v1240_v18 = vrot.slane %v1239_v16, 2  ;;  %v1251_v19 = vadd.f32 %v1250_v17, %v1249_v15 }
 0x14f   : >> { %v1241_v20 = vadd.f32 %v1240_v18, %v1239_v16  ;;  %v1252_v21 = vrot.slane %v1251_v19, 2 }
 0x151   : >> { %v1242_v22 = vrot.slane %v1241_v20, 1  ;;  %v1253_v23 = vadd.f32 %v1252_v21, %v1251_v19 }
 0x153   : >> { %v1243_v25 = vadd.f32 %v1242_v22, %v1241_v20  ;;  %v1254_v26 = vrot.slane %v1253_v23, 1  ;;  %236 = sbr.rel (!%p234_p7) target bundleno = 24 (0x18), region = 109 }
 0x155   : >> { %v1244_v28 = vadd.f32 %v1243_v25, %v1235_v24  ;;  %v1255_v29 = vadd.f32 %v1254_v26, %v1253_v23 }
 0x157   : >> { %1246 = vst.msk [vmem:[%s2036_s3] sm:$0x1] %vm1245_vm5, %v1244_v28  ;;  %v1256_v30 = vadd.f32 %v1255_v29, %v1247_v27 }
 0x159   : >> { %1257 = vst.msk [vmem:[%s2037_s4] sm:$0x1] %vm1245_vm5, %v1256_v30 }
 0x15a PF: > { %s15_s17 = sadd.s32 1, %s1802_s17   ;;  %s2038_s15 = smov %s1798_s16 }
 0x15b   : > { %p12_p8 = scmp.ge.s32.totalorder %s15_s17, 4   ;;  %s2039_s16 = smov %s2041_s18 }
 0x15d   :  { %14 = sbr.rel (!%p12_p8) target bundleno = 2 (0x2), region = 120 }

// kernel: _lambda_.12
= control target key start
LH: loop header
LB: loop body
LE: loop exit
PB: predicated region body
PF: predicated region fallthrough
CT: control target
= control target key end

     0   :  { %s427_s12 = smov 0   ;;  %s429_s13 = smov 0   ;;  %s469_s0 = inlined_call_operand.vmem [shape: bf16[2,4,4,64], index: 0, kind: input, shape index: {}]   ;;  %s470_s1 = inlined_call_operand.vmem [shape: f32[1,64], index: 1, kind: input, shape index: {}]   ;;  %s471_s2 = inlined_call_operand.vmem [shape: f32[1,64], index: 2, kind: input, shape index: {}]   ;;  %s472_s3 = inlined_call_operand.vmem [shape: bf16[2,4,4,64], index: 3, kind: output, shape index: {}]  }
   0x1   :  { %s431_s14 = smov 0  }
   0x2 LB: > { %s25_s15 = sadd.s32 1, %s401_s13  ;;  %p348_p0 = scmp.ge.s32.totalorder %s405_s14, 1  ;;  %s405_s14 = sphi %s431_s14, %s13_s14   ;;  %s401_s13 = sphi %s429_s13, %s474_s13   ;;  %s397_s12 = sphi %s427_s12, %s473_s12  }
   0x3   : > { %p27_p1 = scmp.ge.s32.totalorder %s25_s15, 2  ;;  %p158_p2 = scmp.lt.s32.totalorder %s405_s14, 3 }
   0x5   : > { %s476_s15 = smov (%p27_p1, %s25_s15), 0  ;;  %p159_p3 = pnand %p348_p0, %p158_p2 }
   0x6   : > { %p191_p4 = scmp.lt.s32.totalorder (!%p159_p3), %s397_s12, 1  ;;  %v353_v0 = vld [vmem:[%s470_s1] ss:$0 sm:$0xff] (!%p159_p3)  ;;  %vm252_vm0 = vcmask (!%p159_p3), 517120  }
   0x7   : > { %162 = sbr.rel (%p159_p3) target bundleno = 32 (0x20), region = 32  ;;  %v354_v9 = vld [vmem:[%s471_s2] ss:$0 sm:$0xff] (!%p159_p3) }
   0xe   : > { %s478_s12 = smov (!%p191_p4, %s397_s12), 1 }
   0xf   : > { %s357_s16 = sshll.u32 %s478_s12, 3 }
  0x10   : > { %s198_s19 = scalar_lea.vmem %s469_s0, %s357_s16  ;;  %s208_s26 = scalar_lea.vmem %s472_s3, %s357_s16 }
  0x11   : > { %v210_v1 = vld [vmem:[%s198_s19] sm:$0x3]  ;;  %v211_v2 = vld [vmem:[%s198_s19 + $0x2] sm:$0x3]  ;;  %v212_v3 = vld [vmem:[%s198_s19 + $0x4] sm:$0x3] }
  0x12   : > { %v213_v4 = vld [vmem:[%s198_s19 + $0x6] sm:$0x3]  ;;  %v214_v5 = vunpack.c.l.bf16 %v210_v1  ;;  %v215_v6 = vunpack.c.l.bf16 %v211_v2  ;;  %v216_v7 = vunpack.c.l.bf16 %v212_v3 }
  0x13   : > { %v217_v8 = vunpack.c.l.bf16 %v213_v4 }
  0x14   : > { %v225_v10 = vmul.f32 %v353_v0, %v214_v5  ;;  %v226_v11 = vmul.f32 %v353_v0, %v215_v6  ;;  %v227_v12 = vmul.f32 %v353_v0, %v216_v7 }
  0x15   : > { %v228_v13 = vmul.f32 %v353_v0, %v217_v8 }
  0x16   : > { %v236_v14 = vadd.f32 %v354_v9, %v225_v10  ;;  %v237_v15 = vadd.f32 %v354_v9, %v226_v11  ;;  %v238_v16 = vadd.f32 %v354_v9, %v227_v12 }
  0x17   : > { %v239_v17 = vadd.f32 %v354_v9, %v228_v13 }
  0x18   : > { %v240_v18 = vmul.f32 0.2, %v236_v14  ;;  %v241_v19 = vmul.f32 0.2, %v237_v15  ;;  %v242_v20 = vmul.f32 0.2, %v238_v16 }
  0x19   : > { %v243_v21 = vmul.f32 0.2, %v239_v17 }
  0x1a   : > { %v244_v22 = vmax.f32 %v236_v14, %v240_v18  ;;  %v245_v23 = vmax.f32 %v237_v15, %v241_v19  ;;  %v246_v24 = vmax.f32 %v238_v16, %v242_v20 }
  0x1b   : > { %v247_v25 = vmax.f32 %v239_v17, %v243_v21 }
  0x1c   : > { %v248_v26 = vpack.c.bf16 %v244_v22, %v244_v22  ;;  %v249_v27 = vpack.c.bf16 %v245_v23, %v245_v23  ;;  %v250_v28 = vpack.c.bf16 %v246_v24, %v246_v24 }
  0x1d   : > { %v251_v29 = vpack.c.bf16 %v247_v25, %v247_v25 }
  0x1e   : > { %253 = vst.msk [vmem:[%s208_s26] sm:$0x3] %vm252_vm0, %v248_v26  ;;  %254 = vst.msk [vmem:[%s208_s26 + $0x2] sm:$0x3] %vm252_vm0, %v249_v27 }
  0x1f   : > { %255 = vst.msk [vmem:[%s208_s26 + $0x4] sm:$0x3] %vm252_vm0, %v250_v28  ;;  %256 = vst.msk [vmem:[%s208_s26 + $0x6] sm:$0x3] %vm252_vm0, %v251_v29 }
  0x20 PF: > { %s13_s14 = sadd.s32 1, %s405_s14   ;;  %s473_s12 = smov %s401_s13 }
  0x21   : > { %p10_p5 = scmp.ge.s32.totalorder %s13_s14, 4   ;;  %s474_s13 = smov %s476_s15 }
  0x23   :  { %12 = sbr.rel (!%p10_p5) target bundleno = 2 (0x2), region = 62 }

// kernel: _lambda_.14
= control target key start
LH: loop header
LB: loop body
LE: loop exit
PB: predicated region body
PF: predicated region fallthrough
CT: control target
= control target key end

     0   :  { %s424_s12 = smov 0   ;;  %s426_s13 = smov 0   ;;  %s463_s0 = inlined_call_operand.vmem [shape: bf16[2,3,3,128], index: 0, kind: input, shape index: {}]   ;;  %s464_s1 = inlined_call_operand.vmem [shape: f32[1,128], index: 1, kind: input, shape index: {}]   ;;  %s465_s2 = inlined_call_operand.vmem [shape: f32[1,128], index: 2, kind: input, shape index: {}]   ;;  %s466_s3 = inlined_call_operand.vmem [shape: bf16[2,3,3,128], index: 3, kind: output, shape index: {}]  }
   0x1   :  { %s428_s14 = smov 0  }
   0x2 LB: > { %s25_s15 = sadd.s32 1, %s398_s13  ;;  %p348_p0 = scmp.ge.s32.totalorder %s402_s14, 1  ;;  %s402_s14 = sphi %s428_s14, %s13_s14   ;;  %s398_s13 = sphi %s426_s13, %s468_s13   ;;  %s394_s12 = sphi %s424_s12, %s467_s12  }
   0x3   : > { %p27_p1 = scmp.ge.s32.totalorder %s25_s15, 2  ;;  %p158_p2 = scmp.lt.s32.totalorder %s402_s14, 3 }
   0x5   : > { %s470_s15 = smov (%p27_p1, %s25_s15), 0  ;;  %p159_p3 = pnand %p348_p0, %p158_p2 }
   0x6   : > { %p191_p4 = scmp.lt.s32.totalorder (!%p159_p3), %s394_s12, 1  ;;  %v351_v1 = vld [vmem:[%s464_s1] ss:$0 sm:$0xff] (!%p159_p3)  ;;  %vm245_vm0 = vcmask (!%p159_p3), 1041408   ;;  %vm246_vm1 = vsmask.f32 (!%p159_p3), 1280 }
   0x7   : > { %162 = sbr.rel (%p159_p3) target bundleno = 34 (0x22), region = 32  ;;  %v352_v6 = vld [vmem:[%s465_s2] ss:$0 sm:$0xff] (!%p159_p3)  ;;  %vm247_vm2 = vmand (!%p159_p3), %vm245_vm0, %vm246_vm1 }
   0xe   : > { %s472_s12 = smov (!%p191_p4, %s394_s12), 1 }
   0xf   : > { %s355_s16 = smul.u32 6, %s472_s12 }
  0x11   : > { %s198_s19 = scalar_lea.vmem %s463_s0, %s355_s16  ;;  %s208_s26 = scalar_lea.vmem %s466_s3, %s355_s16 }
  0x12   : > { %v210_v0 = vld [vmem:[%s198_s19] sm:$0x3]  ;;  %v211_v2 = vld [vmem:[%s198_s19 + $0x2] sm:$0x3]  ;;  %v212_v5 = vld [vmem:[%s198_s19 + $0x4] sm:$0x3] }
  0x13   : > { %v213_v3 = vunpack.c.l.bf16 %v210_v0  ;;  %v214_v4 = vunpack.c.l.bf16 %v211_v2  ;;  %v215_v7 = vunpack.c.l.bf16 %v212_v5  ;;  %v248_v19 = vld [vmem:[%s208_s26] sm:$0x3]  ;;  %v251_v20 = vld [vmem:[%s208_s26 + $0x2] sm:$0x3]  ;;  %v254_v24 = vld [vmem:[%s208_s26 + $0x4] sm:$0x3] }
  0x15   : > { %v223_v8 = vmul.f32 %v351_v1, %v213_v3  ;;  %v224_v9 = vmul.f32 %v351_v1, %v214_v4  ;;  %v225_v10 = vmul.f32 %v351_v1, %v215_v7 }
  0x17   : > { %v233_v11 = vadd.f32 %v352_v6, %v223_v8  ;;  %v234_v12 = vadd.f32 %v352_v6, %v224_v9  ;;  %v235_v13 = vadd.f32 %v352_v6, %v225_v10 }
  0x19   : > { %v236_v14 = vmul.f32 0.2, %v233_v11  ;;  %v237_v15 = vmul.f32 0.2, %v234_v12  ;;  %v238_v16 = vmul.f32 0.2, %v235_v13 }
  0x1b   : > { %v239_v17 = vmax.f32 %v233_v11, %v236_v14  ;;  %v240_v18 = vmax.f32 %v234_v12, %v237_v15  ;;  %v241_v21 = vmax.f32 %v235_v13, %v238_v16 }
  0x1d   : > { %v242_v22 = vpack.c.bf16 %v239_v17, %v239_v17  ;;  %v243_v23 = vpack.c.bf16 %v240_v18, %v240_v18  ;;  %v244_v25 = vpack.c.bf16 %v241_v21, %v241_v21 }
  0x1f   : > { %v249_v26 = vsel %vm247_vm2, %v242_v22, %v248_v19  ;;  %v252_v27 = vsel %vm247_vm2, %v243_v23, %v251_v20  ;;  %v255_v28 = vsel %vm247_vm2, %v244_v25, %v254_v24 }
  0x20   : > { %250 = vst [vmem:[%s208_s26] sm:$0x3] %v249_v26  ;;  %253 = vst [vmem:[%s208_s26 + $0x2] sm:$0x3] %v252_v27 }
  0x21   : > { %256 = vst [vmem:[%s208_s26 + $0x4] sm:$0x3] %v255_v28 }
  0x22 PF: > { %s13_s14 = sadd.s32 1, %s402_s14   ;;  %s467_s12 = smov %s398_s13 }
  0x23   : > { %p10_p5 = scmp.ge.s32.totalorder %s13_s14, 4   ;;  %s468_s13 = smov %s470_s15 }
  0x25   :  { %12 = sbr.rel (!%p10_p5) target bundleno = 2 (0x2), region = 62 }

// kernel: _lambda_.11
= control target key start
LH: loop header
LB: loop body
LE: loop exit
PB: predicated region body
PF: predicated region fallthrough
CT: control target
= control target key end

     0   :  { %s2021_s15 = smov 0   ;;  %s2023_s16 = smov 0   ;;  %s2282_s0 = inlined_call_operand.vmem [shape: bf16[8,5,5,32], index: 0, kind: input, shape index: {}]   ;;  %s2283_s1 = inlined_call_operand.vmem [shape: bf16[16,32,64], index: 1, kind: input, shape index: {}]   ;;  %s2284_s2 = inlined_call_operand.vmem [shape: bf16[2,4,4,64], index: 2, kind: output, shape index: {0}]   ;;  %s2285_s3 = inlined_call_operand.vmem [shape: f32[1,64], index: 3, kind: output, shape index: {1}]   ;;  %s2286_s4 = inlined_call_operand.vmem [shape: f32[1,64], index: 4, kind: output, shape index: {2}]  }
   0x1   :  { %s2025_s17 = smov 0  }
   0x2 LB: > { %s27_s18 = sadd.s32 1, %s1983_s16  ;;  %p1503_p0 = scmp.ge.s32.totalorder %s1987_s17, 1  ;;  %s1987_s17 = sphi %s2025_s17, %s15_s17   ;;  %s1983_s16 = sphi %s2023_s16, %s2288_s16   ;;  %s1979_s15 = sphi %s2021_s15, %s2287_s15  }
   0x3   : > { %p29_p1 = scmp.ge.s32.totalorder %s27_s18, 2  ;;  %p173_p2 = scmp.lt.s32.totalorder %s1987_s17, 3 }
   0x5   : > { %s2290_s18 = smov (%p29_p1, %s27_s18), 0  ;;  %p174_p3 = pnand %p1503_p0, %p173_p2 }
   0x6   : > { %s1504_s19 = sshll.u32 (!%p174_p3), %s1979_s15, 2  ;;  %p212_p4 = scmp.lt.s32.totalorder (!%p174_p3), %s1979_s15, 1 }
   0x7   : > { %177 = sbr.rel (%p174_p3) target bundleno = 350 (0x15e), region = 28  ;;  %p205_p5 = scmp.lt.s32.totalorder (!%p174_p3), %s1504_s19, 7 }
   0x8   : > { %p223_p6 = scmp.eq.s32.totalorder (!%p174_p3), %s1979_s15, 0 }
   0xe   : > { %s2292_s15 = smov (!%p212_p4, %s1979_s15), 1  ;;  %s2294_s19 = smov (!%p205_p5, %s1504_s19), 7 }
   0xf   : > { %s1650_s20 = sshll.u32 %s2292_s15, 3  ;;  %s1885_s21 = smul.u32 20, %s2294_s19  ;;  %vm229_vm0 = vcmask (%p223_p6), 516096   ;;  %v1993_v0 = vmov (%p223_p6), 0.0  }
  0x10   : > { %s2042_s24 = scalar_lea.vmem %s2284_s2, %s1650_s20  ;;  %228 = sbr.rel (!%p223_p6) target bundleno = 23 (0x17), region = 32  ;;  %230 = vst.msk [vmem:[%s2285_s3] sm:$0x1] (%p223_p6), %vm229_vm0, %v1993_v0  ;;  %231 = vst.msk [vmem:[%s2286_s4] sm:$0x1] (%p223_p6), %vm229_vm0, %v1993_v0 }
  0x11   : > { %s2047_s27 = scalar_lea.vmem %s2282_s0, %s1885_s21 }
  0x17 PF: > { %s2055_s6 = smov 0  }
  0x18 LB: >> { %v1921_v1 = vld [vmem:[%s2283_s1 + $0x10] sm:$0xff]   ;;  %v1994_v2 = vmov 0.0   ;;  %v1922_v3 = vld [vmem:[%s2283_s1 + $0x80] sm:$0xff]   ;;  %v1923_v4 = vld [vmem:[%s2283_s1 + $0x18] sm:$0xff]   ;;  %vm1995_vm1 = vmmov 0   ;;  %s1509_s13 = sshll.u32 %s1991_s6, 2  ;;  %s1991_s6 = sphi %s2055_s6, %s237_s6  }
  0x19   : >> { %1700 = vmatprep.subr.bf16.mxu1 %v1994_v2  ;;  %1764 = vmatprep.subr.bf16.mxu0 %v1994_v2  ;;  %v1924_v5 = vld [vmem:[%s2283_s1 + $0x88] sm:$0xff]   ;;  %s2079_s19 = scalar_lea.vmem %s2047_s27, %s1509_s13  ;;  %vm267_vm2 = vcmask 261120   ;;  %v1925_v8 = vld [vmem:[%s2283_s1] sm:$0xff]   ;;  %v1926_v9 = vld [vmem:[%s2283_s1 + $0x90] sm:$0xff]   ;;  %s1647_s14 = sshll.u32 %s1991_s6, 1  ;;  %vm1338_vm3 = vcmask 519168  }
  0x1a   : >> { %1701 = vmatpush3.bf16.msra.mxu1 %v1921_v1  ;;  %1704 = vmatprep.mubr.msk.bf16.mxu1 %vm1995_vm1, %v1994_v2  ;;  %v1511_v6 = vld [vmem:[%s2079_s19 + $0x14] sm:$0x3]  ;;  %v1576_v7 = vld [vmem:[%s2079_s19 + $0x4] sm:$0x3]  ;;  %v1927_v10 = vld [vmem:[%s2283_s1 + $0x8] sm:$0xff]   ;;  %s1334_s15 = scalar_lea.vmem %s2042_s24, %s1647_s14  ;;  %vm1335_vm4 = vcmask 517120  }
  0x1b   : >> { %1765 = vmatpush3.bf16.msra.mxu0 %v1922_v3  ;;  %1702 = vmatprep.subr.bf16.mxu1 %v1994_v2  ;;  %v1928_v11 = vld [vmem:[%s2283_s1 + $0x98] sm:$0xff]   ;;  %v1933_v12 = vld [vmem:[%s2079_s19] ss:$0 sps:$4 sm:$0x77]   ;;  %v1931_v19 = vld [vmem:[%s2283_s1 + $0x28] sm:$0xff]   ;;  %vm1347_vm5 = vcmask 516096  }
  0x1c   : >> { %1766 = vmatprep.subr.bf16.mxu0 %v1994_v2  ;;  %1768 = vmatprep.mubr.msk.bf16.mxu0 %vm1995_vm1, %v1994_v2  ;;  %v1934_v13 = vld [vmem:[%s2079_s19 + $0x4] ss:$0 sps:$4 sm:$0x77]   ;;  %v241_v14 = vld [vmem:[%s2079_s19] sm:$0x3]  ;;  %v378_v18 = vshll.u32 %v1933_v12, 16 }
  0x1d   : >> { %v1929_v15 = vld [vmem:[%s2283_s1 + $0x20] sm:$0xff]   ;;  %v1585_v16 = vld [vmem:[%s2079_s19 + $0x18] sm:$0x3]  ;;  %v926_v20 = vshll.u32 %v1934_v13, 16  ;;  %v1932_v21 = vld [vmem:[%s2283_s1 + $0xa8] sm:$0xff]   ;;  %v376_v22 = vshrl.u32 %v1933_v12, 16 }
  0x1e   : >> { %1703 = vmatpush3.bf16.msra.mxu1 %v1923_v4  ;;  %v1930_v17 = vld [vmem:[%s2283_s1 + $0xa0] sm:$0xff]   ;;  %v380_v23 = vrot.slane %v378_v18, 1  ;;  %v924_v24 = vshrl.u32 %v1934_v13, 16  ;;  %v1939_v26 = vld [vmem:[%s2079_s19 + $0x14] ss:$0 sps:$4 sm:$0x77]  }
  0x1f   : >> { %1767 = vmatpush3.bf16.msra.mxu0 %v1924_v5  ;;  %1708 = vmatprep.subr.bf16.mxu1 %v1994_v2  ;;  %v928_v25 = vrot.slane %v926_v20, 1  ;;  %v1935_v29 = vld [vmem:[%s2283_s1 + $0x30] sm:$0xff]   ;;  %v1940_v30 = vld [vmem:[%s2079_s19 + $0x18] ss:$0 sps:$4 sm:$0x77]   ;;  %v450_v32 = vshll.u32 %v1939_v26, 16 }
  0x20   : >> { %1772 = vmatprep.subr.bf16.mxu0 %v1994_v2  ;;  %v381_v27 = vor.u32 %v380_v23, %v376_v22  ;;  %v1936_v31 = vld [vmem:[%s2283_s1 + $0xb0] sm:$0xff]   ;;  %v1937_v33 = vld [vmem:[%s2283_s1 + $0x38] sm:$0xff]   ;;  %v998_v34 = vshll.u32 %v1940_v30, 16  ;;  %v448_v36 = vshrl.u32 %v1939_v26, 16  ;;  %v996_v38 = vshrl.u32 %v1940_v30, 16  ;;  %v1941_v42 = vld [vmem:[%s2283_s1 + $0x40] sm:$0xff]  }
  0x21   : >> { %1705 = vmatmul.mubr.msk.bf16.vlgmr.msra.gmra.mrb[0].mxu1 %vm267_vm2, %v1511_v6  ;;  %v929_v28 = vor.u32 %v928_v25, %v924_v24  ;;  %v1938_v35 = vld [vmem:[%s2283_s1 + $0xb8] sm:$0xff]   ;;  %v452_v37 = vrot.slane %v450_v32, 1  ;;  %v1942_v43 = vld [vmem:[%s2283_s1 + $0xc0] sm:$0xff]   ;;  %v1943_v44 = vld [vmem:[%s2283_s1 + $0x48] sm:$0xff]   ;;  %s237_s6 = sadd.s32 1, %s1991_s6  }
  0x22   : >> { %1769 = vmatmul.mubr.msk.bf16.vlgmr.msra.gmra.mrb[0].mxu0 %vm267_vm2, %v1576_v7  ;;  %1709 = vmatpush3.bf16.msra.mxu1 %v1925_v8  ;;  %v1000_v39 = vrot.slane %v998_v34, 1  ;;  %v1944_v45 = vld [vmem:[%s2283_s1 + $0xc8] sm:$0xff]   ;;  %v1945_v47 = vld [vmem:[%s2283_s1 + $0x50] sm:$0xff]   ;;  %v1947_v50 = vld [vmem:[%s2283_s1 + $0x58] sm:$0xff]   ;;  %p234_p7 = scmp.ge.s32.totalorder %s237_s6, 4  }
  0x23   : >> { %1773 = vmatpush3.bf16.msra.mxu0 %v1926_v9  ;;  %1710 = vmatprep.subr.bf16.mxu1 %v1994_v2  ;;  %v453_v40 = vor.u32 %v452_v37, %v448_v36  ;;  %v1540_v46 = vld [vmem:[%s2079_s19 + $0x28] sm:$0x3]  ;;  %v1612_v48 = vld [vmem:[%s2079_s19 + $0x2c] sm:$0x3]  ;;  %v1946_v49 = vld [vmem:[%s2283_s1 + $0xd0] sm:$0xff]  }
  0x24   : >> { %1774 = vmatprep.subr.bf16.mxu0 %v1994_v2  ;;  %1712 = vmatprep.mubr.msk.bf16.mxu1 %vm1995_vm1, %v1994_v2  ;;  %v1001_v41 = vor.u32 %v1000_v39, %v996_v38  ;;  %v1948_v51 = vld [vmem:[%s2283_s1 + $0xd8] sm:$0xff]   ;;  %v1953_v52 = vld [vmem:[%s2079_s19 + $0x28] ss:$0 sps:$4 sm:$0x77]   ;;  %v1949_v54 = vld [vmem:[%s2283_s1 + $0x60] sm:$0xff]  }
  0x25   : >> { %1776 = vmatprep.mubr.msk.bf16.mxu0 %vm1995_vm1, %v1994_v2  ;;  %v1549_v53 = vld [vmem:[%s2079_s19 + $0x3c] sm:$0x3]  ;;  %v1954_v55 = vld [vmem:[%s2079_s19 + $0x2c] ss:$0 sps:$4 sm:$0x77]   ;;  %v1950_v57 = vld [vmem:[%s2283_s1 + $0xe0] sm:$0xff]  }
  0x26   : >> { %1711 = vmatpush3.bf16.msra.mxu1 %v1927_v10  ;;  %v1621_v56 = vld [vmem:[%s2079_s19 + $0x40] sm:$0x3]  ;;  %v652_v58 = vshll.u32 %v1953_v52, 16  ;;  %v1951_v59 = vld [vmem:[%s2283_s1 + $0x68] sm:$0xff]   ;;  %v1200_v60 = vshll.u32 %v1954_v55, 16  ;;  %v650_v62 = vshrl.u32 %v1953_v52, 16 }
  0x27   : >> { %1775 = vmatpush3.bf16.msra.mxu0 %v1928_v11  ;;  %1716 = vmatprep.subr.bf16.mxu1 %v1994_v2  ;;  %v1952_v61 = vld [vmem:[%s2283_s1 + $0xe8] sm:$0xff]   ;;  %v1198_v0 = vshrl.u32 %v1954_v55, 16  ;;  %v1959_v4 = vld [vmem:[%s2079_s19 + $0x3c] ss:$0 sps:$4 sm:$0x77]   ;;  %v1955_v6 = vld [vmem:[%s2283_s1 + $0x70] sm:$0xff]  }
  0x28   : >> { %1780 = vmatprep.subr.bf16.mxu0 %v1994_v2  ;;  %v654_v63 = vrot.slane %v652_v58, 1  ;;  %v1202_v1 = vrot.slane %v1200_v60, 1  ;;  %v1960_v7 = vld [vmem:[%s2079_s19 + $0x40] ss:$0 sps:$4 sm:$0x77]   ;;  %v1956_v8 = vld [vmem:[%s2283_s1 + $0xf0] sm:$0xff]  }
  0x29   : >> { %v724_v9 = vshll.u32 %v1959_v4, 16  ;;  %v1957_v10 = vld [vmem:[%s2283_s1 + $0x78] sm:$0xff]   ;;  %v1272_v11 = vshll.u32 %v1960_v7, 16  ;;  %v722_v13 = vshrl.u32 %v1959_v4, 16 }
  0x2a   : >> { %v655_v3 = vor.u32 %v654_v63, %v650_v62  ;;  %v1203_v5 = vor.u32 %v1202_v1, %v1198_v0  ;;  %v1958_v12 = vld [vmem:[%s2283_s1 + $0xf8] sm:$0xff]  }
  0x2d   : >> { %1713 = vmatmul.mubr.msk.bf16.vlgmr.msra.gmra.mrb[0].mxu1 %vm267_vm2, %v241_v14  ;;  %v726_v14 = vrot.slane %v724_v9, 1 }
  0x2e   : >> { %1777 = vmatmul.mubr.msk.bf16.vlgmr.msra.gmra.mrb[0].mxu0 %vm267_vm2, %v1585_v16  ;;  %1717 = vmatpush3.bf16.msra.mxu1 %v1929_v15  ;;  %v1270_v15 = vshrl.u32 %v1960_v7, 16  ;;  %v1274_v16 = vrot.slane %v1272_v11, 1 }
  0x2f   : >> { %1781 = vmatpush3.bf16.msra.mxu0 %v1930_v17  ;;  %1718 = vmatprep.subr.bf16.mxu1 %v1994_v2  ;;  %v727_v17 = vor.u32 %v726_v14, %v722_v13 }
  0x30   : >> { %1782 = vmatprep.subr.bf16.mxu0 %v1994_v2  ;;  %1720 = vmatprep.mubr.msk.bf16.mxu1 %vm1995_vm1, %v1994_v2  ;;  %v1275_v18 = vor.u32 %v1274_v16, %v1270_v15 }
  0x31   : >> { %1784 = vmatprep.mubr.msk.bf16.mxu0 %vm1995_vm1, %v1994_v2 }
  0x32   : >> { %1719 = vmatpush3.bf16.msra.mxu1 %v1931_v19 }
  0x33   : >> { %1783 = vmatpush3.bf16.msra.mxu0 %v1932_v21  ;;  %1724 = vmatprep.subr.bf16.mxu1 %v1994_v2 }
  0x34   : >> { %1788 = vmatprep.subr.bf16.mxu0 %v1994_v2 }
  0x39   : >> { %1721 = vmatmul.mubr.msk.bf16.vlgmr.msra.gmra.mrb[0].mxu1 %vm267_vm2, %v381_v27 }
  0x3a   : >> { %1785 = vmatmul.mubr.msk.bf16.vlgmr.msra.gmra.mrb[0].mxu0 %vm267_vm2, %v929_v28  ;;  %1725 = vmatpush3.bf16.msra.mxu1 %v1935_v29 }
  0x3b   : >> { %1789 = vmatpush3.bf16.msra.mxu0 %v1936_v31  ;;  %1726 = vmatprep.subr.bf16.mxu1 %v1994_v2 }
  0x3c   : >> { %1790 = vmatprep.subr.bf16.mxu0 %v1994_v2  ;;  %1728 = vmatprep.mubr.msk.bf16.mxu1 %vm1995_vm1, %v1994_v2 }
  0x3d   : >> { %1792 = vmatprep.mubr.msk.bf16.mxu0 %vm1995_vm1, %v1994_v2 }
  0x3e   : >> { %1727 = vmatpush3.bf16.msra.mxu1 %v1937_v33 }
  0x3f   : >> { %1791 = vmatpush3.bf16.msra.mxu0 %v1938_v35  ;;  %1732 = vmatprep.subr.bf16.mxu1 %v1994_v2 }
  0x40   : >> { %1796 = vmatprep.subr.bf16.mxu0 %v1994_v2 }
  0x45   : >> { %1729 = vmatmul.mubr.msk.bf16.vlgmr.msra.gmra.mrb[0].mxu1 %vm267_vm2, %v453_v40  ;;  %v1337_v40 = vld [vmem:[%s2285_s3] sm:$0x1] }
  0x46   : >> { %1793 = vmatmul.mubr.msk.bf16.vlgmr.msra.gmra.mrb[0].mxu0 %vm267_vm2, %v1001_v41  ;;  %1733 = vmatpush3.bf16.msra.mxu1 %v1941_v42 }
  0x47   : >> { %1797 = vmatpush3.bf16.msra.mxu0 %v1942_v43  ;;  %1734 = vmatprep.subr.bf16.mxu1 %v1994_v2  ;;  %v1349_v43 = vld [vmem:[%s2286_s4] sm:$0x1] }
  0x48   : >> { %1798 = vmatprep.subr.bf16.mxu0 %v1994_v2  ;;  %1736 = vmatprep.mubr.msk.bf16.mxu1 %vm1995_vm1, %v1994_v2 }
  0x49   : >> { %1800 = vmatprep.mubr.msk.bf16.mxu0 %vm1995_vm1, %v1994_v2 }
  0x4a   : >> { %1735 = vmatpush3.bf16.msra.mxu1 %v1943_v44 }
  0x4b   : >> { %1799 = vmatpush3.bf16.msra.mxu0 %v1944_v45  ;;  %1740 = vmatprep.subr.bf16.mxu1 %v1994_v2 }
  0x4c   : >> { %1804 = vmatprep.subr.bf16.mxu0 %v1994_v2 }
  0x51   : >> { %1737 = vmatmul.mubr.msk.bf16.vlgmr.msra.gmra.mrb[0].mxu1 %vm267_vm2, %v1540_v46 }
  0x52   : >> { %1801 = vmatmul.mubr.msk.bf16.vlgmr.msra.gmra.mrb[0].mxu0 %vm267_vm2, %v1612_v48  ;;  %1741 = vmatpush3.bf16.msra.mxu1 %v1945_v47 }
  0x53   : >> { %1805 = vmatpush3.bf16.msra.mxu0 %v1946_v49  ;;  %1742 = vmatprep.subr.bf16.mxu1 %v1994_v2 }
  0x54   : >> { %1806 = vmatprep.subr.bf16.mxu0 %v1994_v2  ;;  %1744 = vmatprep.mubr.msk.bf16.mxu1 %vm1995_vm1, %v1994_v2 }
  0x55   : >> { %1808 = vmatprep.mubr.msk.bf16.mxu0 %vm1995_vm1, %v1994_v2 }
  0x56   : >> { %1743 = vmatpush3.bf16.msra.mxu1 %v1947_v50 }
  0x57   : >> { %1807 = vmatpush3.bf16.msra.mxu0 %v1948_v51  ;;  %1748 = vmatprep.subr.bf16.mxu1 %v1994_v2 }
  0x58   : >> { %1812 = vmatprep.subr.bf16.mxu0 %v1994_v2 }
  0x5d   : >> { %1745 = vmatmul.mubr.msk.bf16.vlgmr.msra.gmra.mrb[0].mxu1 %vm267_vm2, %v1549_v53 }
  0x5e   : >> { %1809 = vmatmul.mubr.msk.bf16.vlgmr.msra.gmra.mrb[0].mxu0 %vm267_vm2, %v1621_v56  ;;  %1749 = vmatpush3.bf16.msra.mxu1 %v1949_v54 }
  0x5f   : >> { %1813 = vmatpush3.bf16.msra.mxu0 %v1950_v57  ;;  %1750 = vmatprep.subr.bf16.mxu1 %v1994_v2 }
  0x60   : >> { %1814 = vmatprep.subr.bf16.mxu0 %v1994_v2  ;;  %1752 = vmatprep.mubr.msk.bf16.mxu1 %vm1995_vm1, %v1994_v2 }
  0x61   : >> { %1816 = vmatprep.mubr.msk.bf16.mxu0 %vm1995_vm1, %v1994_v2 }
  0x62   : >> { %1751 = vmatpush3.bf16.msra.mxu1 %v1951_v59 }
  0x63   : >> { %1815 = vmatpush3.bf16.msra.mxu0 %v1952_v61  ;;  %1756 = vmatprep.subr.bf16.mxu1 %v1994_v2 }
  0x64   : >> { %1820 = vmatprep.subr.bf16.mxu0 %v1994_v2 }
  0x69   : >> { %1753 = vmatmul.mubr.msk.bf16.vlgmr.msra.gmra.mrb[0].mxu1 %vm267_vm2, %v655_v3 }
  0x6a   : >> { %1817 = vmatmul.mubr.msk.bf16.vlgmr.msra.gmra.mrb[0].mxu0 %vm267_vm2, %v1203_v5  ;;  %1757 = vmatpush3.bf16.msra.mxu1 %v1955_v6 }
  0x6b   : >> { %1821 = vmatpush3.bf16.msra.mxu0 %v1956_v8  ;;  %1758 = vmatprep.subr.bf16.mxu1 %v1994_v2 }
  0x6c   : >> { %1822 = vmatprep.subr.bf16.mxu0 %v1994_v2  ;;  %1760 = vmatprep.mubr.msk.bf16.mxu1 %vm1995_vm1, %v1994_v2 }
  0x6d   : >> { %1824 = vmatprep.mubr.msk.bf16.mxu0 %vm1995_vm1, %v1994_v2 }
  0x6e   : >> { %1759 = vmatpush3.bf16.msra.mxu1 %v1957_v10 }
  0x6f   : >> { %1823 = vmatpush3.bf16.msra.mxu0 %v1958_v12 }
  0x75   : >> { %1761 = vmatmul.mubr.msk.bf16.vlgmr.msra.gmra.mrb[0].mxu1 %vm267_vm2, %v727_v17 }
  0x76   : >> { %1825 = vmatmul.mubr.msk.bf16.vlgmr.msra.gmra.mrb[0].mxu0 %vm267_vm2, %v1275_v18 }
 0x148   : >> { %v777_v19 = vpop.f32.mrb[0].mxu1 }
 0x149   : >> { %v1325_v20 = vpop.f32.mrb[0].mxu0  ;;  %v1762_v21 = vpop.f32.mrb[1].mxu1 }
 0x14a   : >> { %v1828_v22 = vadd.f32 %v1325_v20, %v777_v19  ;;  %v1826_v2 = vpop.f32.mrb[1].mxu0  ;;  %v780_v23 = vpop.f32.mrb[2].mxu1 }
 0x14b   : >> { %v1328_v24 = vpop.f32.mrb[2].mxu0  ;;  %v1763_v25 = vpop.f32.mrb[3].mxu1 }
 0x14c   : >> { %v1332_v26 = vpack.c.bf16 %v1828_v22, %v1828_v22  ;;  %v1339_v27 = vsel %vm1338_vm3, %v1828_v22, 0.0  ;;  %v1350_v28 = vmul.f32 %v1828_v22, %v1828_v22  ;;  %v1827_v29 = vpop.f32.mrb[3].mxu0 }
 0x14d   : >> { %v1340_v30 = vrot.slane %v1339_v27, 4 }
 0x14e   : >> { %1336 = vst.msk [vmem:[%s1334_s15] sm:$0x3] %vm1335_vm4, %v1332_v26  ;;  %v1351_v31 = vsel %vm1338_vm3, %v1350_v28, 0.0 }
 0x14f   : >> { %v1341_v32 = vadd.f32 %v1340_v30, %v1339_v27  ;;  %v1352_v33 = vrot.slane %v1351_v31, 4 }
 0x151   : >> { %v1342_v34 = vrot.slane %v1341_v32, 2  ;;  %v1353_v35 = vadd.f32 %v1352_v33, %v1351_v31 }
 0x153   : >> { %v1343_v36 = vadd.f32 %v1342_v34, %v1341_v32  ;;  %v1354_v37 = vrot.slane %v1353_v35, 2 }
 0x155   : >> { %v1344_v38 = vrot.slane %v1343_v36, 1  ;;  %v1355_v39 = vadd.f32 %v1354_v37, %v1353_v35 }
 0x157   : >> { %v1345_v41 = vadd.f32 %v1344_v38, %v1343_v36  ;;  %v1356_v42 = vrot.slane %v1355_v39, 1  ;;  %236 = sbr.rel (!%p234_p7) target bundleno = 24 (0x18), region = 109 }
 0x159   : >> { %v1346_v44 = vadd.f32 %v1345_v41, %v1337_v40  ;;  %v1357_v45 = vadd.f32 %v1356_v42, %v1355_v39 }
 0x15b   : >> { %1348 = vst.msk [vmem:[%s2285_s3] sm:$0x1] %vm1347_vm5, %v1346_v44  ;;  %v1358_v46 = vadd.f32 %v1357_v45, %v1349_v43 }
 0x15d   : >> { %1359 = vst.msk [vmem:[%s2286_s4] sm:$0x1] %vm1347_vm5, %v1358_v46 }
 0x15e PF: > { %s15_s17 = sadd.s32 1, %s1987_s17   ;;  %s2287_s15 = smov %s1983_s16 }
 0x15f   : > { %p12_p8 = scmp.ge.s32.totalorder %s15_s17, 4   ;;  %s2288_s16 = smov %s2290_s18 }
 0x161   :  { %14 = sbr.rel (!%p12_p8) target bundleno = 2 (0x2), region = 120 }

// kernel: _lambda_.13
= control target key start
LH: loop header
LB: loop body
LE: loop exit
PB: predicated region body
PF: predicated region fallthrough
CT: control target
= control target key end

     0   :  { %s2448_s15 = smov 0   ;;  %s2450_s16 = smov 0   ;;  %s2829_s0 = inlined_call_operand.vmem [shape: bf16[2,6,6,64], index: 0, kind: input, shape index: {}]   ;;  %s2830_s1 = inlined_call_operand.vmem [shape: bf16[16,64,128], index: 1, kind: input, shape index: {}]   ;;  %s2831_s2 = inlined_call_operand.vmem [shape: bf16[2,3,3,128], index: 2, kind: output, shape index: {0}]   ;;  %s2832_s3 = inlined_call_operand.vmem [shape: f32[1,128], index: 3, kind: output, shape index: {1}]   ;;  %s2833_s4 = inlined_call_operand.vmem [shape: f32[1,128], index: 4, kind: output, shape index: {2}]  }
   0x1   :  { %s2452_s17 = smov 0  }
   0x2 LB: > { %s27_s18 = sadd.s32 1, %s2410_s16  ;;  %p1724_p0 = scmp.ge.s32.totalorder %s2414_s17, 1  ;;  %s2414_s17 = sphi %s2452_s17, %s15_s17   ;;  %s2410_s16 = sphi %s2450_s16, %s2835_s16   ;;  %s2406_s15 = sphi %s2448_s15, %s2834_s15  }
   0x3   : > { %p29_p1 = scmp.ge.s32.totalorder %s27_s18, 2  ;;  %p171_p2 = scmp.lt.s32.totalorder %s2414_s17, 3 }
   0x5   : > { %s2837_s18 = smov (%p29_p1, %s27_s18), 0  ;;  %p172_p3 = pnand %p1724_p0, %p171_p2 }
   0x6   : > { %p201_p4 = scmp.lt.s32.totalorder (!%p172_p3), %s2406_s15, 1  ;;  %p218_p5 = scmp.eq.s32.totalorder (!%p172_p3), %s2406_s15, 0 }
   0x7   : > { %175 = sbr.rel (%p172_p3) target bundleno = 384 (0x180), region = 28 }
   0xe   : > { %s2839_s15 = smov (!%p201_p4, %s2406_s15), 1  ;;  %223 = sbr.rel (!%p218_p5) target bundleno = 21 (0x15), region = 32 }
   0xf   : > { %s2279_s19 = smul.u32 24, %s2839_s15  ;;  %v2420_v0 = vmov (%p218_p5), 0.0  }
  0x10   : > { %s2280_s20 = smul.u32 6, %s2839_s15  ;;  %224 = vst [vmem:[%s2832_s3] sm:$0x1] (%p218_p5), %v2420_v0  ;;  %225 = vst [vmem:[%s2833_s4] sm:$0x1] (%p218_p5), %v2420_v0 }
  0x11   : > { %s2469_s23 = scalar_lea.vmem %s2829_s0, %s2279_s19 }
  0x12   : > { %s2474_s26 = scalar_lea.vmem %s2831_s2, %s2280_s20 }
  0x15 PF: > { %s2482_s5 = smov 0  }
  0x16 LB: >> { %v2316_v1 = vld [vmem:[%s2830_s1 + $0x20] sm:$0xff]   ;;  %v2421_v2 = vmov 0.0   ;;  %v2318_v4 = vld [vmem:[%s2830_s1 + $0x28] sm:$0xff]   ;;  %vm2422_vm0 = vmmov 0   ;;  %s1728_s12 = sshll.u32 %s2418_s5, 2  ;;  %v2320_v6 = vld [vmem:[%s2830_s1 + $0x30] sm:$0xff]   ;;  %s2418_s5 = sphi %s2482_s5, %s231_s5  }
  0x17   : >> { %2030 = vmatprep.subr.bf16.mxu1 %v2421_v2  ;;  %2126 = vmatprep.subr.bf16.mxu0 %v2421_v2  ;;  %v2317_v3 = vld [vmem:[%s2830_s1 + $0x100] sm:$0xff]   ;;  %v2319_v5 = vld [vmem:[%s2830_s1 + $0x108] sm:$0xff]   ;;  %s2509_s15 = scalar_lea.vmem %s2469_s23, %s1728_s12  ;;  %v2321_v7 = vld [vmem:[%s2830_s1 + $0x110] sm:$0xff]   ;;  %vm287_vm1 = vcmask 523264   ;;  %s1946_s25 = sshll.u32 %s2418_s5, 1  ;;  %vm1573_vm2 = vcmask 1041408  }
  0x18   : >> { %2031 = vmatpush3.bf16.msra.mxu1 %v2316_v1  ;;  %2038 = vmatprep.mubr.msk.bf16.mxu1 %vm2422_vm0, %v2421_v2  ;;  %v235_v8 = vld [vmem:[%s2509_s15] sm:$0x3]  ;;  %v2322_v10 = vld [vmem:[%s2830_s1 + $0x38] sm:$0xff]   ;;  %v1833_v16 = vld [vmem:[%s2509_s15 + $0x8] sm:$0x3]  ;;  %s1572_s27 = scalar_lea.vmem %s2474_s26, %s1946_s25  ;;  %vm1580_vm4 = vcmask 1042432  }
  0x19   : >> { %2127 = vmatpush3.bf16.msra.mxu0 %v2317_v3  ;;  %2032 = vmatprep.subr.bf16.mxu1 %v2421_v2  ;;  %v1737_v9 = vcombine.low %v235_v8, %v235_v8  ;;  %v2323_v11 = vld [vmem:[%s2830_s1 + $0x118] sm:$0xff]   ;;  %v2325_v15 = vld [vmem:[%s2830_s1] sm:$0xff]   ;;  %v1855_v19 = vcombine.low %v1833_v16, %v1833_v16  ;;  %v2328_v20 = vld [vmem:[%s2830_s1 + $0x8] sm:$0xff]   ;;  %vm1574_vm3 = vsmask.f32 1280  ;;  %s231_s5 = sadd.s32 1, %s2418_s5  }
  0x1a   : >> { %2128 = vmatprep.subr.bf16.mxu0 %v2421_v2  ;;  %2134 = vmatprep.mubr.msk.bf16.mxu0 %vm2422_vm0, %v2421_v2  ;;  %v2327_v18 = vld [vmem:[%s2830_s1 + $0x120] sm:$0xff]   ;;  %v2329_v21 = vld [vmem:[%s2830_s1 + $0x128] sm:$0xff]   ;;  %v2330_v23 = vld [vmem:[%s2830_s1 + $0x10] sm:$0xff]   ;;  %p228_p6 = scmp.ge.s32.totalorder %s231_s5, 3  }
  0x1b   : >> { %v257_v12 = vshrl.u32 %v1737_v9, 16  ;;  %v259_v13 = vshll.u32 %v1737_v9, 16  ;;  %v996_v22 = vshll.u32 %v1855_v19, 16  ;;  %v2331_v24 = vld [vmem:[%s2830_s1 + $0x130] sm:$0xff]   ;;  %v994_v25 = vshrl.u32 %v1855_v19, 16  ;;  %v2332_v27 = vld [vmem:[%s2830_s1 + $0x18] sm:$0xff]   ;;  %vm1575_vm5 = vmand %vm1573_vm2, %vm1574_vm3 }
  0x1c   : >> { %2033 = vmatpush3.bf16.msra.mxu1 %v2318_v4  ;;  %v2333_v28 = vld [vmem:[%s2830_s1 + $0x138] sm:$0xff]   ;;  %v2334_v30 = vld [vmem:[%s2830_s1 + $0x40] sm:$0xff]   ;;  %v2336_v32 = vld [vmem:[%s2830_s1 + $0x48] sm:$0xff]  }
  0x1d   : >> { %2129 = vmatpush3.bf16.msra.mxu0 %v2319_v5  ;;  %2034 = vmatprep.subr.bf16.mxu1 %v2421_v2  ;;  %v261_v14 = vrot.slane %v259_v13, 1  ;;  %v998_v26 = vrot.slane %v996_v22, 1  ;;  %v2335_v31 = vld [vmem:[%s2830_s1 + $0x140] sm:$0xff]   ;;  %v2337_v33 = vld [vmem:[%s2830_s1 + $0x148] sm:$0xff]   ;;  %v2338_v34 = vld [vmem:[%s2830_s1 + $0x50] sm:$0xff]  }
  0x1e   : >> { %2130 = vmatprep.subr.bf16.mxu0 %v2421_v2  ;;  %v2339_v35 = vld [vmem:[%s2830_s1 + $0x150] sm:$0xff]   ;;  %v2342_v36 = vld [vmem:[%s2509_s15] ss:$0 sps:$4 sm:$0x66]   ;;  %v2340_v38 = vld [vmem:[%s2830_s1 + $0x58] sm:$0xff]  }
  0x1f   : >> { %v262_v17 = vor.u32 %v261_v14, %v257_v12  ;;  %v999_v29 = vor.u32 %v998_v26, %v994_v25  ;;  %v2344_v37 = vld [vmem:[%s2509_s15 + $0x8] ss:$0 sps:$4 sm:$0x66]   ;;  %v2341_v39 = vld [vmem:[%s2830_s1 + $0x158] sm:$0xff]   ;;  %v411_v40 = vrot.slane %v2342_v36, 1  ;;  %v2343_v41 = vld [vmem:[%s2830_s1 + $0x60] sm:$0xff]  }
  0x20   : >> { %2035 = vmatpush3.bf16.msra.mxu1 %v2320_v6  ;;  %v1081_v42 = vrot.slane %v2344_v37, 1  ;;  %v2345_v43 = vld [vmem:[%s2830_s1 + $0x160] sm:$0xff]   ;;  %v2346_v44 = vld [vmem:[%s2830_s1 + $0x68] sm:$0xff]   ;;  %v490_v46 = vshrl.u32 %v2342_v36, 16  ;;  %v2348_v47 = vld [vmem:[%s2830_s1 + $0x70] sm:$0xff]   ;;  %v493_v48 = vshll.u32 %v2342_v36, 16 }
  0x21   : >> { %2131 = vmatpush3.bf16.msra.mxu0 %v2321_v7  ;;  %2036 = vmatprep.subr.bf16.mxu1 %v2421_v2  ;;  %v2347_v45 = vld [vmem:[%s2830_s1 + $0x168] sm:$0xff]   ;;  %v1160_v49 = vshrl.u32 %v2344_v37, 16  ;;  %v1163_v50 = vshll.u32 %v2344_v37, 16  ;;  %v2349_v51 = vld [vmem:[%s2830_s1 + $0x170] sm:$0xff]   ;;  %v2350_v53 = vld [vmem:[%s2830_s1 + $0x78] sm:$0xff]  }
  0x22   : >> { %2132 = vmatprep.subr.bf16.mxu0 %v2421_v2  ;;  %v492_v52 = vrot.slane %v490_v46, 1  ;;  %v495_v54 = vrot.slane %v493_v48, 2  ;;  %v2351_v57 = vld [vmem:[%s2830_s1 + $0x178] sm:$0xff]   ;;  %v2352_v59 = vld [vmem:[%s2830_s1 + $0x80] sm:$0xff]   ;;  %v2354_v62 = vld [vmem:[%s2830_s1 + $0x88] sm:$0xff]  }
  0x23   : >> { %v1162_v55 = vrot.slane %v1160_v49, 1  ;;  %v1165_v56 = vrot.slane %v1163_v50, 2  ;;  %v2353_v61 = vld [vmem:[%s2830_s1 + $0x180] sm:$0xff]   ;;  %v2355_v63 = vld [vmem:[%s2830_s1 + $0x188] sm:$0xff]   ;;  %v2356_v0 = vld [vmem:[%s2830_s1 + $0x90] sm:$0xff]  }
  0x24   : >> { %2037 = vmatpush3.bf16.msra.mxu1 %v2322_v10  ;;  %v496_v58 = vor.u32 %v495_v54, %v492_v52  ;;  %v2357_v1 = vld [vmem:[%s2830_s1 + $0x190] sm:$0xff]   ;;  %v2358_v3 = vld [vmem:[%s2830_s1 + $0x98] sm:$0xff]   ;;  %v1776_v5 = vld [vmem:[%s2509_s15 + $0x4] sm:$0x3] }
  0x25   : >> { %2133 = vmatpush3.bf16.msra.mxu0 %v2323_v11  ;;  %2042 = vmatprep.subr.bf16.mxu1 %v2421_v2  ;;  %v1166_v60 = vor.u32 %v1165_v56, %v1162_v55  ;;  %v2359_v4 = vld [vmem:[%s2830_s1 + $0x198] sm:$0xff]   ;;  %v2361_v6 = vld [vmem:[%s2830_s1 + $0xa0] sm:$0xff]   ;;  %v1890_v7 = vld [vmem:[%s2509_s15 + $0xc] sm:$0x3]  ;;  %v1798_v9 = vcombine.low %v1776_v5, %v1776_v5 }
  0x26   : >> { %2138 = vmatprep.subr.bf16.mxu0 %v2421_v2  ;;  %v1912_v10 = vcombine.low %v1890_v7, %v1890_v7  ;;  %v2364_v11 = vld [vmem:[%s2830_s1 + $0xa8] sm:$0xff]   ;;  %v2369_v22 = vld [vmem:[%s2830_s1 + $0x1b8] sm:$0xff]   ;;  %v2370_v25 = vld [vmem:[%s2830_s1 + $0xc0] sm:$0xff]  }
  0x27   : >> { %2039 = vmatmul.mubr.msk.bf16.vlgmr.msra.gmra.mrb[0].mxu1 %vm287_vm1, %v262_v17  ;;  %v2365_v12 = vld [vmem:[%s2830_s1 + $0x1a8] sm:$0xff]   ;;  %v661_v13 = vshll.u32 %v1798_v9, 16  ;;  %v659_v17 = vshrl.u32 %v1798_v9, 16  ;;  %v2371_v26 = vld [vmem:[%s2830_s1 + $0x1c0] sm:$0xff]   ;;  %v2385_v46 = vld [vmem:[%s2830_s1 + $0x1f0] sm:$0xff]  }
  0x28   : >> { %2043 = vmatpush3.bf16.msra.mxu1 %v2325_v15  ;;  %2135 = vmatmul.mubr.msk.bf16.vlgmr.msra.gmra.mrb[0].mxu0 %vm287_vm1, %v1833_v16  ;;  %v1331_v14 = vshll.u32 %v1912_v10, 16  ;;  %v2366_v15 = vld [vmem:[%s2830_s1 + $0xb0] sm:$0xff]   ;;  %v1329_v19 = vshrl.u32 %v1912_v10, 16  ;;  %v2379_v36 = vld [vmem:[%s2830_s1 + $0xe0] sm:$0xff]   ;;  %v2386_v49 = vld [vmem:[%s2830_s1 + $0xf8] sm:$0xff]  }
  0x29   : >> { %2139 = vmatpush3.bf16.msra.mxu0 %v2327_v18  ;;  %2044 = vmatprep.subr.bf16.mxu1 %v2421_v2  ;;  %v2367_v16 = vld [vmem:[%s2830_s1 + $0x1b0] sm:$0xff]   ;;  %v663_v18 = vrot.slane %v661_v13, 1  ;;  %v2387_v52 = vld [vmem:[%s2830_s1 + $0x1f8] sm:$0xff]  }
  0x2a   : >> { %2140 = vmatprep.subr.bf16.mxu0 %v2421_v2  ;;  %2050 = vmatprep.mubr.msk.bf16.mxu1 %vm2422_vm0, %v2421_v2 }
  0x2b   : >> { %2146 = vmatprep.mubr.msk.bf16.mxu0 %vm2422_vm0, %v2421_v2 }
  0x2c   : >> { %2045 = vmatpush3.bf16.msra.mxu1 %v2328_v20  ;;  %v1333_v20 = vrot.slane %v1331_v14, 1 }
  0x2d   : >> { %2141 = vmatpush3.bf16.msra.mxu0 %v2329_v21  ;;  %2046 = vmatprep.subr.bf16.mxu1 %v2421_v2  ;;  %v2368_v21 = vld [vmem:[%s2830_s1 + $0xb8] sm:$0xff]  }
  0x2e   : >> { %2142 = vmatprep.subr.bf16.mxu0 %v2421_v2 }
  0x30   : >> { %2047 = vmatpush3.bf16.msra.mxu1 %v2330_v23  ;;  %v664_v23 = vor.u32 %v663_v18, %v659_v17  ;;  %v1590_v18 = vld [vmem:[%s2833_s4] sm:$0x1] }
  0x31   : >> { %2143 = vmatpush3.bf16.msra.mxu0 %v2331_v24  ;;  %2048 = vmatprep.subr.bf16.mxu1 %v2421_v2  ;;  %v1334_v24 = vor.u32 %v1333_v20, %v1329_v19 }
  0x32   : >> { %2144 = vmatprep.subr.bf16.mxu0 %v2421_v2 }
  0x34   : >> { %2049 = vmatpush3.bf16.msra.mxu1 %v2332_v27  ;;  %v2372_v27 = vld [vmem:[%s2830_s1 + $0xc8] sm:$0xff]  }
  0x35   : >> { %2145 = vmatpush3.bf16.msra.mxu0 %v2333_v28  ;;  %2054 = vmatprep.subr.bf16.mxu1 %v2421_v2  ;;  %v2373_v28 = vld [vmem:[%s2830_s1 + $0x1c8] sm:$0xff]  }
  0x36   : >> { %2150 = vmatprep.subr.bf16.mxu0 %v2421_v2 }
  0x37   : >> { %2051 = vmatmul.mubr.msk.bf16.vlgmr.msra.gmra.mrb[0].mxu1 %vm287_vm1, %v235_v8  ;;  %v2363_v8 = vld [vmem:[%s2830_s1 + $0x1a0] sm:$0xff]  }
  0x38   : >> { %2055 = vmatpush3.bf16.msra.mxu1 %v2334_v30  ;;  %2147 = vmatmul.mubr.msk.bf16.vlgmr.msra.gmra.mrb[0].mxu0 %vm287_vm1, %v999_v29  ;;  %v2374_v29 = vld [vmem:[%s2830_s1 + $0xd0] sm:$0xff]  }
  0x39   : >> { %2151 = vmatpush3.bf16.msra.mxu0 %v2335_v31  ;;  %2056 = vmatprep.subr.bf16.mxu1 %v2421_v2  ;;  %v2375_v30 = vld [vmem:[%s2830_s1 + $0x1d0] sm:$0xff]   ;;  %v2378_v31 = vld [vmem:[%s2509_s15 + $0x4] ss:$0 sps:$4 sm:$0x66]  }
  0x3a   : >> { %2152 = vmatprep.subr.bf16.mxu0 %v2421_v2  ;;  %2062 = vmatprep.mubr.msk.bf16.mxu1 %vm2422_vm0, %v2421_v2 }
  0x3b   : >> { %2158 = vmatprep.mubr.msk.bf16.mxu0 %vm2422_vm0, %v2421_v2 }
  0x3c   : >> { %2057 = vmatpush3.bf16.msra.mxu1 %v2336_v32  ;;  %v2376_v32 = vld [vmem:[%s2830_s1 + $0xd8] sm:$0xff]  }
  0x3d   : >> { %2153 = vmatpush3.bf16.msra.mxu0 %v2337_v33  ;;  %2058 = vmatprep.subr.bf16.mxu1 %v2421_v2  ;;  %v2380_v33 = vld [vmem:[%s2509_s15 + $0xc] ss:$0 sps:$4 sm:$0x66]  }
  0x3e   : >> { %2154 = vmatprep.subr.bf16.mxu0 %v2421_v2  ;;  %v1416_v37 = vrot.slane %v2380_v33, 1 }
  0x40   : >> { %2059 = vmatpush3.bf16.msra.mxu1 %v2338_v34  ;;  %v2377_v34 = vld [vmem:[%s2830_s1 + $0x1d8] sm:$0xff]  }
  0x41   : >> { %2155 = vmatpush3.bf16.msra.mxu0 %v2339_v35  ;;  %2060 = vmatprep.subr.bf16.mxu1 %v2421_v2  ;;  %v746_v35 = vrot.slane %v2378_v31, 1 }
  0x42   : >> { %2156 = vmatprep.subr.bf16.mxu0 %v2421_v2 }
  0x44   : >> { %2061 = vmatpush3.bf16.msra.mxu1 %v2340_v38  ;;  %v2381_v38 = vld [vmem:[%s2830_s1 + $0x1e0] sm:$0xff]  }
  0x45   : >> { %2157 = vmatpush3.bf16.msra.mxu0 %v2341_v39  ;;  %2066 = vmatprep.subr.bf16.mxu1 %v2421_v2  ;;  %v2382_v39 = vld [vmem:[%s2830_s1 + $0xe8] sm:$0xff]  }
  0x46   : >> { %2162 = vmatprep.subr.bf16.mxu0 %v2421_v2 }
  0x47   : >> { %2063 = vmatmul.mubr.msk.bf16.vlgmr.msra.gmra.mrb[0].mxu1 %vm287_vm1, %v411_v40  ;;  %v2383_v40 = vld [vmem:[%s2830_s1 + $0x1e8] sm:$0xff]  }
  0x48   : >> { %2067 = vmatpush3.bf16.msra.mxu1 %v2343_v41  ;;  %2159 = vmatmul.mubr.msk.bf16.vlgmr.msra.gmra.mrb[0].mxu0 %vm287_vm1, %v1081_v42  ;;  %v825_v41 = vshrl.u32 %v2378_v31, 16  ;;  %v828_v42 = vshll.u32 %v2378_v31, 16 }
  0x49   : >> { %2163 = vmatpush3.bf16.msra.mxu0 %v2345_v43  ;;  %2068 = vmatprep.subr.bf16.mxu1 %v2421_v2  ;;  %v2384_v43 = vld [vmem:[%s2830_s1 + $0xf0] sm:$0xff]  }
  0x4a   : >> { %2164 = vmatprep.subr.bf16.mxu0 %v2421_v2  ;;  %2074 = vmatprep.mubr.msk.bf16.mxu1 %vm2422_vm0, %v2421_v2  ;;  %v830_v48 = vrot.slane %v828_v42, 2 }
  0x4b   : >> { %2170 = vmatprep.mubr.msk.bf16.mxu0 %vm2422_vm0, %v2421_v2 }
  0x4c   : >> { %2069 = vmatpush3.bf16.msra.mxu1 %v2346_v44  ;;  %v1495_v44 = vshrl.u32 %v2380_v33, 16 }
  0x4d   : >> { %2165 = vmatpush3.bf16.msra.mxu0 %v2347_v45  ;;  %2070 = vmatprep.subr.bf16.mxu1 %v2421_v2  ;;  %v1498_v45 = vshll.u32 %v2380_v33, 16 }
  0x4e   : >> { %2166 = vmatprep.subr.bf16.mxu0 %v2421_v2  ;;  %v1497_v50 = vrot.slane %v1495_v44, 1 }
  0x50   : >> { %2071 = vmatpush3.bf16.msra.mxu1 %v2348_v47  ;;  %v827_v47 = vrot.slane %v825_v41, 1 }
  0x51   : >> { %2167 = vmatpush3.bf16.msra.mxu0 %v2349_v51  ;;  %2072 = vmatprep.subr.bf16.mxu1 %v2421_v2  ;;  %v1500_v51 = vrot.slane %v1498_v45, 2 }
  0x52   : >> { %2168 = vmatprep.subr.bf16.mxu0 %v2421_v2 }
  0x53   : >> { %v1501_v54 = vor.u32 %v1500_v51, %v1497_v50 }
  0x54   : >> { %2073 = vmatpush3.bf16.msra.mxu1 %v2350_v53  ;;  %v831_v53 = vor.u32 %v830_v48, %v827_v47 }
  0x55   : >> { %2169 = vmatpush3.bf16.msra.mxu0 %v2351_v57  ;;  %2078 = vmatprep.subr.bf16.mxu1 %v2421_v2 }
  0x56   : >> { %2174 = vmatprep.subr.bf16.mxu0 %v2421_v2 }
  0x57   : >> { %2075 = vmatmul.mubr.msk.bf16.vlgmr.msra.gmra.mrb[0].mxu1 %vm287_vm1, %v496_v58 }
  0x58   : >> { %2079 = vmatpush3.bf16.msra.mxu1 %v2352_v59  ;;  %2171 = vmatmul.mubr.msk.bf16.vlgmr.msra.gmra.mrb[0].mxu0 %vm287_vm1, %v1166_v60 }
  0x59   : >> { %2175 = vmatpush3.bf16.msra.mxu0 %v2353_v61  ;;  %2080 = vmatprep.subr.bf16.mxu1 %v2421_v2 }
  0x5a   : >> { %2176 = vmatprep.subr.bf16.mxu0 %v2421_v2  ;;  %2086 = vmatprep.mubr.msk.bf16.mxu1 %vm2422_vm0, %v2421_v2 }
  0x5b   : >> { %2182 = vmatprep.mubr.msk.bf16.mxu0 %vm2422_vm0, %v2421_v2 }
  0x5c   : >> { %2081 = vmatpush3.bf16.msra.mxu1 %v2354_v62 }
  0x5d   : >> { %2177 = vmatpush3.bf16.msra.mxu0 %v2355_v63  ;;  %2082 = vmatprep.subr.bf16.mxu1 %v2421_v2 }
  0x5e   : >> { %2178 = vmatprep.subr.bf16.mxu0 %v2421_v2 }
  0x60   : >> { %2083 = vmatpush3.bf16.msra.mxu1 %v2356_v0 }
  0x61   : >> { %2179 = vmatpush3.bf16.msra.mxu0 %v2357_v1  ;;  %2084 = vmatprep.subr.bf16.mxu1 %v2421_v2 }
  0x62   : >> { %2180 = vmatprep.subr.bf16.mxu0 %v2421_v2 }
  0x64   : >> { %2085 = vmatpush3.bf16.msra.mxu1 %v2358_v3 }
  0x65   : >> { %2181 = vmatpush3.bf16.msra.mxu0 %v2359_v4  ;;  %2090 = vmatprep.subr.bf16.mxu1 %v2421_v2 }
  0x66   : >> { %2186 = vmatprep.subr.bf16.mxu0 %v2421_v2 }
  0x67   : >> { %2087 = vmatmul.mubr.msk.bf16.vlgmr.msra.gmra.mrb[0].mxu1 %vm287_vm1, %v1776_v5 }
  0x68   : >> { %2091 = vmatpush3.bf16.msra.mxu1 %v2361_v6  ;;  %2183 = vmatmul.mubr.msk.bf16.vlgmr.msra.gmra.mrb[0].mxu0 %vm287_vm1, %v1890_v7 }
  0x69   : >> { %2187 = vmatpush3.bf16.msra.mxu0 %v2363_v8  ;;  %2092 = vmatprep.subr.bf16.mxu1 %v2421_v2 }
  0x6a   : >> { %2188 = vmatprep.subr.bf16.mxu0 %v2421_v2  ;;  %2098 = vmatprep.mubr.msk.bf16.mxu1 %vm2422_vm0, %v2421_v2 }
  0x6b   : >> { %2194 = vmatprep.mubr.msk.bf16.mxu0 %vm2422_vm0, %v2421_v2 }
  0x6c   : >> { %2093 = vmatpush3.bf16.msra.mxu1 %v2364_v11 }
  0x6d   : >> { %2189 = vmatpush3.bf16.msra.mxu0 %v2365_v12  ;;  %2094 = vmatprep.subr.bf16.mxu1 %v2421_v2 }
  0x6e   : >> { %2190 = vmatprep.subr.bf16.mxu0 %v2421_v2 }
  0x70   : >> { %2095 = vmatpush3.bf16.msra.mxu1 %v2366_v15  ;;  %v1579_v15 = vld [vmem:[%s2832_s3] sm:$0x1] }
  0x71   : >> { %2191 = vmatpush3.bf16.msra.mxu0 %v2367_v16  ;;  %2096 = vmatprep.subr.bf16.mxu1 %v2421_v2 }
  0x72   : >> { %2192 = vmatprep.subr.bf16.mxu0 %v2421_v2 }
  0x74   : >> { %2097 = vmatpush3.bf16.msra.mxu1 %v2368_v21 }
  0x75   : >> { %2193 = vmatpush3.bf16.msra.mxu0 %v2369_v22  ;;  %2102 = vmatprep.subr.bf16.mxu1 %v2421_v2 }
  0x76   : >> { %2198 = vmatprep.subr.bf16.mxu0 %v2421_v2 }
  0x77   : >> { %2099 = vmatmul.mubr.msk.bf16.vlgmr.msra.gmra.mrb[0].mxu1 %vm287_vm1, %v664_v23 }
  0x78   : >> { %2103 = vmatpush3.bf16.msra.mxu1 %v2370_v25  ;;  %2195 = vmatmul.mubr.msk.bf16.vlgmr.msra.gmra.mrb[0].mxu0 %vm287_vm1, %v1334_v24 }
  0x79   : >> { %2199 = vmatpush3.bf16.msra.mxu0 %v2371_v26  ;;  %2104 = vmatprep.subr.bf16.mxu1 %v2421_v2 }
  0x7a   : >> { %2200 = vmatprep.subr.bf16.mxu0 %v2421_v2  ;;  %2110 = vmatprep.mubr.msk.bf16.mxu1 %vm2422_vm0, %v2421_v2 }
  0x7b   : >> { %2206 = vmatprep.mubr.msk.bf16.mxu0 %vm2422_vm0, %v2421_v2 }
  0x7c   : >> { %2105 = vmatpush3.bf16.msra.mxu1 %v2372_v27 }
  0x7d   : >> { %2201 = vmatpush3.bf16.msra.mxu0 %v2373_v28  ;;  %2106 = vmatprep.subr.bf16.mxu1 %v2421_v2 }
  0x7e   : >> { %2202 = vmatprep.subr.bf16.mxu0 %v2421_v2 }
  0x80   : >> { %2107 = vmatpush3.bf16.msra.mxu1 %v2374_v29 }
  0x81   : >> { %2203 = vmatpush3.bf16.msra.mxu0 %v2375_v30  ;;  %2108 = vmatprep.subr.bf16.mxu1 %v2421_v2 }
  0x82   : >> { %2204 = vmatprep.subr.bf16.mxu0 %v2421_v2 }
  0x84   : >> { %2109 = vmatpush3.bf16.msra.mxu1 %v2376_v32 }
  0x85   : >> { %2205 = vmatpush3.bf16.msra.mxu0 %v2377_v34  ;;  %2114 = vmatprep.subr.bf16.mxu1 %v2421_v2 }
  0x86   : >> { %2210 = vmatprep.subr.bf16.mxu0 %v2421_v2 }
  0x87   : >> { %2111 = vmatmul.mubr.msk.bf16.vlgmr.msra.gmra.mrb[0].mxu1 %vm287_vm1, %v746_v35 }
  0x88   : >> { %2115 = vmatpush3.bf16.msra.mxu1 %v2379_v36  ;;  %2207 = vmatmul.mubr.msk.bf16.vlgmr.msra.gmra.mrb[0].mxu0 %vm287_vm1, %v1416_v37 }
  0x89   : >> { %2211 = vmatpush3.bf16.msra.mxu0 %v2381_v38  ;;  %2116 = vmatprep.subr.bf16.mxu1 %v2421_v2 }
  0x8a   : >> { %2212 = vmatprep.subr.bf16.mxu0 %v2421_v2  ;;  %2122 = vmatprep.mubr.msk.bf16.mxu1 %vm2422_vm0, %v2421_v2 }
  0x8b   : >> { %2218 = vmatprep.mubr.msk.bf16.mxu0 %vm2422_vm0, %v2421_v2 }
  0x8c   : >> { %2117 = vmatpush3.bf16.msra.mxu1 %v2382_v39 }
  0x8d   : >> { %2213 = vmatpush3.bf16.msra.mxu0 %v2383_v40  ;;  %2118 = vmatprep.subr.bf16.mxu1 %v2421_v2 }
  0x8e   : >> { %2214 = vmatprep.subr.bf16.mxu0 %v2421_v2 }
  0x90   : >> { %2119 = vmatpush3.bf16.msra.mxu1 %v2384_v43 }
  0x91   : >> { %2215 = vmatpush3.bf16.msra.mxu0 %v2385_v46  ;;  %2120 = vmatprep.subr.bf16.mxu1 %v2421_v2 }
  0x92   : >> { %2216 = vmatprep.subr.bf16.mxu0 %v2421_v2  ;;  %v1576_v2 = vld [vmem:[%s1572_s27] sm:$0x3] }
  0x94   : >> { %2121 = vmatpush3.bf16.msra.mxu1 %v2386_v49 }
  0x95   : >> { %2217 = vmatpush3.bf16.msra.mxu0 %v2387_v52 }
  0x97   : >> { %2123 = vmatmul.mubr.msk.bf16.vlgmr.msra.gmra.mrb[0].mxu1 %vm287_vm1, %v831_v53 }
  0x98   : >> { %2219 = vmatmul.mubr.msk.bf16.vlgmr.msra.gmra.mrb[0].mxu0 %vm287_vm1, %v1501_v54 }
 0x16a   : >> { %v893_v55 = vpop.f32.mrb[0].mxu1 }
 0x16b   : >> { %v1563_v56 = vpop.f32.mrb[0].mxu0  ;;  %v2124_v57 = vpop.f32.mrb[1].mxu1 }
 0x16c   : >> { %v2222_v58 = vadd.f32 %v1563_v56, %v893_v55  ;;  %v2220_v59 = vpop.f32.mrb[1].mxu0  ;;  %v896_v60 = vpop.f32.mrb[2].mxu1 }
 0x16d   : >> { %v1566_v61 = vpop.f32.mrb[2].mxu0  ;;  %v2125_v62 = vpop.f32.mrb[3].mxu1 }
 0x16e   : >> { %v1570_v63 = vpack.c.bf16 %v2222_v58, %v2222_v58  ;;  %v1581_v0 = vsel %vm1580_vm4, %v2222_v58, 0.0  ;;  %v1591_v1 = vmul.f32 %v2222_v58, %v2222_v58  ;;  %v2221_v3 = vpop.f32.mrb[3].mxu0 }
 0x16f   : >> { %v1582_v4 = vrot.slane %v1581_v0, 4 }
 0x170   : >> { %v1577_v5 = vsel %vm1575_vm5, %v1570_v63, %v1576_v2  ;;  %v1592_v6 = vsel %vm1580_vm4, %v1591_v1, 0.0 }
 0x171   : >> { %1578 = vst [vmem:[%s1572_s27] sm:$0x3] %v1577_v5  ;;  %v1583_v7 = vadd.f32 %v1582_v4, %v1581_v0  ;;  %v1593_v8 = vrot.slane %v1592_v6, 4 }
 0x173   : >> { %v1584_v9 = vrot.slane %v1583_v7, 2  ;;  %v1594_v10 = vadd.f32 %v1593_v8, %v1592_v6 }
 0x175   : >> { %v1585_v11 = vadd.f32 %v1584_v9, %v1583_v7  ;;  %v1595_v12 = vrot.slane %v1594_v10, 2 }
 0x177   : >> { %v1586_v13 = vrot.slane %v1585_v11, 1  ;;  %v1596_v14 = vadd.f32 %v1595_v12, %v1594_v10 }
 0x179   : >> { %v1587_v16 = vadd.f32 %v1586_v13, %v1585_v11  ;;  %v1597_v17 = vrot.slane %v1596_v14, 1  ;;  %230 = sbr.rel (!%p228_p6) target bundleno = 22 (0x16), region = 105 }
 0x17b   : >> { %v1588_v19 = vadd.f32 %v1587_v16, %v1579_v15  ;;  %v1598_v20 = vadd.f32 %v1597_v17, %v1596_v14 }
 0x17d   : >> { %1589 = vst [vmem:[%s2832_s3] sm:$0x1] %v1588_v19  ;;  %v1599_v21 = vadd.f32 %v1598_v20, %v1590_v18 }
 0x17f   : >> { %1600 = vst [vmem:[%s2833_s4] sm:$0x1] %v1599_v21 }
 0x180 PF: > { %s15_s17 = sadd.s32 1, %s2414_s17   ;;  %s2834_s15 = smov %s2410_s16 }
 0x181   : > { %p12_p7 = scmp.ge.s32.totalorder %s15_s17, 4   ;;  %s2835_s16 = smov %s2837_s18 }
 0x183   :  { %14 = sbr.rel (!%p12_p7) target bundleno = 2 (0x2), region = 116 }

// kernel: _lambda_.15
= control target key start
LH: loop header
LB: loop body
LE: loop exit
PB: predicated region body
PF: predicated region fallthrough
CT: control target
= control target key end

     0   :  { %s3243_s12 = smov 0   ;;  %s3245_s13 = smov 0   ;;  %s3860_s0 = inlined_call_operand.vmem [shape: bf16[2,5,5,128], index: 0, kind: input, shape index: {}]   ;;  %s3861_s1 = inlined_call_operand.vmem [shape: bf16[16,128,128], index: 1, kind: input, shape index: {}]   ;;  %s3862_s2 = inlined_call_operand.vmem [shape: f32[1,128], index: 2, kind: input, shape index: {}]   ;;  %s3863_s3 = inlined_call_operand.vmem [shape: bf16[2,2,2,128], index: 3, kind: output, shape index: {}]  }
   0x1   :  { %s3247_s14 = smov 0  }
   0x2 LB: > { %s25_s15 = sadd.s32 1, %s3211_s13  ;;  %p2148_p0 = scmp.ge.s32.totalorder %s3215_s14, 1  ;;  %s3215_s14 = sphi %s3247_s14, %s13_s14   ;;  %s3211_s13 = sphi %s3245_s13, %s3865_s13   ;;  %s3207_s12 = sphi %s3243_s12, %s3864_s12  }
   0x3   : > { %p27_p1 = scmp.ge.s32.totalorder %s25_s15, 2  ;;  %p151_p2 = scmp.lt.s32.totalorder %s3215_s14, 3 }
   0x5   : > { %s3867_s15 = smov (%p27_p1, %s25_s15), 0  ;;  %p152_p3 = pnand %p2148_p0, %p151_p2 }
   0x6   : > { %p178_p4 = scmp.lt.s32.totalorder (!%p152_p3), %s3207_s12, 1  ;;  %v3264_v0 = vld [vmem:[%s3862_s2] ss:$0 sm:$0xff] (!%p152_p3)  ;;  %s3276_s26 = smov (!%p152_p3), 0  }
   0x7   : > { %155 = sbr.rel (%p152_p3) target bundleno = 496 (0x1f0), region = 32 }
   0xe   : > { %s3869_s12 = smov (!%p178_p4, %s3207_s12), 1 }
   0xf   : > { %s3014_s18 = smul.u32 20, %s3869_s12  ;;  %s2150_s19 = sshll.u32 %s3869_s12, 1 }
  0x10   : > { %s3269_s22 = scalar_lea.vmem %s3863_s3, %s2150_s19 }
  0x11   : > { %s3274_s25 = scalar_lea.vmem %s3860_s0, %s3014_s18 }
  0x12 LB: >> { %v3049_v1 = vld [vmem:[%s3861_s1 + $0x40] sm:$0xff]   ;;  %v3221_v2 = vmov 0.0   ;;  %v3051_v4 = vld [vmem:[%s3861_s1 + $0x48] sm:$0xff]   ;;  %vm3222_vm0 = vmmov 0   ;;  %v3053_v6 = vld [vmem:[%s3861_s1 + $0x50] sm:$0xff]   ;;  %s2151_s17 = sshll.u32 %s3219_s26, 2  ;;  %s3219_s26 = sphi %s3276_s26, %s200_s26  }
  0x13   : >> { %2694 = vmatprep.subr.bf16.mxu0 %v3221_v2  ;;  %2714 = vmatprep.subr.bf16.mxu1 %v3221_v2  ;;  %v3050_v3 = vld [vmem:[%s3861_s1] sm:$0xff]   ;;  %v3052_v5 = vld [vmem:[%s3861_s1 + $0x8] sm:$0xff]   ;;  %v3054_v7 = vld [vmem:[%s3861_s1 + $0x10] sm:$0xff]   ;;  %s3319_s20 = scalar_lea.vmem %s3274_s25, %s2151_s17 }
  0x14   : >> { %2695 = vmatpush3.bf16.msra.mxu0 %v3049_v1  ;;  %2710 = vmatprep.mubr.msk.bf16.mxu0 %vm3222_vm0, %v3221_v2  ;;  %v3055_v8 = vld [vmem:[%s3861_s1 + $0x58] sm:$0xff]   ;;  %v3057_v10 = vld [vmem:[%s3861_s1 + $0x60] sm:$0xff]   ;;  %v3059_v13 = vld [vmem:[%s3861_s1 + $0x68] sm:$0xff]  }
  0x15   : >> { %2715 = vmatpush3.bf16.msra.mxu1 %v3050_v3  ;;  %2696 = vmatprep.subr.bf16.mxu0 %v3221_v2  ;;  %v3056_v9 = vld [vmem:[%s3861_s1 + $0x18] sm:$0xff]   ;;  %v3058_v11 = vld [vmem:[%s3861_s1 + $0x20] sm:$0xff]   ;;  %v3060_v14 = vld [vmem:[%s3861_s1 + $0x28] sm:$0xff]  }
  0x16   : >> { %2716 = vmatprep.subr.bf16.mxu1 %v3221_v2  ;;  %2730 = vmatprep.mubr.msk.bf16.mxu1 %vm3222_vm0, %v3221_v2  ;;  %v3065_v12 = vld [vmem:[%s3319_s20] ss:$0 sps:$4 sm:$0x33]   ;;  %v3061_v16 = vld [vmem:[%s3861_s1 + $0x70] sm:$0xff]   ;;  %v3063_v20 = vld [vmem:[%s3861_s1 + $0x78] sm:$0xff]  }
  0x17   : >> { %v245_v15 = vshll.u32 %v3065_v12, 16  ;;  %v3062_v17 = vld [vmem:[%s3861_s1 + $0x30] sm:$0xff]   ;;  %v243_v18 = vshrl.u32 %v3065_v12, 16  ;;  %v3064_v21 = vld [vmem:[%s3861_s1 + $0x38] sm:$0xff]   ;;  %v3066_v23 = vld [vmem:[%s3861_s1 + $0x80] sm:$0xff]  }
  0x18   : >> { %2697 = vmatpush3.bf16.msra.mxu0 %v3051_v4  ;;  %v204_v24 = vld [vmem:[%s3319_s20] sm:$0x1]  ;;  %v3068_v26 = vld [vmem:[%s3861_s1 + $0x88] sm:$0xff]   ;;  %v3070_v28 = vld [vmem:[%s3861_s1 + $0x90] sm:$0xff]  }
  0x19   : >> { %2717 = vmatpush3.bf16.msra.mxu1 %v3052_v5  ;;  %2698 = vmatprep.subr.bf16.mxu0 %v3221_v2  ;;  %v247_v19 = vrot.slane %v245_v15, 1  ;;  %v3067_v25 = vld [vmem:[%s3861_s1 + $0xc0] sm:$0xff]   ;;  %v3069_v27 = vld [vmem:[%s3861_s1 + $0xc8] sm:$0xff]   ;;  %v3071_v29 = vld [vmem:[%s3861_s1 + $0xd0] sm:$0xff]  }
  0x1a   : >> { %2718 = vmatprep.subr.bf16.mxu1 %v3221_v2  ;;  %v3072_v30 = vld [vmem:[%s3861_s1 + $0x98] sm:$0xff]   ;;  %v3074_v32 = vld [vmem:[%s3861_s1 + $0xa0] sm:$0xff]   ;;  %v3076_v35 = vld [vmem:[%s3861_s1 + $0xa8] sm:$0xff]  }
  0x1b   : >> { %v248_v22 = vor.u32 %v247_v19, %v243_v18  ;;  %v3073_v31 = vld [vmem:[%s3861_s1 + $0xd8] sm:$0xff]   ;;  %v3075_v33 = vld [vmem:[%s3861_s1 + $0xe0] sm:$0xff]   ;;  %v3077_v36 = vld [vmem:[%s3861_s1 + $0xe8] sm:$0xff]  }
  0x1c   : >> { %2699 = vmatpush3.bf16.msra.mxu0 %v3053_v6  ;;  %v3083_v34 = vld [vmem:[%s3319_s20] ss:$0 sps:$4 sm:$0x66]   ;;  %v3078_v37 = vld [vmem:[%s3861_s1 + $0xb0] sm:$0xff]   ;;  %v3080_v42 = vld [vmem:[%s3861_s1 + $0xb8] sm:$0xff]  }
  0x1d   : >> { %2719 = vmatpush3.bf16.msra.mxu1 %v3054_v7  ;;  %2700 = vmatprep.subr.bf16.mxu0 %v3221_v2  ;;  %v3079_v38 = vld [vmem:[%s3861_s1 + $0xf0] sm:$0xff]   ;;  %v560_v39 = vshrl.u32 %v3083_v34, 16  ;;  %v563_v40 = vshll.u32 %v3083_v34, 16  ;;  %v3082_v41 = vld [vmem:[%s3319_s20] ss:$0 sps:$4 sm:$0x22]  }
  0x1e   : >> { %2720 = vmatprep.subr.bf16.mxu1 %v3221_v2  ;;  %v3081_v45 = vld [vmem:[%s3861_s1 + $0xf8] sm:$0xff]   ;;  %v447_v46 = vrot.slane %v3082_v41, 1  ;;  %v3084_v48 = vld [vmem:[%s3861_s1 + $0x100] sm:$0xff]   ;;  %v3086_v50 = vld [vmem:[%s3861_s1 + $0x108] sm:$0xff]  }
  0x1f   : >> { %v562_v43 = vrot.slane %v560_v39, 1  ;;  %v565_v44 = vrot.slane %v563_v40, 2  ;;  %v3085_v49 = vld [vmem:[%s3861_s1 + $0x140] sm:$0xff]   ;;  %v3087_v51 = vld [vmem:[%s3861_s1 + $0x148] sm:$0xff]   ;;  %v3088_v52 = vld [vmem:[%s3861_s1 + $0x110] sm:$0xff]  }
  0x20   : >> { %2701 = vmatpush3.bf16.msra.mxu0 %v3055_v8  ;;  %v3089_v53 = vld [vmem:[%s3861_s1 + $0x150] sm:$0xff]   ;;  %v3090_v54 = vld [vmem:[%s3861_s1 + $0x118] sm:$0xff]   ;;  %v3092_v56 = vld [vmem:[%s3861_s1 + $0x120] sm:$0xff]  }
  0x21   : >> { %2721 = vmatpush3.bf16.msra.mxu1 %v3056_v9  ;;  %2702 = vmatprep.subr.bf16.mxu0 %v3221_v2  ;;  %v566_v47 = vor.u32 %v565_v44, %v562_v43  ;;  %v3091_v55 = vld [vmem:[%s3861_s1 + $0x158] sm:$0xff]   ;;  %v3093_v57 = vld [vmem:[%s3861_s1 + $0x160] sm:$0xff]   ;;  %v3094_v59 = vld [vmem:[%s3861_s1 + $0x128] sm:$0xff]  }
  0x22   : >> { %2722 = vmatprep.subr.bf16.mxu1 %v3221_v2  ;;  %v3100_v58 = vld [vmem:[%s3319_s20 + $0x4] ss:$0 sps:$4 sm:$0x33]   ;;  %v3095_v60 = vld [vmem:[%s3861_s1 + $0x168] sm:$0xff]   ;;  %v3096_v62 = vld [vmem:[%s3861_s1 + $0x130] sm:$0xff]  }
  0x23   : >> { %v791_v61 = vshll.u32 %v3100_v58, 16  ;;  %v3097_v63 = vld [vmem:[%s3861_s1 + $0x170] sm:$0xff]   ;;  %v3098_v1 = vld [vmem:[%s3861_s1 + $0x138] sm:$0xff]   ;;  %v789_v3 = vshrl.u32 %v3100_v58, 16  ;;  %v2236_v6 = vld [vmem:[%s3319_s20 + $0x4] sm:$0x1] }
  0x24   : >> { %2703 = vmatpush3.bf16.msra.mxu0 %v3057_v10  ;;  %v3099_v5 = vld [vmem:[%s3861_s1 + $0x178] sm:$0xff]   ;;  %v3101_v8 = vld [vmem:[%s3861_s1 + $0x180] sm:$0xff]   ;;  %v3103_v10 = vld [vmem:[%s3861_s1 + $0x188] sm:$0xff]  }
  0x25   : >> { %2723 = vmatpush3.bf16.msra.mxu1 %v3058_v11  ;;  %2704 = vmatprep.subr.bf16.mxu0 %v3221_v2  ;;  %v793_v4 = vrot.slane %v791_v61, 1  ;;  %v3102_v9 = vld [vmem:[%s3861_s1 + $0x1c0] sm:$0xff]   ;;  %v3104_v11 = vld [vmem:[%s3861_s1 + $0x1c8] sm:$0xff]   ;;  %v3105_v12 = vld [vmem:[%s3861_s1 + $0x190] sm:$0xff]  }
  0x26   : >> { %2724 = vmatprep.subr.bf16.mxu1 %v3221_v2  ;;  %v3108_v15 = vld [vmem:[%s3861_s1 + $0x1d8] sm:$0xff]   ;;  %v3118_v18 = vld [vmem:[%s3319_s20 + $0x4] ss:$0 sps:$4 sm:$0x66]   ;;  %v3111_v19 = vld [vmem:[%s3861_s1 + $0x1a8] sm:$0xff]  }
  0x27   : >> { %v794_v7 = vor.u32 %v793_v4, %v789_v3  ;;  %v3121_v34 = vld [vmem:[%s3861_s1 + $0x208] sm:$0xff]   ;;  %v3126_v39 = vld [vmem:[%s3861_s1 + $0x258] sm:$0xff]   ;;  %v3127_v40 = vld [vmem:[%s3861_s1 + $0x220] sm:$0xff]  }
  0x28   : >> { %2705 = vmatpush3.bf16.msra.mxu0 %v3059_v13  ;;  %v3106_v13 = vld [vmem:[%s3861_s1 + $0x1d0] sm:$0xff]   ;;  %v3128_v41 = vld [vmem:[%s3861_s1 + $0x260] sm:$0xff]   ;;  %v3135_v43 = vld [vmem:[%s3319_s20 + $0x8] ss:$0 sps:$4 sm:$0x33]  }
  0x29   : >> { %2725 = vmatpush3.bf16.msra.mxu1 %v3060_v14  ;;  %2706 = vmatprep.subr.bf16.mxu0 %v3221_v2  ;;  %v3107_v14 = vld [vmem:[%s3861_s1 + $0x198] sm:$0xff]   ;;  %v3130_v44 = vld [vmem:[%s3861_s1 + $0x268] sm:$0xff]   ;;  %v3140_v58 = vld [vmem:[%s3861_s1 + $0x290] sm:$0xff]  }
  0x2a   : >> { %2726 = vmatprep.subr.bf16.mxu1 %v3221_v2  ;;  %v3143_v61 = vld [vmem:[%s3861_s1 + $0x2d8] sm:$0xff]   ;;  %v3153_v3 = vld [vmem:[%s3319_s20 + $0x8] ss:$0 sps:$4 sm:$0x66]  }
  0x2b   : >> { %v3147_v4 = vld [vmem:[%s3861_s1 + $0x2e8] sm:$0xff]  }
  0x2c   : >> { %2707 = vmatpush3.bf16.msra.mxu0 %v3061_v16  ;;  %v3109_v16 = vld [vmem:[%s3861_s1 + $0x1a0] sm:$0xff]  }
  0x2d   : >> { %2727 = vmatpush3.bf16.msra.mxu1 %v3062_v17  ;;  %2708 = vmatprep.subr.bf16.mxu0 %v3221_v2  ;;  %v3110_v17 = vld [vmem:[%s3861_s1 + $0x1e0] sm:$0xff]  }
  0x2e   : >> { %2728 = vmatprep.subr.bf16.mxu1 %v3221_v2 }
  0x30   : >> { %2709 = vmatpush3.bf16.msra.mxu0 %v3063_v20  ;;  %v3112_v20 = vld [vmem:[%s3861_s1 + $0x1e8] sm:$0xff]  }
  0x31   : >> { %2729 = vmatpush3.bf16.msra.mxu1 %v3064_v21  ;;  %2734 = vmatprep.subr.bf16.mxu0 %v3221_v2  ;;  %v3113_v21 = vld [vmem:[%s3861_s1 + $0x1b0] sm:$0xff]  }
  0x32   : >> { %2754 = vmatprep.subr.bf16.mxu1 %v3221_v2 }
  0x33   : >> { %2711 = vmatmul.mubr.bf16.vlgmr.msra.gmra.mrb[0].mxu0 %v248_v22  ;;  %v3117_v22 = vld [vmem:[%s3319_s20 + $0x4] ss:$0 sps:$4 sm:$0x22]  }
  0x34   : >> { %2731 = vmatmul.mubr.bf16.vlgmr.msra.gmra.mrb[0].mxu1 %v204_v24  ;;  %2735 = vmatpush3.bf16.msra.mxu0 %v3066_v23  ;;  %v1019_v23 = vshrl.u32 %v3118_v18, 16  ;;  %v1022_v24 = vshll.u32 %v3118_v18, 16  ;;  %v3156_v18 = vld [vmem:[%s3861_s1 + $0x308] sm:$0xff]  }
  0x35   : >> { %2755 = vmatpush3.bf16.msra.mxu1 %v3067_v25  ;;  %2736 = vmatprep.subr.bf16.mxu0 %v3221_v2  ;;  %v3114_v25 = vld [vmem:[%s3861_s1 + $0x1f0] sm:$0xff]  }
  0x36   : >> { %2756 = vmatprep.subr.bf16.mxu1 %v3221_v2  ;;  %2750 = vmatprep.mubr.msk.bf16.mxu0 %vm3222_vm0, %v3221_v2 }
  0x37   : >> { %2770 = vmatprep.mubr.msk.bf16.mxu1 %vm3222_vm0, %v3221_v2 }
  0x38   : >> { %2737 = vmatpush3.bf16.msra.mxu0 %v3068_v26  ;;  %v3115_v26 = vld [vmem:[%s3861_s1 + $0x1b8] sm:$0xff]  }
  0x39   : >> { %2757 = vmatpush3.bf16.msra.mxu1 %v3069_v27  ;;  %2738 = vmatprep.subr.bf16.mxu0 %v3221_v2  ;;  %v3116_v27 = vld [vmem:[%s3861_s1 + $0x1f8] sm:$0xff]  }
  0x3a   : >> { %2758 = vmatprep.subr.bf16.mxu1 %v3221_v2 }
  0x3c   : >> { %2739 = vmatpush3.bf16.msra.mxu0 %v3070_v28  ;;  %v1021_v28 = vrot.slane %v1019_v23, 1  ;;  %v3161_v23 = vld [vmem:[%s3861_s1 + $0x358] sm:$0xff]  }
  0x3d   : >> { %2759 = vmatpush3.bf16.msra.mxu1 %v3071_v29  ;;  %2740 = vmatprep.subr.bf16.mxu0 %v3221_v2  ;;  %v1024_v29 = vrot.slane %v1022_v24, 2  ;;  %v3162_v24 = vld [vmem:[%s3861_s1 + $0x320] sm:$0xff]  }
  0x3e   : >> { %2760 = vmatprep.subr.bf16.mxu1 %v3221_v2 }
  0x40   : >> { %2741 = vmatpush3.bf16.msra.mxu0 %v3072_v30  ;;  %v906_v30 = vrot.slane %v3117_v22, 1  ;;  %v3160_v22 = vld [vmem:[%s3861_s1 + $0x318] sm:$0xff]  }
  0x41   : >> { %2761 = vmatpush3.bf16.msra.mxu1 %v3073_v31  ;;  %2742 = vmatprep.subr.bf16.mxu0 %v3221_v2  ;;  %v1025_v31 = vor.u32 %v1024_v29, %v1021_v28  ;;  %v3165_v28 = vld [vmem:[%s3861_s1 + $0x368] sm:$0xff]   ;;  %v3166_v29 = vld [vmem:[%s3861_s1 + $0x330] sm:$0xff]  }
  0x42   : >> { %2762 = vmatprep.subr.bf16.mxu1 %v3221_v2 }
  0x44   : >> { %2743 = vmatpush3.bf16.msra.mxu0 %v3074_v32  ;;  %v3119_v32 = vld [vmem:[%s3861_s1 + $0x200] sm:$0xff]  }
  0x45   : >> { %2763 = vmatpush3.bf16.msra.mxu1 %v3075_v33  ;;  %2744 = vmatprep.subr.bf16.mxu0 %v3221_v2  ;;  %v3120_v33 = vld [vmem:[%s3861_s1 + $0x240] sm:$0xff]  }
  0x46   : >> { %2764 = vmatprep.subr.bf16.mxu1 %v3221_v2 }
  0x48   : >> { %2745 = vmatpush3.bf16.msra.mxu0 %v3076_v35  ;;  %v3122_v35 = vld [vmem:[%s3861_s1 + $0x248] sm:$0xff]  }
  0x49   : >> { %2765 = vmatpush3.bf16.msra.mxu1 %v3077_v36  ;;  %2746 = vmatprep.subr.bf16.mxu0 %v3221_v2  ;;  %v3123_v36 = vld [vmem:[%s3861_s1 + $0x210] sm:$0xff]  }
  0x4a   : >> { %2766 = vmatprep.subr.bf16.mxu1 %v3221_v2 }
  0x4c   : >> { %2747 = vmatpush3.bf16.msra.mxu0 %v3078_v37  ;;  %v3124_v37 = vld [vmem:[%s3861_s1 + $0x250] sm:$0xff]  }
  0x4d   : >> { %2767 = vmatpush3.bf16.msra.mxu1 %v3079_v38  ;;  %2748 = vmatprep.subr.bf16.mxu0 %v3221_v2  ;;  %v3125_v38 = vld [vmem:[%s3861_s1 + $0x218] sm:$0xff]  }
  0x4e   : >> { %2768 = vmatprep.subr.bf16.mxu1 %v3221_v2 }
  0x50   : >> { %2749 = vmatpush3.bf16.msra.mxu0 %v3080_v42  ;;  %v3129_v42 = vld [vmem:[%s3861_s1 + $0x228] sm:$0xff]  }
  0x51   : >> { %2769 = vmatpush3.bf16.msra.mxu1 %v3081_v45  ;;  %2774 = vmatprep.subr.bf16.mxu0 %v3221_v2  ;;  %v3131_v45 = vld [vmem:[%s3861_s1 + $0x230] sm:$0xff]  }
  0x52   : >> { %2794 = vmatprep.subr.bf16.mxu1 %v3221_v2 }
  0x53   : >> { %2751 = vmatmul.mubr.bf16.vlgmr.msra.gmra.mrb[4].mxu0 %v447_v46  ;;  %v1250_v46 = vshll.u32 %v3135_v43, 16 }
  0x54   : >> { %2771 = vmatmul.mubr.bf16.vlgmr.msra.gmra.mrb[4].mxu1 %v566_v47  ;;  %2775 = vmatpush3.bf16.msra.mxu0 %v3084_v48  ;;  %v3132_v47 = vld [vmem:[%s3861_s1 + $0x270] sm:$0xff]   ;;  %v3133_v48 = vld [vmem:[%s3861_s1 + $0x238] sm:$0xff]  }
  0x55   : >> { %2795 = vmatpush3.bf16.msra.mxu1 %v3085_v49  ;;  %2776 = vmatprep.subr.bf16.mxu0 %v3221_v2  ;;  %v1248_v49 = vshrl.u32 %v3135_v43, 16  ;;  %v3176_v43 = vld [vmem:[%s3861_s1 + $0x3d0] sm:$0xff]  }
  0x56   : >> { %2796 = vmatprep.subr.bf16.mxu1 %v3221_v2  ;;  %2790 = vmatprep.mubr.msk.bf16.mxu0 %vm3222_vm0, %v3221_v2 }
  0x57   : >> { %2810 = vmatprep.mubr.msk.bf16.mxu1 %vm3222_vm0, %v3221_v2 }
  0x58   : >> { %2777 = vmatpush3.bf16.msra.mxu0 %v3086_v50  ;;  %v1252_v50 = vrot.slane %v1250_v46, 1  ;;  %v3179_v46 = vld [vmem:[%s3861_s1 + $0x3a0] sm:$0xff]  }
  0x59   : >> { %2797 = vmatpush3.bf16.msra.mxu1 %v3087_v51  ;;  %2778 = vmatprep.subr.bf16.mxu0 %v3221_v2  ;;  %v3134_v51 = vld [vmem:[%s3861_s1 + $0x278] sm:$0xff]  }
  0x5a   : >> { %2798 = vmatprep.subr.bf16.mxu1 %v3221_v2 }
  0x5c   : >> { %2779 = vmatpush3.bf16.msra.mxu0 %v3088_v52  ;;  %v2340_v52 = vld [vmem:[%s3319_s20 + $0x8] sm:$0x1] }
  0x5d   : >> { %2799 = vmatpush3.bf16.msra.mxu1 %v3089_v53  ;;  %2780 = vmatprep.subr.bf16.mxu0 %v3221_v2  ;;  %v1253_v53 = vor.u32 %v1252_v50, %v1248_v49  ;;  %v3188_v49 = vld [vmem:[%s3319_s20 + $0xc] ss:$0 sps:$4 sm:$0x66]  }
  0x5e   : >> { %2800 = vmatprep.subr.bf16.mxu1 %v3221_v2  ;;  %v3182_v50 = vld [vmem:[%s3861_s1 + $0x3e8] sm:$0xff]  }
  0x60   : >> { %2781 = vmatpush3.bf16.msra.mxu0 %v3090_v54  ;;  %v3136_v54 = vld [vmem:[%s3861_s1 + $0x280] sm:$0xff]  }
  0x61   : >> { %2801 = vmatpush3.bf16.msra.mxu1 %v3091_v55  ;;  %2782 = vmatprep.subr.bf16.mxu0 %v3221_v2  ;;  %v3137_v55 = vld [vmem:[%s3861_s1 + $0x2c0] sm:$0xff]  }
  0x62   : >> { %2802 = vmatprep.subr.bf16.mxu1 %v3221_v2 }
  0x64   : >> { %2783 = vmatpush3.bf16.msra.mxu0 %v3092_v56  ;;  %v3138_v56 = vld [vmem:[%s3861_s1 + $0x288] sm:$0xff]  }
  0x65   : >> { %2803 = vmatpush3.bf16.msra.mxu1 %v3093_v57  ;;  %2784 = vmatprep.subr.bf16.mxu0 %v3221_v2  ;;  %v3139_v57 = vld [vmem:[%s3861_s1 + $0x2c8] sm:$0xff]  }
  0x66   : >> { %2804 = vmatprep.subr.bf16.mxu1 %v3221_v2 }
  0x68   : >> { %2785 = vmatpush3.bf16.msra.mxu0 %v3094_v59  ;;  %v3141_v59 = vld [vmem:[%s3861_s1 + $0x2d0] sm:$0xff]  }
  0x69   : >> { %2805 = vmatpush3.bf16.msra.mxu1 %v3095_v60  ;;  %2786 = vmatprep.subr.bf16.mxu0 %v3221_v2  ;;  %v3142_v60 = vld [vmem:[%s3861_s1 + $0x298] sm:$0xff]  }
  0x6a   : >> { %2806 = vmatprep.subr.bf16.mxu1 %v3221_v2 }
  0x6c   : >> { %2787 = vmatpush3.bf16.msra.mxu0 %v3096_v62  ;;  %v3144_v62 = vld [vmem:[%s3861_s1 + $0x2a0] sm:$0xff]  }
  0x6d   : >> { %2807 = vmatpush3.bf16.msra.mxu1 %v3097_v63  ;;  %2788 = vmatprep.subr.bf16.mxu0 %v3221_v2  ;;  %v3145_v63 = vld [vmem:[%s3861_s1 + $0x2e0] sm:$0xff]  }
  0x6e   : >> { %2808 = vmatprep.subr.bf16.mxu1 %v3221_v2 }
  0x70   : >> { %2789 = vmatpush3.bf16.msra.mxu0 %v3098_v1  ;;  %v3146_v1 = vld [vmem:[%s3861_s1 + $0x2a8] sm:$0xff]  }
  0x71   : >> { %2809 = vmatpush3.bf16.msra.mxu1 %v3099_v5  ;;  %2814 = vmatprep.subr.bf16.mxu0 %v3221_v2  ;;  %v3148_v5 = vld [vmem:[%s3861_s1 + $0x2b0] sm:$0xff]  }
  0x72   : >> { %2834 = vmatprep.subr.bf16.mxu1 %v3221_v2 }
  0x73   : >> { %2791 = vmatmul.mubr.bf16.vlgmr.msra.gmra.mrb[8].mxu0 %v2236_v6  ;;  %v1478_v6 = vshrl.u32 %v3153_v3, 16 }
  0x74   : >> { %2811 = vmatmul.mubr.bf16.vlgmr.msra.gmra.mrb[8].mxu1 %v794_v7  ;;  %2815 = vmatpush3.bf16.msra.mxu0 %v3101_v8  ;;  %v1481_v7 = vshll.u32 %v3153_v3, 16  ;;  %v3149_v8 = vld [vmem:[%s3861_s1 + $0x2f0] sm:$0xff]   ;;  %v3185_v3 = vld [vmem:[%s3861_s1 + $0x3b8] sm:$0xff]  }
  0x75   : >> { %2835 = vmatpush3.bf16.msra.mxu1 %v3102_v9  ;;  %2816 = vmatprep.subr.bf16.mxu0 %v3221_v2  ;;  %v3152_v9 = vld [vmem:[%s3319_s20 + $0x8] ss:$0 sps:$4 sm:$0x22]  }
  0x76   : >> { %2836 = vmatprep.subr.bf16.mxu1 %v3221_v2  ;;  %2830 = vmatprep.mubr.msk.bf16.mxu0 %vm3222_vm0, %v3221_v2 }
  0x77   : >> { %2850 = vmatprep.mubr.msk.bf16.mxu1 %vm3222_vm0, %v3221_v2 }
  0x78   : >> { %2817 = vmatpush3.bf16.msra.mxu0 %v3103_v10  ;;  %v3150_v10 = vld [vmem:[%s3861_s1 + $0x2b8] sm:$0xff]  }
  0x79   : >> { %2837 = vmatpush3.bf16.msra.mxu1 %v3104_v11  ;;  %2818 = vmatprep.subr.bf16.mxu0 %v3221_v2  ;;  %v1480_v11 = vrot.slane %v1478_v6, 1  ;;  %v3186_v6 = vld [vmem:[%s3861_s1 + $0x3f8] sm:$0xff]  }
  0x7a   : >> { %2838 = vmatprep.subr.bf16.mxu1 %v3221_v2 }
  0x7c   : >> { %2819 = vmatpush3.bf16.msra.mxu0 %v3105_v12  ;;  %v1483_v12 = vrot.slane %v1481_v7, 2 }
  0x7d   : >> { %2839 = vmatpush3.bf16.msra.mxu1 %v3106_v13  ;;  %2820 = vmatprep.subr.bf16.mxu0 %v3221_v2  ;;  %v3151_v13 = vld [vmem:[%s3861_s1 + $0x2f8] sm:$0xff]  }
  0x7e   : >> { %2840 = vmatprep.subr.bf16.mxu1 %v3221_v2 }
  0x80   : >> { %2821 = vmatpush3.bf16.msra.mxu0 %v3107_v14  ;;  %v1365_v14 = vrot.slane %v3152_v9, 1 }
  0x81   : >> { %2841 = vmatpush3.bf16.msra.mxu1 %v3108_v15  ;;  %2822 = vmatprep.subr.bf16.mxu0 %v3221_v2  ;;  %v1484_v15 = vor.u32 %v1483_v12, %v1480_v11 }
  0x82   : >> { %2842 = vmatprep.subr.bf16.mxu1 %v3221_v2 }
  0x84   : >> { %2823 = vmatpush3.bf16.msra.mxu0 %v3109_v16  ;;  %v3154_v16 = vld [vmem:[%s3861_s1 + $0x300] sm:$0xff]  }
  0x85   : >> { %2843 = vmatpush3.bf16.msra.mxu1 %v3110_v17  ;;  %2824 = vmatprep.subr.bf16.mxu0 %v3221_v2  ;;  %v3155_v17 = vld [vmem:[%s3861_s1 + $0x340] sm:$0xff]  }
  0x86   : >> { %2844 = vmatprep.subr.bf16.mxu1 %v3221_v2 }
  0x88   : >> { %2825 = vmatpush3.bf16.msra.mxu0 %v3111_v19  ;;  %v3157_v19 = vld [vmem:[%s3861_s1 + $0x348] sm:$0xff]  }
  0x89   : >> { %2845 = vmatpush3.bf16.msra.mxu1 %v3112_v20  ;;  %2826 = vmatprep.subr.bf16.mxu0 %v3221_v2  ;;  %v3158_v20 = vld [vmem:[%s3861_s1 + $0x310] sm:$0xff]  }
  0x8a   : >> { %2846 = vmatprep.subr.bf16.mxu1 %v3221_v2 }
  0x8c   : >> { %2827 = vmatpush3.bf16.msra.mxu0 %v3113_v21  ;;  %v3159_v21 = vld [vmem:[%s3861_s1 + $0x350] sm:$0xff]  }
  0x8d   : >> { %2847 = vmatpush3.bf16.msra.mxu1 %v3114_v25  ;;  %2828 = vmatprep.subr.bf16.mxu0 %v3221_v2  ;;  %v3163_v25 = vld [vmem:[%s3861_s1 + $0x360] sm:$0xff]  }
  0x8e   : >> { %2848 = vmatprep.subr.bf16.mxu1 %v3221_v2 }
  0x90   : >> { %2829 = vmatpush3.bf16.msra.mxu0 %v3115_v26  ;;  %v3164_v26 = vld [vmem:[%s3861_s1 + $0x328] sm:$0xff]  }
  0x91   : >> { %2849 = vmatpush3.bf16.msra.mxu1 %v3116_v27  ;;  %2854 = vmatprep.subr.bf16.mxu0 %v3221_v2  ;;  %v3170_v27 = vld [vmem:[%s3319_s20 + $0xc] ss:$0 sps:$4 sm:$0x33]  }
  0x92   : >> { %2874 = vmatprep.subr.bf16.mxu1 %v3221_v2 }
  0x93   : >> { %2831 = vmatmul.mubr.bf16.vlgmr.msra.gmra.mrb[12].mxu0 %v906_v30  ;;  %v1709_v30 = vshll.u32 %v3170_v27, 16 }
  0x94   : >> { %2851 = vmatmul.mubr.bf16.vlgmr.msra.gmra.mrb[12].mxu1 %v1025_v31  ;;  %2855 = vmatpush3.bf16.msra.mxu0 %v3119_v32  ;;  %v3167_v31 = vld [vmem:[%s3861_s1 + $0x370] sm:$0xff]   ;;  %v3168_v32 = vld [vmem:[%s3861_s1 + $0x338] sm:$0xff]  }
  0x95   : >> { %2875 = vmatpush3.bf16.msra.mxu1 %v3120_v33  ;;  %2856 = vmatprep.subr.bf16.mxu0 %v3221_v2  ;;  %v1707_v33 = vshrl.u32 %v3170_v27, 16 }
  0x96   : >> { %2876 = vmatprep.subr.bf16.mxu1 %v3221_v2  ;;  %2870 = vmatprep.mubr.msk.bf16.mxu0 %vm3222_vm0, %v3221_v2 }
  0x97   : >> { %2890 = vmatprep.mubr.msk.bf16.mxu1 %vm3222_vm0, %v3221_v2 }
  0x98   : >> { %2857 = vmatpush3.bf16.msra.mxu0 %v3121_v34  ;;  %v1711_v34 = vrot.slane %v1709_v30, 1 }
  0x99   : >> { %2877 = vmatpush3.bf16.msra.mxu1 %v3122_v35  ;;  %2858 = vmatprep.subr.bf16.mxu0 %v3221_v2  ;;  %v3169_v35 = vld [vmem:[%s3861_s1 + $0x378] sm:$0xff]  }
  0x9a   : >> { %2878 = vmatprep.subr.bf16.mxu1 %v3221_v2 }
  0x9c   : >> { %2859 = vmatpush3.bf16.msra.mxu0 %v3123_v36  ;;  %v2444_v36 = vld [vmem:[%s3319_s20 + $0xc] sm:$0x1] }
  0x9d   : >> { %2879 = vmatpush3.bf16.msra.mxu1 %v3124_v37  ;;  %2860 = vmatprep.subr.bf16.mxu0 %v3221_v2  ;;  %v1712_v37 = vor.u32 %v1711_v34, %v1707_v33 }
  0x9e   : >> { %2880 = vmatprep.subr.bf16.mxu1 %v3221_v2 }
  0xa0   : >> { %2861 = vmatpush3.bf16.msra.mxu0 %v3125_v38  ;;  %v3171_v38 = vld [vmem:[%s3861_s1 + $0x380] sm:$0xff]  }
  0xa1   : >> { %2881 = vmatpush3.bf16.msra.mxu1 %v3126_v39  ;;  %2862 = vmatprep.subr.bf16.mxu0 %v3221_v2  ;;  %v3172_v39 = vld [vmem:[%s3861_s1 + $0x3c0] sm:$0xff]  }
  0xa2   : >> { %2882 = vmatprep.subr.bf16.mxu1 %v3221_v2 }
  0xa4   : >> { %2863 = vmatpush3.bf16.msra.mxu0 %v3127_v40  ;;  %v3173_v40 = vld [vmem:[%s3861_s1 + $0x388] sm:$0xff]  }
  0xa5   : >> { %2883 = vmatpush3.bf16.msra.mxu1 %v3128_v41  ;;  %2864 = vmatprep.subr.bf16.mxu0 %v3221_v2  ;;  %v3174_v41 = vld [vmem:[%s3861_s1 + $0x3c8] sm:$0xff]  }
  0xa6   : >> { %2884 = vmatprep.subr.bf16.mxu1 %v3221_v2 }
  0xa8   : >> { %2865 = vmatpush3.bf16.msra.mxu0 %v3129_v42  ;;  %v3175_v42 = vld [vmem:[%s3861_s1 + $0x390] sm:$0xff]  }
  0xa9   : >> { %2885 = vmatpush3.bf16.msra.mxu1 %v3130_v44  ;;  %2866 = vmatprep.subr.bf16.mxu0 %v3221_v2  ;;  %v3177_v44 = vld [vmem:[%s3861_s1 + $0x398] sm:$0xff]  }
  0xaa   : >> { %2886 = vmatprep.subr.bf16.mxu1 %v3221_v2 }
  0xac   : >> { %2867 = vmatpush3.bf16.msra.mxu0 %v3131_v45  ;;  %v3178_v45 = vld [vmem:[%s3861_s1 + $0x3d8] sm:$0xff]  }
  0xad   : >> { %2887 = vmatpush3.bf16.msra.mxu1 %v3132_v47  ;;  %2868 = vmatprep.subr.bf16.mxu0 %v3221_v2  ;;  %v3180_v47 = vld [vmem:[%s3861_s1 + $0x3e0] sm:$0xff]  }
  0xae   : >> { %2888 = vmatprep.subr.bf16.mxu1 %v3221_v2 }
  0xb0   : >> { %2869 = vmatpush3.bf16.msra.mxu0 %v3133_v48  ;;  %v3181_v48 = vld [vmem:[%s3861_s1 + $0x3a8] sm:$0xff]  }
  0xb1   : >> { %2889 = vmatpush3.bf16.msra.mxu1 %v3134_v51  ;;  %2894 = vmatprep.subr.bf16.mxu0 %v3221_v2 }
  0xb2   : >> { %2914 = vmatprep.subr.bf16.mxu1 %v3221_v2 }
  0xb3   : >> { %2871 = vmatmul.mubr.bf16.vlgmr.msra.gmra.mrb[16].mxu0 %v2340_v52 }
  0xb4   : >> { %2891 = vmatmul.mubr.bf16.vlgmr.msra.gmra.mrb[16].mxu1 %v1253_v53  ;;  %2895 = vmatpush3.bf16.msra.mxu0 %v3136_v54 }
  0xb5   : >> { %2915 = vmatpush3.bf16.msra.mxu1 %v3137_v55  ;;  %2896 = vmatprep.subr.bf16.mxu0 %v3221_v2 }
  0xb6   : >> { %2916 = vmatprep.subr.bf16.mxu1 %v3221_v2  ;;  %2910 = vmatprep.mubr.msk.bf16.mxu0 %vm3222_vm0, %v3221_v2 }
  0xb7   : >> { %2930 = vmatprep.mubr.msk.bf16.mxu1 %vm3222_vm0, %v3221_v2 }
  0xb8   : >> { %2897 = vmatpush3.bf16.msra.mxu0 %v3138_v56 }
  0xb9   : >> { %2917 = vmatpush3.bf16.msra.mxu1 %v3139_v57  ;;  %2898 = vmatprep.subr.bf16.mxu0 %v3221_v2  ;;  %v3183_v57 = vld [vmem:[%s3861_s1 + $0x3b0] sm:$0xff]  }
  0xba   : >> { %2918 = vmatprep.subr.bf16.mxu1 %v3221_v2 }
  0xbc   : >> { %2899 = vmatpush3.bf16.msra.mxu0 %v3140_v58  ;;  %v1937_v58 = vshrl.u32 %v3188_v49, 16 }
  0xbd   : >> { %2919 = vmatpush3.bf16.msra.mxu1 %v3141_v59  ;;  %2900 = vmatprep.subr.bf16.mxu0 %v3221_v2  ;;  %v1940_v59 = vshll.u32 %v3188_v49, 16 }
  0xbe   : >> { %2920 = vmatprep.subr.bf16.mxu1 %v3221_v2 }
  0xc0   : >> { %2901 = vmatpush3.bf16.msra.mxu0 %v3142_v60 }
  0xc1   : >> { %2921 = vmatpush3.bf16.msra.mxu1 %v3143_v61  ;;  %2902 = vmatprep.subr.bf16.mxu0 %v3221_v2 }
  0xc2   : >> { %2922 = vmatprep.subr.bf16.mxu1 %v3221_v2 }
  0xc4   : >> { %2903 = vmatpush3.bf16.msra.mxu0 %v3144_v62  ;;  %v3184_v62 = vld [vmem:[%s3861_s1 + $0x3f0] sm:$0xff]  }
  0xc5   : >> { %2923 = vmatpush3.bf16.msra.mxu1 %v3145_v63  ;;  %2904 = vmatprep.subr.bf16.mxu0 %v3221_v2 }
  0xc6   : >> { %2924 = vmatprep.subr.bf16.mxu1 %v3221_v2 }
  0xc8   : >> { %2905 = vmatpush3.bf16.msra.mxu0 %v3146_v1  ;;  %v3187_v1 = vld [vmem:[%s3319_s20 + $0xc] ss:$0 sps:$4 sm:$0x22]   ;;  %s2042_s20 = scalar_lea.vmem %s3269_s22, %s3219_s26  ;;  %s200_s26 = sadd.s32 1, %s3219_s26  }
  0xc9   : >> { %2925 = vmatpush3.bf16.msra.mxu1 %v3147_v4  ;;  %2906 = vmatprep.subr.bf16.mxu0 %v3221_v2  ;;  %v1939_v4 = vrot.slane %v1937_v58, 1  ;;  %v1824_v7 = vrot.slane %v3187_v1, 1  ;;  %p197_p5 = scmp.ge.s32.totalorder %s200_s26, 2  }
  0xca   : >> { %2926 = vmatprep.subr.bf16.mxu1 %v3221_v2 }
  0xcc   : >> { %2907 = vmatpush3.bf16.msra.mxu0 %v3148_v5  ;;  %v1942_v5 = vrot.slane %v1940_v59, 2 }
  0xcd   : >> { %2927 = vmatpush3.bf16.msra.mxu1 %v3149_v8  ;;  %2908 = vmatprep.subr.bf16.mxu0 %v3221_v2 }
  0xce   : >> { %2928 = vmatprep.subr.bf16.mxu1 %v3221_v2  ;;  %v1943_v8 = vor.u32 %v1942_v5, %v1939_v4 }
  0xd0   : >> { %2909 = vmatpush3.bf16.msra.mxu0 %v3150_v10 }
  0xd1   : >> { %2929 = vmatpush3.bf16.msra.mxu1 %v3151_v13  ;;  %2934 = vmatprep.subr.bf16.mxu0 %v3221_v2 }
  0xd2   : >> { %2954 = vmatprep.subr.bf16.mxu1 %v3221_v2 }
  0xd3   : >> { %2911 = vmatmul.mubr.bf16.vlgmr.msra.gmra.mrb[20].mxu0 %v1365_v14 }
  0xd4   : >> { %2931 = vmatmul.mubr.bf16.vlgmr.msra.gmra.mrb[20].mxu1 %v1484_v15  ;;  %2935 = vmatpush3.bf16.msra.mxu0 %v3154_v16 }
  0xd5   : >> { %2955 = vmatpush3.bf16.msra.mxu1 %v3155_v17  ;;  %2936 = vmatprep.subr.bf16.mxu0 %v3221_v2 }
  0xd6   : >> { %2956 = vmatprep.subr.bf16.mxu1 %v3221_v2  ;;  %2950 = vmatprep.mubr.msk.bf16.mxu0 %vm3222_vm0, %v3221_v2 }
  0xd7   : >> { %2970 = vmatprep.mubr.msk.bf16.mxu1 %vm3222_vm0, %v3221_v2 }
  0xd8   : >> { %2937 = vmatpush3.bf16.msra.mxu0 %v3156_v18 }
  0xd9   : >> { %2957 = vmatpush3.bf16.msra.mxu1 %v3157_v19  ;;  %2938 = vmatprep.subr.bf16.mxu0 %v3221_v2 }
  0xda   : >> { %2958 = vmatprep.subr.bf16.mxu1 %v3221_v2 }
  0xdc   : >> { %2939 = vmatpush3.bf16.msra.mxu0 %v3158_v20 }
  0xdd   : >> { %2959 = vmatpush3.bf16.msra.mxu1 %v3159_v21  ;;  %2940 = vmatprep.subr.bf16.mxu0 %v3221_v2 }
  0xde   : >> { %2960 = vmatprep.subr.bf16.mxu1 %v3221_v2 }
  0xe0   : >> { %2941 = vmatpush3.bf16.msra.mxu0 %v3160_v22 }
  0xe1   : >> { %2961 = vmatpush3.bf16.msra.mxu1 %v3161_v23  ;;  %2942 = vmatprep.subr.bf16.mxu0 %v3221_v2 }
  0xe2   : >> { %2962 = vmatprep.subr.bf16.mxu1 %v3221_v2 }
  0xe4   : >> { %2943 = vmatpush3.bf16.msra.mxu0 %v3162_v24 }
  0xe5   : >> { %2963 = vmatpush3.bf16.msra.mxu1 %v3163_v25  ;;  %2944 = vmatprep.subr.bf16.mxu0 %v3221_v2 }
  0xe6   : >> { %2964 = vmatprep.subr.bf16.mxu1 %v3221_v2 }
  0xe8   : >> { %2945 = vmatpush3.bf16.msra.mxu0 %v3164_v26 }
  0xe9   : >> { %2965 = vmatpush3.bf16.msra.mxu1 %v3165_v28  ;;  %2946 = vmatprep.subr.bf16.mxu0 %v3221_v2 }
  0xea   : >> { %2966 = vmatprep.subr.bf16.mxu1 %v3221_v2 }
  0xec   : >> { %2947 = vmatpush3.bf16.msra.mxu0 %v3166_v29 }
  0xed   : >> { %2967 = vmatpush3.bf16.msra.mxu1 %v3167_v31  ;;  %2948 = vmatprep.subr.bf16.mxu0 %v3221_v2 }
  0xee   : >> { %2968 = vmatprep.subr.bf16.mxu1 %v3221_v2 }
  0xf0   : >> { %2949 = vmatpush3.bf16.msra.mxu0 %v3168_v32 }
  0xf1   : >> { %2969 = vmatpush3.bf16.msra.mxu1 %v3169_v35  ;;  %2974 = vmatprep.subr.bf16.mxu0 %v3221_v2 }
  0xf2   : >> { %2994 = vmatprep.subr.bf16.mxu1 %v3221_v2 }
  0xf3   : >> { %2951 = vmatmul.mubr.bf16.vlgmr.msra.gmra.mrb[24].mxu0 %v2444_v36 }
  0xf4   : >> { %2971 = vmatmul.mubr.bf16.vlgmr.msra.gmra.mrb[24].mxu1 %v1712_v37  ;;  %2975 = vmatpush3.bf16.msra.mxu0 %v3171_v38 }
  0xf5   : >> { %2995 = vmatpush3.bf16.msra.mxu1 %v3172_v39  ;;  %2976 = vmatprep.subr.bf16.mxu0 %v3221_v2 }
  0xf6   : >> { %2996 = vmatprep.subr.bf16.mxu1 %v3221_v2  ;;  %2990 = vmatprep.mubr.msk.bf16.mxu0 %vm3222_vm0, %v3221_v2 }
  0xf7   : >> { %3010 = vmatprep.mubr.msk.bf16.mxu1 %vm3222_vm0, %v3221_v2 }
  0xf8   : >> { %2977 = vmatpush3.bf16.msra.mxu0 %v3173_v40 }
  0xf9   : >> { %2997 = vmatpush3.bf16.msra.mxu1 %v3174_v41  ;;  %2978 = vmatprep.subr.bf16.mxu0 %v3221_v2 }
  0xfa   : >> { %2998 = vmatprep.subr.bf16.mxu1 %v3221_v2 }
  0xfc   : >> { %2979 = vmatpush3.bf16.msra.mxu0 %v3175_v42 }
  0xfd   : >> { %2999 = vmatpush3.bf16.msra.mxu1 %v3176_v43  ;;  %2980 = vmatprep.subr.bf16.mxu0 %v3221_v2 }
  0xfe   : >> { %3000 = vmatprep.subr.bf16.mxu1 %v3221_v2 }
 0x100   : >> { %2981 = vmatpush3.bf16.msra.mxu0 %v3177_v44 }
 0x101   : >> { %3001 = vmatpush3.bf16.msra.mxu1 %v3178_v45  ;;  %2982 = vmatprep.subr.bf16.mxu0 %v3221_v2 }
 0x102   : >> { %3002 = vmatprep.subr.bf16.mxu1 %v3221_v2 }
 0x104   : >> { %2983 = vmatpush3.bf16.msra.mxu0 %v3179_v46 }
 0x105   : >> { %3003 = vmatpush3.bf16.msra.mxu1 %v3180_v47  ;;  %2984 = vmatprep.subr.bf16.mxu0 %v3221_v2 }
 0x106   : >> { %v332_v51 = vpop.f32.mrb[0].mxu0  ;;  %3004 = vmatprep.subr.bf16.mxu1 %v3221_v2 }
 0x107   : >> { %v420_v52 = vpop.f32.mrb[0].mxu1  ;;  %v2712_v53 = vpop.f32.mrb[1].mxu0 }
 0x108   : >> { %v421_v54 = vadd.f32 %v420_v52, %v332_v51  ;;  %v2732_v55 = vpop.f32.mrb[1].mxu1  ;;  %v335_v56 = vpop.f32.mrb[2].mxu0  ;;  %2985 = vmatpush3.bf16.msra.mxu0 %v3181_v48 }
 0x109   : >> { %v423_v60 = vpop.f32.mrb[2].mxu1  ;;  %3005 = vmatpush3.bf16.msra.mxu1 %v3182_v50  ;;  %v2713_v61 = vpop.f32.mrb[3].mxu0  ;;  %2986 = vmatprep.subr.bf16.mxu0 %v3221_v2 }
 0x10a   : >> { %v2733_v63 = vpop.f32.mrb[3].mxu1  ;;  %3006 = vmatprep.subr.bf16.mxu1 %v3221_v2 }
 0x10c   : >> { %2987 = vmatpush3.bf16.msra.mxu0 %v3183_v57 }
 0x10d   : >> { %3007 = vmatpush3.bf16.msra.mxu1 %v3184_v62  ;;  %2988 = vmatprep.subr.bf16.mxu0 %v3221_v2 }
 0x10e   : >> { %3008 = vmatprep.subr.bf16.mxu1 %v3221_v2 }
 0x110   : >> { %2989 = vmatpush3.bf16.msra.mxu0 %v3185_v3 }
 0x111   : >> { %3009 = vmatpush3.bf16.msra.mxu1 %v3186_v6 }
 0x113   : >> { %2991 = vmatmul.mubr.bf16.vlgmr.msra.gmra.mrb[28].mxu0 %v1824_v7 }
 0x114   : >> { %3011 = vmatmul.mubr.bf16.vlgmr.msra.gmra.mrb[28].mxu1 %v1943_v8 }
 0x126   : >> { %v531_v9 = vpop.f32.mrb[4].mxu0 }
 0x127   : >> { %v537_v10 = vadd.f32 %v531_v9, %v421_v54  ;;  %v650_v11 = vpop.f32.mrb[4].mxu1  ;;  %v2752_v12 = vpop.f32.mrb[5].mxu0 }
 0x128   : >> { %v2772_v13 = vpop.f32.mrb[5].mxu1  ;;  %v534_v14 = vpop.f32.mrb[6].mxu0 }
 0x129   : >> { %v656_v15 = vadd.f32 %v650_v11, %v537_v10  ;;  %v653_v16 = vpop.f32.mrb[6].mxu1  ;;  %v2753_v17 = vpop.f32.mrb[7].mxu0 }
 0x12a   : >> { %v2773_v18 = vpop.f32.mrb[7].mxu1 }
 0x146   : >> { %v760_v19 = vpop.f32.mrb[8].mxu0 }
 0x147   : >> { %v766_v20 = vadd.f32 %v760_v19, %v656_v15  ;;  %v878_v21 = vpop.f32.mrb[8].mxu1  ;;  %v2792_v2 = vpop.f32.mrb[9].mxu0 }
 0x148   : >> { %v2812_v22 = vpop.f32.mrb[9].mxu1  ;;  %v763_v23 = vpop.f32.mrb[10].mxu0 }
 0x149   : >> { %v884_v24 = vadd.f32 %v878_v21, %v766_v20  ;;  %v881_v25 = vpop.f32.mrb[10].mxu1  ;;  %v2793_v26 = vpop.f32.mrb[11].mxu0 }
 0x14a   : >> { %v2813_v27 = vpop.f32.mrb[11].mxu1 }
 0x166   : >> { %v990_v28 = vpop.f32.mrb[12].mxu0 }
 0x167   : >> { %v996_v29 = vadd.f32 %v990_v28, %v884_v24  ;;  %v1109_v30 = vpop.f32.mrb[12].mxu1  ;;  %v2832_v31 = vpop.f32.mrb[13].mxu0 }
 0x168   : >> { %v2852_v32 = vpop.f32.mrb[13].mxu1  ;;  %v993_v33 = vpop.f32.mrb[14].mxu0 }
 0x169   : >> { %v1115_v34 = vadd.f32 %v1109_v30, %v996_v29  ;;  %v1112_v35 = vpop.f32.mrb[14].mxu1  ;;  %v2833_v36 = vpop.f32.mrb[15].mxu0 }
 0x16a   : >> { %v2853_v37 = vpop.f32.mrb[15].mxu1 }
 0x186   : >> { %v1219_v38 = vpop.f32.mrb[16].mxu0 }
 0x187   : >> { %v1225_v39 = vadd.f32 %v1219_v38, %v1115_v34  ;;  %v1337_v40 = vpop.f32.mrb[16].mxu1  ;;  %v2872_v41 = vpop.f32.mrb[17].mxu0 }
 0x188   : >> { %v2892_v42 = vpop.f32.mrb[17].mxu1  ;;  %v1222_v43 = vpop.f32.mrb[18].mxu0 }
 0x189   : >> { %v1343_v44 = vadd.f32 %v1337_v40, %v1225_v39  ;;  %v1340_v45 = vpop.f32.mrb[18].mxu1  ;;  %v2873_v46 = vpop.f32.mrb[19].mxu0 }
 0x18a   : >> { %v2893_v47 = vpop.f32.mrb[19].mxu1 }
 0x1a6   : >> { %v1449_v48 = vpop.f32.mrb[20].mxu0 }
 0x1a7   : >> { %v1455_v49 = vadd.f32 %v1449_v48, %v1343_v44  ;;  %v1568_v50 = vpop.f32.mrb[20].mxu1  ;;  %v2912_v51 = vpop.f32.mrb[21].mxu0 }
 0x1a8   : >> { %v2932_v52 = vpop.f32.mrb[21].mxu1  ;;  %v1452_v53 = vpop.f32.mrb[22].mxu0 }
 0x1a9   : >> { %v1574_v54 = vadd.f32 %v1568_v50, %v1455_v49  ;;  %v1571_v55 = vpop.f32.mrb[22].mxu1  ;;  %v2913_v56 = vpop.f32.mrb[23].mxu0 }
 0x1aa   : >> { %v2933_v57 = vpop.f32.mrb[23].mxu1 }
 0x1c6   : >> { %v1678_v58 = vpop.f32.mrb[24].mxu0 }
 0x1c7   : >> { %v1684_v59 = vadd.f32 %v1678_v58, %v1574_v54  ;;  %v1796_v60 = vpop.f32.mrb[24].mxu1  ;;  %v2952_v61 = vpop.f32.mrb[25].mxu0 }
 0x1c8   : >> { %v2972_v62 = vpop.f32.mrb[25].mxu1  ;;  %v1681_v63 = vpop.f32.mrb[26].mxu0 }
 0x1c9   : >> { %v1802_v1 = vadd.f32 %v1796_v60, %v1684_v59  ;;  %v1799_v3 = vpop.f32.mrb[26].mxu1  ;;  %v2953_v4 = vpop.f32.mrb[27].mxu0 }
 0x1ca   : >> { %v2973_v5 = vpop.f32.mrb[27].mxu1 }
 0x1e6   : >> { %v1908_v6 = vpop.f32.mrb[28].mxu0 }
 0x1e7   : >> { %v1914_v7 = vadd.f32 %v1908_v6, %v1802_v1  ;;  %v2027_v8 = vpop.f32.mrb[28].mxu1  ;;  %v2992_v9 = vpop.f32.mrb[29].mxu0 }
 0x1e8   : >> { %v3012_v10 = vpop.f32.mrb[29].mxu1  ;;  %v1911_v11 = vpop.f32.mrb[30].mxu0 }
 0x1e9   : >> { %v2033_v12 = vadd.f32 %v2027_v8, %v1914_v7  ;;  %v2030_v13 = vpop.f32.mrb[30].mxu1  ;;  %v2993_v14 = vpop.f32.mrb[31].mxu0  ;;  %199 = sbr.rel (!%p197_p5) target bundleno = 18 (0x12), region = 89 }
 0x1ea   : >> { %v3013_v15 = vpop.f32.mrb[31].mxu1 }
 0x1eb   : >> { %v2040_v16 = vadd.f32 %v3264_v0, %v2033_v12 }
 0x1ed   : >> { %v2041_v17 = vpack.c.bf16 %v2040_v16, %v2040_v16 }
 0x1ef   : >> { %2043 = vst [vmem:[%s2042_s20] sm:$0x1] %v2041_v17 }
 0x1f0 PF: > { %s13_s14 = sadd.s32 1, %s3215_s14   ;;  %s3864_s12 = smov %s3211_s13 }
 0x1f1   : > { %p10_p6 = scmp.ge.s32.totalorder %s13_s14, 4   ;;  %s3865_s13 = smov %s3867_s15 }
 0x1f3   :  { %12 = sbr.rel (!%p10_p6) target bundleno = 2 (0x2), region = 100 }

</bundles_post_ra>
